<compile_context>
chip_gen: v6e
topology: v6e:2x2x1
jax: 0.10.0
libtpu: 0.0.40
codegen_flags: <defaults>
</compile_context>

<pallas_src>
import functools
import math

import jax
import jax.numpy as jnp
from jax import lax
from jax.experimental import pallas as pl
from jax.experimental.pallas import tpu as pltpu


# -----------------------------------------------------------------------------
# Fused kernel: embedding + multi-layer GRU + dot attention + tanh(W.) + pred
# -----------------------------------------------------------------------------
def _dec_rnn_kernel(ids_ref, embed_ref, h0_ref, wihT_ref, whhT_ref,
                    bfold_ref, bhhn_ref, enc_ref, w1_ref, w2_ref, wb_ref,
                    wpT_ref, pb_ref,
                    pred_ref, hout_ref,
                    xbuf, dec_buf,
                    *, n_layers, hidden_dim, t_len, b_sz, n_tok):
    H = hidden_dim
    T = t_len
    B = b_sz
    TB = T * B

    # ---- embedding gather as a one-hot matmul (dropout = identity, eval) ----
    ids = ids_ref[...]                                        # (T*B, 1) int32
    vocab_iota = lax.broadcasted_iota(jnp.int32, (TB, n_tok), 1)
    onehot = jnp.where(ids == vocab_iota, 1.0, 0.0).astype(jnp.bfloat16)
    # embed table is column-padded to D, so this fills xbuf exactly.
    xbuf[...] = jnp.dot(onehot, embed_ref[...],
                        preferred_element_type=jnp.float32)   # (T*B, D)

    # ---------------- GRU (PyTorch gate order: r, z, n) ----------------------
    last = n_layers - 1
    for l in range(n_layers):
        wih = wihT_ref[l]                      # (D, 3H) bf16
        whh = whhT_ref[l]                      # (H, 3H) bf16
        bf = bfold_ref[l]                      # (1, 3H) = [b_ih+b_hh | b_ih_n]
        bhn = jnp.broadcast_to(bhhn_ref[l], (B, H))   # b_hh_n, hoisted

        # Input-to-hidden gates for the WHOLE sequence in ONE matmul
        # (M = T*B, N = 3H), biases folded, off the serial critical path.
        gi = jnp.dot(xbuf[...].astype(jnp.bfloat16), wih,
                     preferred_element_type=jnp.float32) + bf  # (T*B, 3H)

        h = h0_ref[l]                          # (B, H) f32
        for t in range(T):                     # fully unrolled, static indices
            rs = slice(t * B, (t + 1) * B)
            # ONE h @ W_hh per step, gates sliced at static lane offsets.
            gh = jnp.dot(h.astype(jnp.bfloat16), whh,
                         preferred_element_type=jnp.float32)   # (B, 3H)
            gi_t = gi[rs]
            r = jax.nn.sigmoid(gi_t[:, 0:H] + gh[:, 0:H])
            z = jax.nn.sigmoid(gi_t[:, H:2 * H] + gh[:, H:2 * H])
            n = jnp.tanh(gi_t[:, 2 * H:3 * H] + r * (gh[:, 2 * H:3 * H] + bhn))
            h = (1.0 - z) * n + z * h
            if l < last:
                # Next layer's input (padded weight rows zero out cols >= H).
                xbuf[rs, 0:H] = h
            else:
                # Last layer: write directly in the attention's b-major layout
                # (B*T, H) -> no swapaxes/transpose later.
                for b in range(B):
                    row = b * T + t
                    dec_buf[row:row + 1, :] = h[b:b + 1, :]
        hout_ref[l] = h

    # ------------- dot attention + tanh(W [dec; ctx] + b) + prediction -------
    enc_all = enc_ref[...]                     # (B, S, H) f32
    w1 = w1_ref[...]                           # (H, H) bf16
    w2 = w2_ref[...]                           # (H, H) bf16
    wb = wb_ref[...]                           # (1, H) f32
    wp = wpT_ref[...]                          # (H, Vp) bf16
    pb = pb_ref[...]                           # (1, Vp) f32

    for b in range(B):
        dec_b = dec_buf[b * T:(b + 1) * T, :].astype(jnp.bfloat16)   # (T, H)
        enc_b = enc_all[b].astype(jnp.bfloat16)                      # (S, H)

        # energy = dec @ enc^T  (contract last dims; no explicit transpose)
        energy = lax.dot_general(dec_b, enc_b, (((1,), (1,)), ((), ())),
                                 preferred_element_type=jnp.float32)  # (T, S)
        energy = energy - jnp.max(energy, axis=-1, keepdims=True)
        e = jnp.exp(energy)
        # approx reciprocal: softmax rows sum to 1 +/- ~1e-3 (within tol).
        attn = e * pl.reciprocal(jnp.sum(e, axis=-1, keepdims=True), approx=True)
        ctx = jnp.dot(attn.astype(jnp.bfloat16), enc_b,
                      preferred_element_type=jnp.float32)             # (T, H)

        # w(cat(dec, ctx)) == dec @ W[:, :H].T + ctx @ W[:, H:].T  (no concat)
        co = jnp.tanh(
            jnp.dot(dec_b, w1, preferred_element_type=jnp.float32)
            + jnp.dot(ctx.astype(jnp.bfloat16), w2,
                      preferred_element_type=jnp.float32)
            + wb)                                                      # (T, H)

        # Fused prediction head (lane-dense Vp = 128-padded vocab).
        pred_ref[b] = (jnp.dot(co.astype(jnp.bfloat16), wp,
                               preferred_element_type=jnp.float32) + pb)


# -----------------------------------------------------------------------------
# One-time weight prepacking (hoisted out of the forward hot path)
# -----------------------------------------------------------------------------
def pack_params(params):
    embed_w = params['embed']                    # (V, E)
    V, E = embed_w.shape
    H = params['w_hh'][0].shape[1]
    L = len(params['w_ih'])
    D = max(E, H)                                # padded GRU input width
    Vp = ((V + 127) // 128) * 128                # lane-dense vocab width

    wihT, whhT, bfold, bhhn = [], [], [], []
    for l in range(L):
        w_ih, w_hh = params['w_ih'][l], params['w_hh'][l]
        b_ih, b_hh = params['b_ih'][l], params['b_hh'][l]
        wt = w_ih.T                              # (in_dim, 3H), gate order r,z,n
        wihT.append(jnp.pad(wt, ((0, D - wt.shape[0]), (0, 0))))   # (D, 3H)
        whhT.append(w_hh.T)                      # (H, 3H)
        bfold.append(jnp.concatenate(
            [b_ih[:2 * H] + b_hh[:2 * H], b_ih[2 * H:]])[None, :])  # (1, 3H)
        bhhn.append(b_hh[2 * H:][None, :])       # (1, H)

    packed = dict(
        embed=jnp.pad(embed_w, ((0, 0), (0, D - E))).astype(jnp.bfloat16),
        wihT=jnp.stack(wihT).astype(jnp.bfloat16),       # (L, D, 3H)
        whhT=jnp.stack(whhT).astype(jnp.bfloat16),       # (L, H, 3H)
        bfold=jnp.stack(bfold).astype(jnp.float32),      # (L, 1, 3H)
        bhhn=jnp.stack(bhhn).astype(jnp.float32),        # (L, 1, H)
        w1=params['w_w'][:, :H].T.astype(jnp.bfloat16),  # (H, H)
        w2=params['w_w'][:, H:].T.astype(jnp.bfloat16),  # (H, H)
        wb=params['w_b'][None, :].astype(jnp.float32),   # (1, H)
        wpT=jnp.pad(params['p_w'].T,
                    ((0, 0), (0, Vp - V))).astype(jnp.bfloat16),     # (H, Vp)
        pb=jnp.pad(params['p_b'], (0, Vp - V))[None, :].astype(jnp.float32),
    )
    meta = dict(V=V, E=E, H=H, L=L, D=D, Vp=Vp)
    return packed, meta


# -----------------------------------------------------------------------------
# Forward wrapper: one pallas_call, minimal glue
# -----------------------------------------------------------------------------
def dec_rnn_forward(packed, meta, inputs, hidden, enc_outs):
    B, T = inputs.shape
    L, H, D, V, Vp = meta['L'], meta['H'], meta['D'], meta['V'], meta['Vp']

    # Token ids, flattened time-major (row r = t*B + b) for the in-kernel gather.
    ids = inputs.T.reshape(T * B, 1).astype(jnp.int32)

    vmem = pl.BlockSpec(memory_space=pltpu.MemorySpace.VMEM)
    kernel = functools.partial(_dec_rnn_kernel, n_layers=L, hidden_dim=H,
                               t_len=T, b_sz=B, n_tok=V)

    pred_pad, hout = pl.pallas_call(
        kernel,
        out_shape=(jax.ShapeDtypeStruct((B, T, Vp), jnp.float32),
                   jax.ShapeDtypeStruct((L, B, H), jnp.float32)),
        in_specs=[vmem] * 13,
        out_specs=(vmem, vmem),
        scratch_shapes=[pltpu.VMEM((T * B, D), jnp.float32),   # layer I/O seq
                        pltpu.VMEM((B * T, H), jnp.float32)],  # dec (b-major)
    )(ids, packed['embed'], hidden, packed['wihT'], packed['whhT'],
      packed['bfold'], packed['bhhn'], enc_outs,
      packed['w1'], packed['w2'], packed['wb'], packed['wpT'], packed['pb'])

    return pred_pad[:, :, :V], hout


# -----------------------------------------------------------------------------
# Pure-JAX reference (mirrors the PyTorch forward) for a correctness check
# -----------------------------------------------------------------------------
def dec_rnn_reference(params, inputs, hidden, enc_outs):
    L, _, H = hidden.shape
    x = jnp.take(params['embed'], inputs, axis=0)    # (B, T, E), dropout=identity
    h_out = []
    for l in range(L):
        w_ih, w_hh = params['w_ih'][l], params['w_hh'][l]
        b_ih, b_hh = params['b_ih'][l], params['b_hh'][l]

        def step(h, x_t):
            gi = x_t @ w_ih.T + b_ih
            gh = h @ w_hh.T + b_hh
            r = jax.nn.sigmoid(gi[:, :H] + gh[:, :H])
            z = jax.nn.sigmoid(gi[:, H:2 * H] + gh[:, H:2 * H])
            n = jnp.tanh(gi[:, 2 * H:] + r * gh[:, 2 * H:])
            h_new = (1.0 - z) * n + z * h
            return h_new, h_new

        h_last, ys = lax.scan(step, hidden[l], jnp.transpose(x, (1, 0, 2)))
        x = jnp.transpose(ys, (1, 0, 2))
        h_out.append(h_last)

    dec = x                                          # (B, T, H)
    energy = jnp.einsum('bth,bsh->bts', dec, enc_outs)
    attn = jax.nn.softmax(energy, axis=-1)
    context = jnp.einsum('bts,bsh->bth', attn, enc_outs)
    concat = jnp.concatenate([dec, context], axis=-1)
    co = jnp.tanh(concat @ params['w_w'].T + params['w_b'])
    pred = co @ params['p_w'].T + params['p_b']
    return pred, jnp.stack(h_out)


# -----------------------------------------------------------------------------
def init_params(key, vocab_size, embed_dim, hidden_dim, n_layers):
    H = hidden_dim
    scale = 1.0 / math.sqrt(H)
    keys = jax.random.split(key, 6 + 4 * n_layers)
    p = {'embed': jax.random.normal(keys[0], (vocab_size, embed_dim),
                                    jnp.float32) * 0.1}
    w_ih, w_hh, b_ih, b_hh = [], [], [], []
    k = 1
    for l in range(n_layers):
        in_dim = embed_dim if l == 0 else H
        w_ih.append(jax.random.uniform(keys[k], (3 * H, in_dim), jnp.float32,
                                       -scale, scale)); k += 1
        w_hh.append(jax.random.uniform(keys[k], (3 * H, H), jnp.float32,
                                       -scale, scale)); k += 1
        b_ih.append(jax.random.uniform(keys[k], (3 * H,), jnp.float32,
                                       -scale, scale)); k += 1
        b_hh.append(jax.random.uniform(keys[k], (3 * H,), jnp.float32,
                                       -scale, scale)); k += 1
    p.update(w_ih=w_ih, w_hh=w_hh, b_ih=b_ih, b_hh=b_hh)
    p['w_w'] = jax.random.uniform(keys[k], (H, 2 * H), jnp.float32, -scale, scale); k += 1
    p['w_b'] = jax.random.uniform(keys[k], (H,), jnp.float32, -scale, scale); k += 1
    p['p_w'] = jax.random.uniform(keys[k], (vocab_size, H), jnp.float32, -scale, scale); k += 1
    p['p_b'] = jax.random.uniform(keys[k], (vocab_size,), jnp.float32, -scale, scale); k += 1
    return p


if __name__ == "__main__":
    # Module config (use_birnn=False so hidden_dim stays as given; dropout in
    # eval mode -> identity).
    vocab_size, embed_dim, hidden_dim, n_layers = 32, 16, 32, 2
    B, T_dec, S_enc = 2, 8, 8

    key = jax.random.PRNGKey(0)
    kp, ki, kh, ke = jax.random.split(key, 4)
    params = init_params(kp, vocab_size, embed_dim, hidden_dim, n_layers)

    inputs = jax.random.randint(ki, (B, T_dec), 0, vocab_size, dtype=jnp.int32)
    hidden = jax.random.normal(kh, (n_layers, B, hidden_dim), jnp.float32)
    enc_outs = jax.random.normal(ke, (B, S_enc, hidden_dim), jnp.float32)

    packed, meta = pack_params(params)           # one-time weight prepacking

    pred, hid_out = dec_rnn_forward(packed, meta, inputs, hidden, enc_outs)
    jax.block_until_ready((pred, hid_out))

    pred_ref, hid_ref = dec_rnn_reference(params, inputs, hidden, enc_outs)
    jax.block_until_ready((pred_ref, hid_ref))

    assert pred.shape == (B, T_dec, vocab_size)
    assert hid_out.shape == (n_layers, B, hidden_dim)
    assert jnp.allclose(pred, pred_ref, rtol=2e-2, atol=2e-2), "pred mismatch"
    assert jnp.allclose(hid_out, hid_ref, rtol=2e-2, atol=2e-2), "hidden mismatch"

    print("KERNEL_OK")
</pallas_src>

<mosaic_0001>
module attributes {stable_mosaic.version = 11 : i64} {
  func.func @_dec_rnn_kernel(%arg0: memref<16x1xi32, #tpu.memory_space<vmem>>, %arg1: memref<32x32xbf16, #tpu.memory_space<vmem>>, %arg2: memref<2x2x32xf32, #tpu.memory_space<vmem>>, %arg3: memref<2x32x96xbf16, #tpu.memory_space<vmem>>, %arg4: memref<2x32x96xbf16, #tpu.memory_space<vmem>>, %arg5: memref<2x1x96xf32, #tpu.memory_space<vmem>>, %arg6: memref<2x1x32xf32, #tpu.memory_space<vmem>>, %arg7: memref<2x8x32xf32, #tpu.memory_space<vmem>>, %arg8: memref<32x32xbf16, #tpu.memory_space<vmem>>, %arg9: memref<32x32xbf16, #tpu.memory_space<vmem>>, %arg10: memref<1x32xf32, #tpu.memory_space<vmem>>, %arg11: memref<32x128xbf16, #tpu.memory_space<vmem>>, %arg12: memref<1x128xf32, #tpu.memory_space<vmem>>, %arg13: memref<2x8x128xf32, #tpu.memory_space<vmem>>, %arg14: memref<2x2x32xf32, #tpu.memory_space<vmem>>, %arg15: memref<16x32xf32, #tpu.memory_space<vmem>>, %arg16: memref<16x32xf32, #tpu.memory_space<vmem>>) attributes {dimension_semantics = [], scalar_prefetch = 0 : i64, scratch_operands = 2 : i64, tpu.core_type = #tpu.core_type<tc>} {
    %c0 = arith.constant 0 : index
    %c0_0 = arith.constant 0 : index
    %0 = vector.load %arg0[%c0, %c0_0] : memref<16x1xi32, #tpu.memory_space<vmem>>, vector<16x1xi32>
    %1 = tpu.iota {dimensions = array<i32: 1>} : vector<16x32xi32>
    %2 = vector.broadcast %0 : vector<16x1xi32> to vector<16x32xi32>
    %3 = arith.cmpi eq, %2, %1 : vector<16x32xi32>
    %cst = arith.constant 1.000000e+00 : f32
    %cst_1 = arith.constant 0.000000e+00 : f32
    %4 = vector.broadcast %cst : f32 to vector<16x32xf32>
    %5 = vector.broadcast %cst_1 : f32 to vector<16x32xf32>
    %6 = arith.select %3, %4, %5 : vector<16x32xi1>, vector<16x32xf32>
    %7 = arith.truncf %6 : vector<16x32xf32> to vector<16x32xbf16>
    %c0_2 = arith.constant 0 : index
    %c0_3 = arith.constant 0 : index
    %8 = vector.load %arg1[%c0_2, %c0_3] : memref<32x32xbf16, #tpu.memory_space<vmem>>, vector<32x32xbf16>
    %cst_4 = arith.constant dense<0.000000e+00> : vector<16x32xf32>
    %9 = tpu.matmul %7, %8, %cst_4 {dimension_numbers = #tpu.dot_dimension_numbers<[1], [0], [0], [1], [0, 0, 1, 1], [], []>} : vector<16x32xbf16>, vector<32x32xbf16>, vector<16x32xf32> -> vector<16x32xf32>
    %c0_5 = arith.constant 0 : index
    %c0_6 = arith.constant 0 : index
    %10 = vector.load %arg15[%c0_5, %c0_6] : memref<16x32xf32, #tpu.memory_space<vmem>>, vector<16x32xf32>
    tpu.vector_store %arg15[%c0_5, %c0_6], %9 {strides = array<i32>} : memref<16x32xf32, #tpu.memory_space<vmem>>, vector<16x32xf32>,
    %c0_7 = arith.constant 0 : index
    %c0_8 = arith.constant 0 : index
    %c0_9 = arith.constant 0 : index
    %11 = vector.load %arg3[%c0_7, %c0_8, %c0_9] : memref<2x32x96xbf16, #tpu.memory_space<vmem>>, vector<1x32x96xbf16>
    %12 = vector.shape_cast %11 : vector<1x32x96xbf16> to vector<32x96xbf16>
    %c0_10 = arith.constant 0 : index
    %c0_11 = arith.constant 0 : index
    %c0_12 = arith.constant 0 : index
    %13 = vector.load %arg4[%c0_10, %c0_11, %c0_12] : memref<2x32x96xbf16, #tpu.memory_space<vmem>>, vector<1x32x96xbf16>
    %14 = vector.shape_cast %13 : vector<1x32x96xbf16> to vector<32x96xbf16>
    %c0_13 = arith.constant 0 : index
    %c0_14 = arith.constant 0 : index
    %c0_15 = arith.constant 0 : index
    %15 = vector.load %arg5[%c0_13, %c0_14, %c0_15] : memref<2x1x96xf32, #tpu.memory_space<vmem>>, vector<1x1x96xf32>
    %16 = vector.shape_cast %15 : vector<1x1x96xf32> to vector<1x96xf32>
    %c0_16 = arith.constant 0 : index
    %c0_17 = arith.constant 0 : index
    %c0_18 = arith.constant 0 : index
    %17 = vector.load %arg6[%c0_16, %c0_17, %c0_18] : memref<2x1x32xf32, #tpu.memory_space<vmem>>, vector<1x1x32xf32>
    %18 = vector.shape_cast %17 : vector<1x1x32xf32> to vector<1x32xf32>
    %19 = vector.shape_cast %18 : vector<1x32xf32> to vector<1x32xf32>
    %20 = vector.broadcast %19 : vector<1x32xf32> to vector<2x32xf32>
    %c0_19 = arith.constant 0 : index
    %c0_20 = arith.constant 0 : index
    %21 = vector.load %arg15[%c0_19, %c0_20] : memref<16x32xf32, #tpu.memory_space<vmem>>, vector<16x32xf32>
    %22 = arith.truncf %21 : vector<16x32xf32> to vector<16x32xbf16>
    %cst_21 = arith.constant dense<0.000000e+00> : vector<16x96xf32>
    %23 = tpu.matmul %22, %12, %cst_21 {dimension_numbers = #tpu.dot_dimension_numbers<[1], [0], [0], [1], [0, 0, 1, 1], [], []>} : vector<16x32xbf16>, vector<32x96xbf16>, vector<16x96xf32> -> vector<16x96xf32>
    %24 = vector.broadcast %16 : vector<1x96xf32> to vector<16x96xf32>
    %25 = arith.addf %23, %24 : vector<16x96xf32>
    %c0_22 = arith.constant 0 : index
    %c0_23 = arith.constant 0 : index
    %c0_24 = arith.constant 0 : index
    %26 = vector.load %arg2[%c0_22, %c0_23, %c0_24] : memref<2x2x32xf32, #tpu.memory_space<vmem>>, vector<1x2x32xf32>
    %27 = vector.shape_cast %26 : vector<1x2x32xf32> to vector<2x32xf32>
    %28 = arith.truncf %27 : vector<2x32xf32> to vector<2x32xbf16>
    %cst_25 = arith.constant dense<0.000000e+00> : vector<2x96xf32>
    %29 = tpu.matmul %28, %14, %cst_25 {dimension_numbers = #tpu.dot_dimension_numbers<[1], [0], [0], [1], [0, 0, 1, 1], [], []>} : vector<2x32xbf16>, vector<32x96xbf16>, vector<2x96xf32> -> vector<2x96xf32>
    %30 = vector.extract_strided_slice %25 {offsets = [0, 0], sizes = [2, 96], strides = [1, 1]} : vector<16x96xf32> to vector<2x96xf32>
    %31 = vector.extract_strided_slice %30 {offsets = [0, 0], sizes = [2, 32], strides = [1, 1]} : vector<2x96xf32> to vector<2x32xf32>
    %32 = vector.extract_strided_slice %29 {offsets = [0, 0], sizes = [2, 32], strides = [1, 1]} : vector<2x96xf32> to vector<2x32xf32>
    %33 = arith.addf %31, %32 : vector<2x32xf32>
    %34 = arith.negf %33 : vector<2x32xf32>
    %35 = math.exp %34 : vector<2x32xf32>
    %cst_26 = arith.constant 1.000000e+00 : f32
    %36 = vector.broadcast %cst_26 : f32 to vector<2x32xf32>
    %37 = arith.addf %36, %35 : vector<2x32xf32>
    %38 = arith.divf %36, %37 : vector<2x32xf32>
    %39 = vector.extract_strided_slice %30 {offsets = [0, 32], sizes = [2, 32], strides = [1, 1]} : vector<2x96xf32> to vector<2x32xf32>
    %40 = vector.extract_strided_slice %29 {offsets = [0, 32], sizes = [2, 32], strides = [1, 1]} : vector<2x96xf32> to vector<2x32xf32>
    %41 = arith.addf %39, %40 : vector<2x32xf32>
    %42 = arith.negf %41 : vector<2x32xf32>
    %43 = math.exp %42 : vector<2x32xf32>
    %cst_27 = arith.constant 1.000000e+00 : f32
    %44 = vector.broadcast %cst_27 : f32 to vector<2x32xf32>
    %45 = arith.addf %44, %43 : vector<2x32xf32>
    %46 = arith.divf %44, %45 : vector<2x32xf32>
    %47 = vector.extract_strided_slice %30 {offsets = [0, 64], sizes = [2, 32], strides = [1, 1]} : vector<2x96xf32> to vector<2x32xf32>
    %48 = vector.extract_strided_slice %29 {offsets = [0, 64], sizes = [2, 32], strides = [1, 1]} : vector<2x96xf32> to vector<2x32xf32>
    %49 = arith.addf %48, %20 : vector<2x32xf32>
    %50 = arith.mulf %38, %49 : vector<2x32xf32>
    %51 = arith.addf %47, %50 : vector<2x32xf32>
    %52 = math.tanh %51 : vector<2x32xf32>
    %cst_28 = arith.constant 1.000000e+00 : f32
    %53 = vector.broadcast %cst_28 : f32 to vector<2x32xf32>
    %54 = arith.subf %53, %46 : vector<2x32xf32>
    %55 = arith.mulf %54, %52 : vector<2x32xf32>
    %56 = arith.mulf %46, %27 : vector<2x32xf32>
    %57 = arith.addf %55, %56 : vector<2x32xf32>
    %c0_29 = arith.constant 0 : index
    %c0_30 = arith.constant 0 : index
    %58 = vector.load %arg15[%c0_29, %c0_30] : memref<16x32xf32, #tpu.memory_space<vmem>>, vector<2x32xf32>
    tpu.vector_store %arg15[%c0_29, %c0_30], %57 {strides = array<i32>} : memref<16x32xf32, #tpu.memory_space<vmem>>, vector<2x32xf32>,
    %59 = arith.truncf %57 : vector<2x32xf32> to vector<2x32xbf16>
    %cst_31 = arith.constant dense<0.000000e+00> : vector<2x96xf32>
    %60 = tpu.matmul %59, %14, %cst_31 {dimension_numbers = #tpu.dot_dimension_numbers<[1], [0], [0], [1], [0, 0, 1, 1], [], []>} : vector<2x32xbf16>, vector<32x96xbf16>, vector<2x96xf32> -> vector<2x96xf32>
    %61 = vector.extract_strided_slice %25 {offsets = [2, 0], sizes = [2, 96], strides = [1, 1]} : vector<16x96xf32> to vector<2x96xf32>
    %62 = vector.extract_strided_slice %61 {offsets = [0, 0], sizes = [2, 32], strides = [1, 1]} : vector<2x96xf32> to vector<2x32xf32>
    %63 = vector.extract_strided_slice %60 {offsets = [0, 0], sizes = [2, 32], strides = [1, 1]} : vector<2x96xf32> to vector<2x32xf32>
    %64 = arith.addf %62, %63 : vector<2x32xf32>
    %65 = arith.negf %64 : vector<2x32xf32>
    %66 = math.exp %65 : vector<2x32xf32>
    %cst_32 = arith.constant 1.000000e+00 : f32
    %67 = vector.broadcast %cst_32 : f32 to vector<2x32xf32>
    %68 = arith.addf %67, %66 : vector<2x32xf32>
    %69 = arith.divf %67, %68 : vector<2x32xf32>
    %70 = vector.extract_strided_slice %61 {offsets = [0, 32], sizes = [2, 32], strides = [1, 1]} : vector<2x96xf32> to vector<2x32xf32>
    %71 = vector.extract_strided_slice %60 {offsets = [0, 32], sizes = [2, 32], strides = [1, 1]} : vector<2x96xf32> to vector<2x32xf32>
    %72 = arith.addf %70, %71 : vector<2x32xf32>
    %73 = arith.negf %72 : vector<2x32xf32>
    %74 = math.exp %73 : vector<2x32xf32>
    %cst_33 = arith.constant 1.000000e+00 : f32
    %75 = vector.broadcast %cst_33 : f32 to vector<2x32xf32>
    %76 = arith.addf %75, %74 : vector<2x32xf32>
    %77 = arith.divf %75, %76 : vector<2x32xf32>
    %78 = vector.extract_strided_slice %61 {offsets = [0, 64], sizes = [2, 32], strides = [1, 1]} : vector<2x96xf32> to vector<2x32xf32>
    %79 = vector.extract_strided_slice %60 {offsets = [0, 64], sizes = [2, 32], strides = [1, 1]} : vector<2x96xf32> to vector<2x32xf32>
    %80 = arith.addf %79, %20 : vector<2x32xf32>
    %81 = arith.mulf %69, %80 : vector<2x32xf32>
    %82 = arith.addf %78, %81 : vector<2x32xf32>
    %83 = math.tanh %82 : vector<2x32xf32>
    %cst_34 = arith.constant 1.000000e+00 : f32
    %84 = vector.broadcast %cst_34 : f32 to vector<2x32xf32>
    %85 = arith.subf %84, %77 : vector<2x32xf32>
    %86 = arith.mulf %85, %83 : vector<2x32xf32>
    %87 = arith.mulf %77, %57 : vector<2x32xf32>
    %88 = arith.addf %86, %87 : vector<2x32xf32>
    %c2 = arith.constant 2 : index
    %c0_35 = arith.constant 0 : index
    %89 = vector.load %arg15[%c2, %c0_35] : memref<16x32xf32, #tpu.memory_space<vmem>>, vector<2x32xf32>
    tpu.vector_store %arg15[%c2, %c0_35], %88 {strides = array<i32>} : memref<16x32xf32, #tpu.memory_space<vmem>>, vector<2x32xf32>,
    %90 = arith.truncf %88 : vector<2x32xf32> to vector<2x32xbf16>
    %cst_36 = arith.constant dense<0.000000e+00> : vector<2x96xf32>
    %91 = tpu.matmul %90, %14, %cst_36 {dimension_numbers = #tpu.dot_dimension_numbers<[1], [0], [0], [1], [0, 0, 1, 1], [], []>} : vector<2x32xbf16>, vector<32x96xbf16>, vector<2x96xf32> -> vector<2x96xf32>
    %92 = vector.extract_strided_slice %25 {offsets = [4, 0], sizes = [2, 96], strides = [1, 1]} : vector<16x96xf32> to vector<2x96xf32>
    %93 = vector.extract_strided_slice %92 {offsets = [0, 0], sizes = [2, 32], strides = [1, 1]} : vector<2x96xf32> to vector<2x32xf32>
    %94 = vector.extract_strided_slice %91 {offsets = [0, 0], sizes = [2, 32], strides = [1, 1]} : vector<2x96xf32> to vector<2x32xf32>
    %95 = arith.addf %93, %94 : vector<2x32xf32>
    %96 = arith.negf %95 : vector<2x32xf32>
    %97 = math.exp %96 : vector<2x32xf32>
    %cst_37 = arith.constant 1.000000e+00 : f32
    %98 = vector.broadcast %cst_37 : f32 to vector<2x32xf32>
    %99 = arith.addf %98, %97 : vector<2x32xf32>
    %100 = arith.divf %98, %99 : vector<2x32xf32>
    %101 = vector.extract_strided_slice %92 {offsets = [0, 32], sizes = [2, 32], strides = [1, 1]} : vector<2x96xf32> to vector<2x32xf32>
    %102 = vector.extract_strided_slice %91 {offsets = [0, 32], sizes = [2, 32], strides = [1, 1]} : vector<2x96xf32> to vector<2x32xf32>
    %103 = arith.addf %101, %102 : vector<2x32xf32>
    %104 = arith.negf %103 : vector<2x32xf32>
    %105 = math.exp %104 : vector<2x32xf32>
    %cst_38 = arith.constant 1.000000e+00 : f32
    %106 = vector.broadcast %cst_38 : f32 to vector<2x32xf32>
    %107 = arith.addf %106, %105 : vector<2x32xf32>
    %108 = arith.divf %106, %107 : vector<2x32xf32>
    %109 = vector.extract_strided_slice %92 {offsets = [0, 64], sizes = [2, 32], strides = [1, 1]} : vector<2x96xf32> to vector<2x32xf32>
    %110 = vector.extract_strided_slice %91 {offsets = [0, 64], sizes = [2, 32], strides = [1, 1]} : vector<2x96xf32> to vector<2x32xf32>
    %111 = arith.addf %110, %20 : vector<2x32xf32>
    %112 = arith.mulf %100, %111 : vector<2x32xf32>
    %113 = arith.addf %109, %112 : vector<2x32xf32>
    %114 = math.tanh %113 : vector<2x32xf32>
    %cst_39 = arith.constant 1.000000e+00 : f32
    %115 = vector.broadcast %cst_39 : f32 to vector<2x32xf32>
    %116 = arith.subf %115, %108 : vector<2x32xf32>
    %117 = arith.mulf %116, %114 : vector<2x32xf32>
    %118 = arith.mulf %108, %88 : vector<2x32xf32>
    %119 = arith.addf %117, %118 : vector<2x32xf32>
    %c4 = arith.constant 4 : index
    %c0_40 = arith.constant 0 : index
    %120 = vector.load %arg15[%c4, %c0_40] : memref<16x32xf32, #tpu.memory_space<vmem>>, vector<2x32xf32>
    tpu.vector_store %arg15[%c4, %c0_40], %119 {strides = array<i32>} : memref<16x32xf32, #tpu.memory_space<vmem>>, vector<2x32xf32>,
    %121 = arith.truncf %119 : vector<2x32xf32> to vector<2x32xbf16>
    %cst_41 = arith.constant dense<0.000000e+00> : vector<2x96xf32>
    %122 = tpu.matmul %121, %14, %cst_41 {dimension_numbers = #tpu.dot_dimension_numbers<[1], [0], [0], [1], [0, 0, 1, 1], [], []>} : vector<2x32xbf16>, vector<32x96xbf16>, vector<2x96xf32> -> vector<2x96xf32>
    %123 = vector.extract_strided_slice %25 {offsets = [6, 0], sizes = [2, 96], strides = [1, 1]} : vector<16x96xf32> to vector<2x96xf32>
    %124 = vector.extract_strided_slice %123 {offsets = [0, 0], sizes = [2, 32], strides = [1, 1]} : vector<2x96xf32> to vector<2x32xf32>
    %125 = vector.extract_strided_slice %122 {offsets = [0, 0], sizes = [2, 32], strides = [1, 1]} : vector<2x96xf32> to vector<2x32xf32>
    %126 = arith.addf %124, %125 : vector<2x32xf32>
    %127 = arith.negf %126 : vector<2x32xf32>
    %128 = math.exp %127 : vector<2x32xf32>
    %cst_42 = arith.constant 1.000000e+00 : f32
    %129 = vector.broadcast %cst_42 : f32 to vector<2x32xf32>
    %130 = arith.addf %129, %128 : vector<2x32xf32>
    %131 = arith.divf %129, %130 : vector<2x32xf32>
    %132 = vector.extract_strided_slice %123 {offsets = [0, 32], sizes = [2, 32], strides = [1, 1]} : vector<2x96xf32> to vector<2x32xf32>
    %133 = vector.extract_strided_slice %122 {offsets = [0, 32], sizes = [2, 32], strides = [1, 1]} : vector<2x96xf32> to vector<2x32xf32>
    %134 = arith.addf %132, %133 : vector<2x32xf32>
    %135 = arith.negf %134 : vector<2x32xf32>
    %136 = math.exp %135 : vector<2x32xf32>
    %cst_43 = arith.constant 1.000000e+00 : f32
    %137 = vector.broadcast %cst_43 : f32 to vector<2x32xf32>
    %138 = arith.addf %137, %136 : vector<2x32xf32>
    %139 = arith.divf %137, %138 : vector<2x32xf32>
    %140 = vector.extract_strided_slice %123 {offsets = [0, 64], sizes = [2, 32], strides = [1, 1]} : vector<2x96xf32> to vector<2x32xf32>
    %141 = vector.extract_strided_slice %122 {offsets = [0, 64], sizes = [2, 32], strides = [1, 1]} : vector<2x96xf32> to vector<2x32xf32>
    %142 = arith.addf %141, %20 : vector<2x32xf32>
    %143 = arith.mulf %131, %142 : vector<2x32xf32>
    %144 = arith.addf %140, %143 : vector<2x32xf32>
    %145 = math.tanh %144 : vector<2x32xf32>
    %cst_44 = arith.constant 1.000000e+00 : f32
    %146 = vector.broadcast %cst_44 : f32 to vector<2x32xf32>
    %147 = arith.subf %146, %139 : vector<2x32xf32>
    %148 = arith.mulf %147, %145 : vector<2x32xf32>
    %149 = arith.mulf %139, %119 : vector<2x32xf32>
    %150 = arith.addf %148, %149 : vector<2x32xf32>
    %c6 = arith.constant 6 : index
    %c0_45 = arith.constant 0 : index
    %151 = vector.load %arg15[%c6, %c0_45] : memref<16x32xf32, #tpu.memory_space<vmem>>, vector<2x32xf32>
    tpu.vector_store %arg15[%c6, %c0_45], %150 {strides = array<i32>} : memref<16x32xf32, #tpu.memory_space<vmem>>, vector<2x32xf32>,
    %152 = arith.truncf %150 : vector<2x32xf32> to vector<2x32xbf16>
    %cst_46 = arith.constant dense<0.000000e+00> : vector<2x96xf32>
    %153 = tpu.matmul %152, %14, %cst_46 {dimension_numbers = #tpu.dot_dimension_numbers<[1], [0], [0], [1], [0, 0, 1, 1], [], []>} : vector<2x32xbf16>, vector<32x96xbf16>, vector<2x96xf32> -> vector<2x96xf32>
    %154 = vector.extract_strided_slice %25 {offsets = [8, 0], sizes = [2, 96], strides = [1, 1]} : vector<16x96xf32> to vector<2x96xf32>
    %155 = vector.extract_strided_slice %154 {offsets = [0, 0], sizes = [2, 32], strides = [1, 1]} : vector<2x96xf32> to vector<2x32xf32>
    %156 = vector.extract_strided_slice %153 {offsets = [0, 0], sizes = [2, 32], strides = [1, 1]} : vector<2x96xf32> to vector<2x32xf32>
    %157 = arith.addf %155, %156 : vector<2x32xf32>
    %158 = arith.negf %157 : vector<2x32xf32>
    %159 = math.exp %158 : vector<2x32xf32>
    %cst_47 = arith.constant 1.000000e+00 : f32
    %160 = vector.broadcast %cst_47 : f32 to vector<2x32xf32>
    %161 = arith.addf %160, %159 : vector<2x32xf32>
    %162 = arith.divf %160, %161 : vector<2x32xf32>
    %163 = vector.extract_strided_slice %154 {offsets = [0, 32], sizes = [2, 32], strides = [1, 1]} : vector<2x96xf32> to vector<2x32xf32>
    %164 = vector.extract_strided_slice %153 {offsets = [0, 32], sizes = [2, 32], strides = [1, 1]} : vector<2x96xf32> to vector<2x32xf32>
    %165 = arith.addf %163, %164 : vector<2x32xf32>
    %166 = arith.negf %165 : vector<2x32xf32>
    %167 = math.exp %166 : vector<2x32xf32>
    %cst_48 = arith.constant 1.000000e+00 : f32
    %168 = vector.broadcast %cst_48 : f32 to vector<2x32xf32>
    %169 = arith.addf %168, %167 : vector<2x32xf32>
    %170 = arith.divf %168, %169 : vector<2x32xf32>
    %171 = vector.extract_strided_slice %154 {offsets = [0, 64], sizes = [2, 32], strides = [1, 1]} : vector<2x96xf32> to vector<2x32xf32>
    %172 = vector.extract_strided_slice %153 {offsets = [0, 64], sizes = [2, 32], strides = [1, 1]} : vector<2x96xf32> to vector<2x32xf32>
    %173 = arith.addf %172, %20 : vector<2x32xf32>
    %174 = arith.mulf %162, %173 : vector<2x32xf32>
    %175 = arith.addf %171, %174 : vector<2x32xf32>
    %176 = math.tanh %175 : vector<2x32xf32>
    %cst_49 = arith.constant 1.000000e+00 : f32
    %177 = vector.broadcast %cst_49 : f32 to vector<2x32xf32>
    %178 = arith.subf %177, %170 : vector<2x32xf32>
    %179 = arith.mulf %178, %176 : vector<2x32xf32>
    %180 = arith.mulf %170, %150 : vector<2x32xf32>
    %181 = arith.addf %179, %180 : vector<2x32xf32>
    %c8 = arith.constant 8 : index
    %c0_50 = arith.constant 0 : index
    %182 = vector.load %arg15[%c8, %c0_50] : memref<16x32xf32, #tpu.memory_space<vmem>>, vector<2x32xf32>
    tpu.vector_store %arg15[%c8, %c0_50], %181 {strides = array<i32>} : memref<16x32xf32, #tpu.memory_space<vmem>>, vector<2x32xf32>,
    %183 = arith.truncf %181 : vector<2x32xf32> to vector<2x32xbf16>
    %cst_51 = arith.constant dense<0.000000e+00> : vector<2x96xf32>
    %184 = tpu.matmul %183, %14, %cst_51 {dimension_numbers = #tpu.dot_dimension_numbers<[1], [0], [0], [1], [0, 0, 1, 1], [], []>} : vector<2x32xbf16>, vector<32x96xbf16>, vector<2x96xf32> -> vector<2x96xf32>
    %185 = vector.extract_strided_slice %25 {offsets = [10, 0], sizes = [2, 96], strides = [1, 1]} : vector<16x96xf32> to vector<2x96xf32>
    %186 = vector.extract_strided_slice %185 {offsets = [0, 0], sizes = [2, 32], strides = [1, 1]} : vector<2x96xf32> to vector<2x32xf32>
    %187 = vector.extract_strided_slice %184 {offsets = [0, 0], sizes = [2, 32], strides = [1, 1]} : vector<2x96xf32> to vector<2x32xf32>
    %188 = arith.addf %186, %187 : vector<2x32xf32>
    %189 = arith.negf %188 : vector<2x32xf32>
    %190 = math.exp %189 : vector<2x32xf32>
    %cst_52 = arith.constant 1.000000e+00 : f32
    %191 = vector.broadcast %cst_52 : f32 to vector<2x32xf32>
    %192 = arith.addf %191, %190 : vector<2x32xf32>
    %193 = arith.divf %191, %192 : vector<2x32xf32>
    %194 = vector.extract_strided_slice %185 {offsets = [0, 32], sizes = [2, 32], strides = [1, 1]} : vector<2x96xf32> to vector<2x32xf32>
    %195 = vector.extract_strided_slice %184 {offsets = [0, 32], sizes = [2, 32], strides = [1, 1]} : vector<2x96xf32> to vector<2x32xf32>
    %196 = arith.addf %194, %195 : vector<2x32xf32>
    %197 = arith.negf %196 : vector<2x32xf32>
    %198 = math.exp %197 : vector<2x32xf32>
    %cst_53 = arith.constant 1.000000e+00 : f32
    %199 = vector.broadcast %cst_53 : f32 to vector<2x32xf32>
    %200 = arith.addf %199, %198 : vector<2x32xf32>
    %201 = arith.divf %199, %200 : vector<2x32xf32>
    %202 = vector.extract_strided_slice %185 {offsets = [0, 64], sizes = [2, 32], strides = [1, 1]} : vector<2x96xf32> to vector<2x32xf32>
    %203 = vector.extract_strided_slice %184 {offsets = [0, 64], sizes = [2, 32], strides = [1, 1]} : vector<2x96xf32> to vector<2x32xf32>
    %204 = arith.addf %203, %20 : vector<2x32xf32>
    %205 = arith.mulf %193, %204 : vector<2x32xf32>
    %206 = arith.addf %202, %205 : vector<2x32xf32>
    %207 = math.tanh %206 : vector<2x32xf32>
    %cst_54 = arith.constant 1.000000e+00 : f32
    %208 = vector.broadcast %cst_54 : f32 to vector<2x32xf32>
    %209 = arith.subf %208, %201 : vector<2x32xf32>
    %210 = arith.mulf %209, %207 : vector<2x32xf32>
    %211 = arith.mulf %201, %181 : vector<2x32xf32>
    %212 = arith.addf %210, %211 : vector<2x32xf32>
    %c10 = arith.constant 10 : index
    %c0_55 = arith.constant 0 : index
    %213 = vector.load %arg15[%c10, %c0_55] : memref<16x32xf32, #tpu.memory_space<vmem>>, vector<2x32xf32>
    tpu.vector_store %arg15[%c10, %c0_55], %212 {strides = array<i32>} : memref<16x32xf32, #tpu.memory_space<vmem>>, vector<2x32xf32>,
    %214 = arith.truncf %212 : vector<2x32xf32> to vector<2x32xbf16>
    %cst_56 = arith.constant dense<0.000000e+00> : vector<2x96xf32>
    %215 = tpu.matmul %214, %14, %cst_56 {dimension_numbers = #tpu.dot_dimension_numbers<[1], [0], [0], [1], [0, 0, 1, 1], [], []>} : vector<2x32xbf16>, vector<32x96xbf16>, vector<2x96xf32> -> vector<2x96xf32>
    %216 = vector.extract_strided_slice %25 {offsets = [12, 0], sizes = [2, 96], strides = [1, 1]} : vector<16x96xf32> to vector<2x96xf32>
    %217 = vector.extract_strided_slice %216 {offsets = [0, 0], sizes = [2, 32], strides = [1, 1]} : vector<2x96xf32> to vector<2x32xf32>
    %218 = vector.extract_strided_slice %215 {offsets = [0, 0], sizes = [2, 32], strides = [1, 1]} : vector<2x96xf32> to vector<2x32xf32>
    %219 = arith.addf %217, %218 : vector<2x32xf32>
    %220 = arith.negf %219 : vector<2x32xf32>
    %221 = math.exp %220 : vector<2x32xf32>
    %cst_57 = arith.constant 1.000000e+00 : f32
    %222 = vector.broadcast %cst_57 : f32 to vector<2x32xf32>
    %223 = arith.addf %222, %221 : vector<2x32xf32>
    %224 = arith.divf %222, %223 : vector<2x32xf32>
    %225 = vector.extract_strided_slice %216 {offsets = [0, 32], sizes = [2, 32], strides = [1, 1]} : vector<2x96xf32> to vector<2x32xf32>
    %226 = vector.extract_strided_slice %215 {offsets = [0, 32], sizes = [2, 32], strides = [1, 1]} : vector<2x96xf32> to vector<2x32xf32>
    %227 = arith.addf %225, %226 : vector<2x32xf32>
    %228 = arith.negf %227 : vector<2x32xf32>
    %229 = math.exp %228 : vector<2x32xf32>
    %cst_58 = arith.constant 1.000000e+00 : f32
    %230 = vector.broadcast %cst_58 : f32 to vector<2x32xf32>
    %231 = arith.addf %230, %229 : vector<2x32xf32>
    %232 = arith.divf %230, %231 : vector<2x32xf32>
    %233 = vector.extract_strided_slice %216 {offsets = [0, 64], sizes = [2, 32], strides = [1, 1]} : vector<2x96xf32> to vector<2x32xf32>
    %234 = vector.extract_strided_slice %215 {offsets = [0, 64], sizes = [2, 32], strides = [1, 1]} : vector<2x96xf32> to vector<2x32xf32>
    %235 = arith.addf %234, %20 : vector<2x32xf32>
    %236 = arith.mulf %224, %235 : vector<2x32xf32>
    %237 = arith.addf %233, %236 : vector<2x32xf32>
    %238 = math.tanh %237 : vector<2x32xf32>
    %cst_59 = arith.constant 1.000000e+00 : f32
    %239 = vector.broadcast %cst_59 : f32 to vector<2x32xf32>
    %240 = arith.subf %239, %232 : vector<2x32xf32>
    %241 = arith.mulf %240, %238 : vector<2x32xf32>
    %242 = arith.mulf %232, %212 : vector<2x32xf32>
    %243 = arith.addf %241, %242 : vector<2x32xf32>
    %c12 = arith.constant 12 : index
    %c0_60 = arith.constant 0 : index
    %244 = vector.load %arg15[%c12, %c0_60] : memref<16x32xf32, #tpu.memory_space<vmem>>, vector<2x32xf32>
    tpu.vector_store %arg15[%c12, %c0_60], %243 {strides = array<i32>} : memref<16x32xf32, #tpu.memory_space<vmem>>, vector<2x32xf32>,
    %245 = arith.truncf %243 : vector<2x32xf32> to vector<2x32xbf16>
    %cst_61 = arith.constant dense<0.000000e+00> : vector<2x96xf32>
    %246 = tpu.matmul %245, %14, %cst_61 {dimension_numbers = #tpu.dot_dimension_numbers<[1], [0], [0], [1], [0, 0, 1, 1], [], []>} : vector<2x32xbf16>, vector<32x96xbf16>, vector<2x96xf32> -> vector<2x96xf32>
    %247 = vector.extract_strided_slice %25 {offsets = [14, 0], sizes = [2, 96], strides = [1, 1]} : vector<16x96xf32> to vector<2x96xf32>
    %248 = vector.extract_strided_slice %247 {offsets = [0, 0], sizes = [2, 32], strides = [1, 1]} : vector<2x96xf32> to vector<2x32xf32>
    %249 = vector.extract_strided_slice %246 {offsets = [0, 0], sizes = [2, 32], strides = [1, 1]} : vector<2x96xf32> to vector<2x32xf32>
    %250 = arith.addf %248, %249 : vector<2x32xf32>
    %251 = arith.negf %250 : vector<2x32xf32>
    %252 = math.exp %251 : vector<2x32xf32>
    %cst_62 = arith.constant 1.000000e+00 : f32
    %253 = vector.broadcast %cst_62 : f32 to vector<2x32xf32>
    %254 = arith.addf %253, %252 : vector<2x32xf32>
    %255 = arith.divf %253, %254 : vector<2x32xf32>
    %256 = vector.extract_strided_slice %247 {offsets = [0, 32], sizes = [2, 32], strides = [1, 1]} : vector<2x96xf32> to vector<2x32xf32>
    %257 = vector.extract_strided_slice %246 {offsets = [0, 32], sizes = [2, 32], strides = [1, 1]} : vector<2x96xf32> to vector<2x32xf32>
    %258 = arith.addf %256, %257 : vector<2x32xf32>
    %259 = arith.negf %258 : vector<2x32xf32>
    %260 = math.exp %259 : vector<2x32xf32>
    %cst_63 = arith.constant 1.000000e+00 : f32
    %261 = vector.broadcast %cst_63 : f32 to vector<2x32xf32>
    %262 = arith.addf %261, %260 : vector<2x32xf32>
    %263 = arith.divf %261, %262 : vector<2x32xf32>
    %264 = vector.extract_strided_slice %247 {offsets = [0, 64], sizes = [2, 32], strides = [1, 1]} : vector<2x96xf32> to vector<2x32xf32>
    %265 = vector.extract_strided_slice %246 {offsets = [0, 64], sizes = [2, 32], strides = [1, 1]} : vector<2x96xf32> to vector<2x32xf32>
    %266 = arith.addf %265, %20 : vector<2x32xf32>
    %267 = arith.mulf %255, %266 : vector<2x32xf32>
    %268 = arith.addf %264, %267 : vector<2x32xf32>
    %269 = math.tanh %268 : vector<2x32xf32>
    %cst_64 = arith.constant 1.000000e+00 : f32
    %270 = vector.broadcast %cst_64 : f32 to vector<2x32xf32>
    %271 = arith.subf %270, %263 : vector<2x32xf32>
    %272 = arith.mulf %271, %269 : vector<2x32xf32>
    %273 = arith.mulf %263, %243 : vector<2x32xf32>
    %274 = arith.addf %272, %273 : vector<2x32xf32>
    %c14 = arith.constant 14 : index
    %c0_65 = arith.constant 0 : index
    %275 = vector.load %arg15[%c14, %c0_65] : memref<16x32xf32, #tpu.memory_space<vmem>>, vector<2x32xf32>
    tpu.vector_store %arg15[%c14, %c0_65], %274 {strides = array<i32>} : memref<16x32xf32, #tpu.memory_space<vmem>>, vector<2x32xf32>,
    %c0_66 = arith.constant 0 : index
    %c0_67 = arith.constant 0 : index
    %c0_68 = arith.constant 0 : index
    %276 = vector.load %arg14[%c0_66, %c0_67, %c0_68] : memref<2x2x32xf32, #tpu.memory_space<vmem>>, vector<1x2x32xf32>
    %277 = vector.shape_cast %276 : vector<1x2x32xf32> to vector<2x32xf32>
    %278 = vector.shape_cast %274 : vector<2x32xf32> to vector<1x2x32xf32>
    tpu.vector_store %arg14[%c0_66, %c0_67, %c0_68], %278 {strides = array<i32>} : memref<2x2x32xf32, #tpu.memory_space<vmem>>, vector<1x2x32xf32>,
    %c1 = arith.constant 1 : index
    %c0_69 = arith.constant 0 : index
    %c0_70 = arith.constant 0 : index
    %279 = vector.load %arg3[%c1, %c0_69, %c0_70] : memref<2x32x96xbf16, #tpu.memory_space<vmem>>, vector<1x32x96xbf16>
    %280 = vector.shape_cast %279 : vector<1x32x96xbf16> to vector<32x96xbf16>
    %c1_71 = arith.constant 1 : index
    %c0_72 = arith.constant 0 : index
    %c0_73 = arith.constant 0 : index
    %281 = vector.load %arg4[%c1_71, %c0_72, %c0_73] : memref<2x32x96xbf16, #tpu.memory_space<vmem>>, vector<1x32x96xbf16>
    %282 = vector.shape_cast %281 : vector<1x32x96xbf16> to vector<32x96xbf16>
    %c1_74 = arith.constant 1 : index
    %c0_75 = arith.constant 0 : index
    %c0_76 = arith.constant 0 : index
    %283 = vector.load %arg5[%c1_74, %c0_75, %c0_76] : memref<2x1x96xf32, #tpu.memory_space<vmem>>, vector<1x1x96xf32>
    %284 = vector.shape_cast %283 : vector<1x1x96xf32> to vector<1x96xf32>
    %c1_77 = arith.constant 1 : index
    %c0_78 = arith.constant 0 : index
    %c0_79 = arith.constant 0 : index
    %285 = vector.load %arg6[%c1_77, %c0_78, %c0_79] : memref<2x1x32xf32, #tpu.memory_space<vmem>>, vector<1x1x32xf32>
    %286 = vector.shape_cast %285 : vector<1x1x32xf32> to vector<1x32xf32>
    %287 = vector.shape_cast %286 : vector<1x32xf32> to vector<1x32xf32>
    %288 = vector.broadcast %287 : vector<1x32xf32> to vector<2x32xf32>
    %c0_80 = arith.constant 0 : index
    %c0_81 = arith.constant 0 : index
    %289 = vector.load %arg15[%c0_80, %c0_81] : memref<16x32xf32, #tpu.memory_space<vmem>>, vector<16x32xf32>
    %290 = arith.truncf %289 : vector<16x32xf32> to vector<16x32xbf16>
    %cst_82 = arith.constant dense<0.000000e+00> : vector<16x96xf32>
    %291 = tpu.matmul %290, %280, %cst_82 {dimension_numbers = #tpu.dot_dimension_numbers<[1], [0], [0], [1], [0, 0, 1, 1], [], []>} : vector<16x32xbf16>, vector<32x96xbf16>, vector<16x96xf32> -> vector<16x96xf32>
    %292 = vector.broadcast %284 : vector<1x96xf32> to vector<16x96xf32>
    %293 = arith.addf %291, %292 : vector<16x96xf32>
    %c1_83 = arith.constant 1 : index
    %c0_84 = arith.constant 0 : index
    %c0_85 = arith.constant 0 : index
    %294 = vector.load %arg2[%c1_83, %c0_84, %c0_85] : memref<2x2x32xf32, #tpu.memory_space<vmem>>, vector<1x2x32xf32>
    %295 = vector.shape_cast %294 : vector<1x2x32xf32> to vector<2x32xf32>
    %296 = arith.truncf %295 : vector<2x32xf32> to vector<2x32xbf16>
    %cst_86 = arith.constant dense<0.000000e+00> : vector<2x96xf32>
    %297 = tpu.matmul %296, %282, %cst_86 {dimension_numbers = #tpu.dot_dimension_numbers<[1], [0], [0], [1], [0, 0, 1, 1], [], []>} : vector<2x32xbf16>, vector<32x96xbf16>, vector<2x96xf32> -> vector<2x96xf32>
    %298 = vector.extract_strided_slice %293 {offsets = [0, 0], sizes = [2, 96], strides = [1, 1]} : vector<16x96xf32> to vector<2x96xf32>
    %299 = vector.extract_strided_slice %298 {offsets = [0, 0], sizes = [2, 32], strides = [1, 1]} : vector<2x96xf32> to vector<2x32xf32>
    %300 = vector.extract_strided_slice %297 {offsets = [0, 0], sizes = [2, 32], strides = [1, 1]} : vector<2x96xf32> to vector<2x32xf32>
    %301 = arith.addf %299, %300 : vector<2x32xf32>
    %302 = arith.negf %301 : vector<2x32xf32>
    %303 = math.exp %302 : vector<2x32xf32>
    %cst_87 = arith.constant 1.000000e+00 : f32
    %304 = vector.broadcast %cst_87 : f32 to vector<2x32xf32>
    %305 = arith.addf %304, %303 : vector<2x32xf32>
    %306 = arith.divf %304, %305 : vector<2x32xf32>
    %307 = vector.extract_strided_slice %298 {offsets = [0, 32], sizes = [2, 32], strides = [1, 1]} : vector<2x96xf32> to vector<2x32xf32>
    %308 = vector.extract_strided_slice %297 {offsets = [0, 32], sizes = [2, 32], strides = [1, 1]} : vector<2x96xf32> to vector<2x32xf32>
    %309 = arith.addf %307, %308 : vector<2x32xf32>
    %310 = arith.negf %309 : vector<2x32xf32>
    %311 = math.exp %310 : vector<2x32xf32>
    %cst_88 = arith.constant 1.000000e+00 : f32
    %312 = vector.broadcast %cst_88 : f32 to vector<2x32xf32>
    %313 = arith.addf %312, %311 : vector<2x32xf32>
    %314 = arith.divf %312, %313 : vector<2x32xf32>
    %315 = vector.extract_strided_slice %298 {offsets = [0, 64], sizes = [2, 32], strides = [1, 1]} : vector<2x96xf32> to vector<2x32xf32>
    %316 = vector.extract_strided_slice %297 {offsets = [0, 64], sizes = [2, 32], strides = [1, 1]} : vector<2x96xf32> to vector<2x32xf32>
    %317 = arith.addf %316, %288 : vector<2x32xf32>
    %318 = arith.mulf %306, %317 : vector<2x32xf32>
    %319 = arith.addf %315, %318 : vector<2x32xf32>
    %320 = math.tanh %319 : vector<2x32xf32>
    %cst_89 = arith.constant 1.000000e+00 : f32
    %321 = vector.broadcast %cst_89 : f32 to vector<2x32xf32>
    %322 = arith.subf %321, %314 : vector<2x32xf32>
    %323 = arith.mulf %322, %320 : vector<2x32xf32>
    %324 = arith.mulf %314, %295 : vector<2x32xf32>
    %325 = arith.addf %323, %324 : vector<2x32xf32>
    %326 = vector.extract_strided_slice %325 {offsets = [0, 0], sizes = [1, 32], strides = [1, 1]} : vector<2x32xf32> to vector<1x32xf32>
    %c0_90 = arith.constant 0 : index
    %c0_91 = arith.constant 0 : index
    %327 = vector.load %arg16[%c0_90, %c0_91] : memref<16x32xf32, #tpu.memory_space<vmem>>, vector<1x32xf32>
    tpu.vector_store %arg16[%c0_90, %c0_91], %326 {strides = array<i32>} : memref<16x32xf32, #tpu.memory_space<vmem>>, vector<1x32xf32>,
    %328 = vector.extract_strided_slice %325 {offsets = [1, 0], sizes = [1, 32], strides = [1, 1]} : vector<2x32xf32> to vector<1x32xf32>
    %c8_92 = arith.constant 8 : index
    %c0_93 = arith.constant 0 : index
    %329 = vector.load %arg16[%c8_92, %c0_93] : memref<16x32xf32, #tpu.memory_space<vmem>>, vector<1x32xf32>
    tpu.vector_store %arg16[%c8_92, %c0_93], %328 {strides = array<i32>} : memref<16x32xf32, #tpu.memory_space<vmem>>, vector<1x32xf32>,
    %330 = arith.truncf %325 : vector<2x32xf32> to vector<2x32xbf16>
    %cst_94 = arith.constant dense<0.000000e+00> : vector<2x96xf32>
    %331 = tpu.matmul %330, %282, %cst_94 {dimension_numbers = #tpu.dot_dimension_numbers<[1], [0], [0], [1], [0, 0, 1, 1], [], []>} : vector<2x32xbf16>, vector<32x96xbf16>, vector<2x96xf32> -> vector<2x96xf32>
    %332 = vector.extract_strided_slice %293 {offsets = [2, 0], sizes = [2, 96], strides = [1, 1]} : vector<16x96xf32> to vector<2x96xf32>
    %333 = vector.extract_strided_slice %332 {offsets = [0, 0], sizes = [2, 32], strides = [1, 1]} : vector<2x96xf32> to vector<2x32xf32>
    %334 = vector.extract_strided_slice %331 {offsets = [0, 0], sizes = [2, 32], strides = [1, 1]} : vector<2x96xf32> to vector<2x32xf32>
    %335 = arith.addf %333, %334 : vector<2x32xf32>
    %336 = arith.negf %335 : vector<2x32xf32>
    %337 = math.exp %336 : vector<2x32xf32>
    %cst_95 = arith.constant 1.000000e+00 : f32
    %338 = vector.broadcast %cst_95 : f32 to vector<2x32xf32>
    %339 = arith.addf %338, %337 : vector<2x32xf32>
    %340 = arith.divf %338, %339 : vector<2x32xf32>
    %341 = vector.extract_strided_slice %332 {offsets = [0, 32], sizes = [2, 32], strides = [1, 1]} : vector<2x96xf32> to vector<2x32xf32>
    %342 = vector.extract_strided_slice %331 {offsets = [0, 32], sizes = [2, 32], strides = [1, 1]} : vector<2x96xf32> to vector<2x32xf32>
    %343 = arith.addf %341, %342 : vector<2x32xf32>
    %344 = arith.negf %343 : vector<2x32xf32>
    %345 = math.exp %344 : vector<2x32xf32>
    %cst_96 = arith.constant 1.000000e+00 : f32
    %346 = vector.broadcast %cst_96 : f32 to vector<2x32xf32>
    %347 = arith.addf %346, %345 : vector<2x32xf32>
    %348 = arith.divf %346, %347 : vector<2x32xf32>
    %349 = vector.extract_strided_slice %332 {offsets = [0, 64], sizes = [2, 32], strides = [1, 1]} : vector<2x96xf32> to vector<2x32xf32>
    %350 = vector.extract_strided_slice %331 {offsets = [0, 64], sizes = [2, 32], strides = [1, 1]} : vector<2x96xf32> to vector<2x32xf32>
    %351 = arith.addf %350, %288 : vector<2x32xf32>
    %352 = arith.mulf %340, %351 : vector<2x32xf32>
    %353 = arith.addf %349, %352 : vector<2x32xf32>
    %354 = math.tanh %353 : vector<2x32xf32>
    %cst_97 = arith.constant 1.000000e+00 : f32
    %355 = vector.broadcast %cst_97 : f32 to vector<2x32xf32>
    %356 = arith.subf %355, %348 : vector<2x32xf32>
    %357 = arith.mulf %356, %354 : vector<2x32xf32>
    %358 = arith.mulf %348, %325 : vector<2x32xf32>
    %359 = arith.addf %357, %358 : vector<2x32xf32>
    %360 = vector.extract_strided_slice %359 {offsets = [0, 0], sizes = [1, 32], strides = [1, 1]} : vector<2x32xf32> to vector<1x32xf32>
    %c1_98 = arith.constant 1 : index
    %c0_99 = arith.constant 0 : index
    %361 = vector.load %arg16[%c1_98, %c0_99] : memref<16x32xf32, #tpu.memory_space<vmem>>, vector<1x32xf32>
    tpu.vector_store %arg16[%c1_98, %c0_99], %360 {strides = array<i32>} : memref<16x32xf32, #tpu.memory_space<vmem>>, vector<1x32xf32>,
    %362 = vector.extract_strided_slice %359 {offsets = [1, 0], sizes = [1, 32], strides = [1, 1]} : vector<2x32xf32> to vector<1x32xf32>
    %c9 = arith.constant 9 : index
    %c0_100 = arith.constant 0 : index
    %363 = vector.load %arg16[%c9, %c0_100] : memref<16x32xf32, #tpu.memory_space<vmem>>, vector<1x32xf32>
    tpu.vector_store %arg16[%c9, %c0_100], %362 {strides = array<i32>} : memref<16x32xf32, #tpu.memory_space<vmem>>, vector<1x32xf32>,
    %364 = arith.truncf %359 : vector<2x32xf32> to vector<2x32xbf16>
    %cst_101 = arith.constant dense<0.000000e+00> : vector<2x96xf32>
    %365 = tpu.matmul %364, %282, %cst_101 {dimension_numbers = #tpu.dot_dimension_numbers<[1], [0], [0], [1], [0, 0, 1, 1], [], []>} : vector<2x32xbf16>, vector<32x96xbf16>, vector<2x96xf32> -> vector<2x96xf32>
    %366 = vector.extract_strided_slice %293 {offsets = [4, 0], sizes = [2, 96], strides = [1, 1]} : vector<16x96xf32> to vector<2x96xf32>
    %367 = vector.extract_strided_slice %366 {offsets = [0, 0], sizes = [2, 32], strides = [1, 1]} : vector<2x96xf32> to vector<2x32xf32>
    %368 = vector.extract_strided_slice %365 {offsets = [0, 0], sizes = [2, 32], strides = [1, 1]} : vector<2x96xf32> to vector<2x32xf32>
    %369 = arith.addf %367, %368 : vector<2x32xf32>
    %370 = arith.negf %369 : vector<2x32xf32>
    %371 = math.exp %370 : vector<2x32xf32>
    %cst_102 = arith.constant 1.000000e+00 : f32
    %372 = vector.broadcast %cst_102 : f32 to vector<2x32xf32>
    %373 = arith.addf %372, %371 : vector<2x32xf32>
    %374 = arith.divf %372, %373 : vector<2x32xf32>
    %375 = vector.extract_strided_slice %366 {offsets = [0, 32], sizes = [2, 32], strides = [1, 1]} : vector<2x96xf32> to vector<2x32xf32>
    %376 = vector.extract_strided_slice %365 {offsets = [0, 32], sizes = [2, 32], strides = [1, 1]} : vector<2x96xf32> to vector<2x32xf32>
    %377 = arith.addf %375, %376 : vector<2x32xf32>
    %378 = arith.negf %377 : vector<2x32xf32>
    %379 = math.exp %378 : vector<2x32xf32>
    %cst_103 = arith.constant 1.000000e+00 : f32
    %380 = vector.broadcast %cst_103 : f32 to vector<2x32xf32>
    %381 = arith.addf %380, %379 : vector<2x32xf32>
    %382 = arith.divf %380, %381 : vector<2x32xf32>
    %383 = vector.extract_strided_slice %366 {offsets = [0, 64], sizes = [2, 32], strides = [1, 1]} : vector<2x96xf32> to vector<2x32xf32>
    %384 = vector.extract_strided_slice %365 {offsets = [0, 64], sizes = [2, 32], strides = [1, 1]} : vector<2x96xf32> to vector<2x32xf32>
    %385 = arith.addf %384, %288 : vector<2x32xf32>
    %386 = arith.mulf %374, %385 : vector<2x32xf32>
    %387 = arith.addf %383, %386 : vector<2x32xf32>
    %388 = math.tanh %387 : vector<2x32xf32>
    %cst_104 = arith.constant 1.000000e+00 : f32
    %389 = vector.broadcast %cst_104 : f32 to vector<2x32xf32>
    %390 = arith.subf %389, %382 : vector<2x32xf32>
    %391 = arith.mulf %390, %388 : vector<2x32xf32>
    %392 = arith.mulf %382, %359 : vector<2x32xf32>
    %393 = arith.addf %391, %392 : vector<2x32xf32>
    %394 = vector.extract_strided_slice %393 {offsets = [0, 0], sizes = [1, 32], strides = [1, 1]} : vector<2x32xf32> to vector<1x32xf32>
    %c2_105 = arith.constant 2 : index
    %c0_106 = arith.constant 0 : index
    %395 = vector.load %arg16[%c2_105, %c0_106] : memref<16x32xf32, #tpu.memory_space<vmem>>, vector<1x32xf32>
    tpu.vector_store %arg16[%c2_105, %c0_106], %394 {strides = array<i32>} : memref<16x32xf32, #tpu.memory_space<vmem>>, vector<1x32xf32>,
    %396 = vector.extract_strided_slice %393 {offsets = [1, 0], sizes = [1, 32], strides = [1, 1]} : vector<2x32xf32> to vector<1x32xf32>
    %c10_107 = arith.constant 10 : index
    %c0_108 = arith.constant 0 : index
    %397 = vector.load %arg16[%c10_107, %c0_108] : memref<16x32xf32, #tpu.memory_space<vmem>>, vector<1x32xf32>
    tpu.vector_store %arg16[%c10_107, %c0_108], %396 {strides = array<i32>} : memref<16x32xf32, #tpu.memory_space<vmem>>, vector<1x32xf32>,
    %398 = arith.truncf %393 : vector<2x32xf32> to vector<2x32xbf16>
    %cst_109 = arith.constant dense<0.000000e+00> : vector<2x96xf32>
    %399 = tpu.matmul %398, %282, %cst_109 {dimension_numbers = #tpu.dot_dimension_numbers<[1], [0], [0], [1], [0, 0, 1, 1], [], []>} : vector<2x32xbf16>, vector<32x96xbf16>, vector<2x96xf32> -> vector<2x96xf32>
    %400 = vector.extract_strided_slice %293 {offsets = [6, 0], sizes = [2, 96], strides = [1, 1]} : vector<16x96xf32> to vector<2x96xf32>
    %401 = vector.extract_strided_slice %400 {offsets = [0, 0], sizes = [2, 32], strides = [1, 1]} : vector<2x96xf32> to vector<2x32xf32>
    %402 = vector.extract_strided_slice %399 {offsets = [0, 0], sizes = [2, 32], strides = [1, 1]} : vector<2x96xf32> to vector<2x32xf32>
    %403 = arith.addf %401, %402 : vector<2x32xf32>
    %404 = arith.negf %403 : vector<2x32xf32>
    %405 = math.exp %404 : vector<2x32xf32>
    %cst_110 = arith.constant 1.000000e+00 : f32
    %406 = vector.broadcast %cst_110 : f32 to vector<2x32xf32>
    %407 = arith.addf %406, %405 : vector<2x32xf32>
    %408 = arith.divf %406, %407 : vector<2x32xf32>
    %409 = vector.extract_strided_slice %400 {offsets = [0, 32], sizes = [2, 32], strides = [1, 1]} : vector<2x96xf32> to vector<2x32xf32>
    %410 = vector.extract_strided_slice %399 {offsets = [0, 32], sizes = [2, 32], strides = [1, 1]} : vector<2x96xf32> to vector<2x32xf32>
    %411 = arith.addf %409, %410 : vector<2x32xf32>
    %412 = arith.negf %411 : vector<2x32xf32>
    %413 = math.exp %412 : vector<2x32xf32>
    %cst_111 = arith.constant 1.000000e+00 : f32
    %414 = vector.broadcast %cst_111 : f32 to vector<2x32xf32>
    %415 = arith.addf %414, %413 : vector<2x32xf32>
    %416 = arith.divf %414, %415 : vector<2x32xf32>
    %417 = vector.extract_strided_slice %400 {offsets = [0, 64], sizes = [2, 32], strides = [1, 1]} : vector<2x96xf32> to vector<2x32xf32>
    %418 = vector.extract_strided_slice %399 {offsets = [0, 64], sizes = [2, 32], strides = [1, 1]} : vector<2x96xf32> to vector<2x32xf32>
    %419 = arith.addf %418, %288 : vector<2x32xf32>
    %420 = arith.mulf %408, %419 : vector<2x32xf32>
    %421 = arith.addf %417, %420 : vector<2x32xf32>
    %422 = math.tanh %421 : vector<2x32xf32>
    %cst_112 = arith.constant 1.000000e+00 : f32
    %423 = vector.broadcast %cst_112 : f32 to vector<2x32xf32>
    %424 = arith.subf %423, %416 : vector<2x32xf32>
    %425 = arith.mulf %424, %422 : vector<2x32xf32>
    %426 = arith.mulf %416, %393 : vector<2x32xf32>
    %427 = arith.addf %425, %426 : vector<2x32xf32>
    %428 = vector.extract_strided_slice %427 {offsets = [0, 0], sizes = [1, 32], strides = [1, 1]} : vector<2x32xf32> to vector<1x32xf32>
    %c3 = arith.constant 3 : index
    %c0_113 = arith.constant 0 : index
    %429 = vector.load %arg16[%c3, %c0_113] : memref<16x32xf32, #tpu.memory_space<vmem>>, vector<1x32xf32>
    tpu.vector_store %arg16[%c3, %c0_113], %428 {strides = array<i32>} : memref<16x32xf32, #tpu.memory_space<vmem>>, vector<1x32xf32>,
    %430 = vector.extract_strided_slice %427 {offsets = [1, 0], sizes = [1, 32], strides = [1, 1]} : vector<2x32xf32> to vector<1x32xf32>
    %c11 = arith.constant 11 : index
    %c0_114 = arith.constant 0 : index
    %431 = vector.load %arg16[%c11, %c0_114] : memref<16x32xf32, #tpu.memory_space<vmem>>, vector<1x32xf32>
    tpu.vector_store %arg16[%c11, %c0_114], %430 {strides = array<i32>} : memref<16x32xf32, #tpu.memory_space<vmem>>, vector<1x32xf32>,
    %432 = arith.truncf %427 : vector<2x32xf32> to vector<2x32xbf16>
    %cst_115 = arith.constant dense<0.000000e+00> : vector<2x96xf32>
    %433 = tpu.matmul %432, %282, %cst_115 {dimension_numbers = #tpu.dot_dimension_numbers<[1], [0], [0], [1], [0, 0, 1, 1], [], []>} : vector<2x32xbf16>, vector<32x96xbf16>, vector<2x96xf32> -> vector<2x96xf32>
    %434 = vector.extract_strided_slice %293 {offsets = [8, 0], sizes = [2, 96], strides = [1, 1]} : vector<16x96xf32> to vector<2x96xf32>
    %435 = vector.extract_strided_slice %434 {offsets = [0, 0], sizes = [2, 32], strides = [1, 1]} : vector<2x96xf32> to vector<2x32xf32>
    %436 = vector.extract_strided_slice %433 {offsets = [0, 0], sizes = [2, 32], strides = [1, 1]} : vector<2x96xf32> to vector<2x32xf32>
    %437 = arith.addf %435, %436 : vector<2x32xf32>
    %438 = arith.negf %437 : vector<2x32xf32>
    %439 = math.exp %438 : vector<2x32xf32>
    %cst_116 = arith.constant 1.000000e+00 : f32
    %440 = vector.broadcast %cst_116 : f32 to vector<2x32xf32>
    %441 = arith.addf %440, %439 : vector<2x32xf32>
    %442 = arith.divf %440, %441 : vector<2x32xf32>
    %443 = vector.extract_strided_slice %434 {offsets = [0, 32], sizes = [2, 32], strides = [1, 1]} : vector<2x96xf32> to vector<2x32xf32>
    %444 = vector.extract_strided_slice %433 {offsets = [0, 32], sizes = [2, 32], strides = [1, 1]} : vector<2x96xf32> to vector<2x32xf32>
    %445 = arith.addf %443, %444 : vector<2x32xf32>
    %446 = arith.negf %445 : vector<2x32xf32>
    %447 = math.exp %446 : vector<2x32xf32>
    %cst_117 = arith.constant 1.000000e+00 : f32
    %448 = vector.broadcast %cst_117 : f32 to vector<2x32xf32>
    %449 = arith.addf %448, %447 : vector<2x32xf32>
    %450 = arith.divf %448, %449 : vector<2x32xf32>
    %451 = vector.extract_strided_slice %434 {offsets = [0, 64], sizes = [2, 32], strides = [1, 1]} : vector<2x96xf32> to vector<2x32xf32>
    %452 = vector.extract_strided_slice %433 {offsets = [0, 64], sizes = [2, 32], strides = [1, 1]} : vector<2x96xf32> to vector<2x32xf32>
    %453 = arith.addf %452, %288 : vector<2x32xf32>
    %454 = arith.mulf %442, %453 : vector<2x32xf32>
    %455 = arith.addf %451, %454 : vector<2x32xf32>
    %456 = math.tanh %455 : vector<2x32xf32>
    %cst_118 = arith.constant 1.000000e+00 : f32
    %457 = vector.broadcast %cst_118 : f32 to vector<2x32xf32>
    %458 = arith.subf %457, %450 : vector<2x32xf32>
    %459 = arith.mulf %458, %456 : vector<2x32xf32>
    %460 = arith.mulf %450, %427 : vector<2x32xf32>
    %461 = arith.addf %459, %460 : vector<2x32xf32>
    %462 = vector.extract_strided_slice %461 {offsets = [0, 0], sizes = [1, 32], strides = [1, 1]} : vector<2x32xf32> to vector<1x32xf32>
    %c4_119 = arith.constant 4 : index
    %c0_120 = arith.constant 0 : index
    %463 = vector.load %arg16[%c4_119, %c0_120] : memref<16x32xf32, #tpu.memory_space<vmem>>, vector<1x32xf32>
    tpu.vector_store %arg16[%c4_119, %c0_120], %462 {strides = array<i32>} : memref<16x32xf32, #tpu.memory_space<vmem>>, vector<1x32xf32>,
    %464 = vector.extract_strided_slice %461 {offsets = [1, 0], sizes = [1, 32], strides = [1, 1]} : vector<2x32xf32> to vector<1x32xf32>
    %c12_121 = arith.constant 12 : index
    %c0_122 = arith.constant 0 : index
    %465 = vector.load %arg16[%c12_121, %c0_122] : memref<16x32xf32, #tpu.memory_space<vmem>>, vector<1x32xf32>
    tpu.vector_store %arg16[%c12_121, %c0_122], %464 {strides = array<i32>} : memref<16x32xf32, #tpu.memory_space<vmem>>, vector<1x32xf32>,
    %466 = arith.truncf %461 : vector<2x32xf32> to vector<2x32xbf16>
    %cst_123 = arith.constant dense<0.000000e+00> : vector<2x96xf32>
    %467 = tpu.matmul %466, %282, %cst_123 {dimension_numbers = #tpu.dot_dimension_numbers<[1], [0], [0], [1], [0, 0, 1, 1], [], []>} : vector<2x32xbf16>, vector<32x96xbf16>, vector<2x96xf32> -> vector<2x96xf32>
    %468 = vector.extract_strided_slice %293 {offsets = [10, 0], sizes = [2, 96], strides = [1, 1]} : vector<16x96xf32> to vector<2x96xf32>
    %469 = vector.extract_strided_slice %468 {offsets = [0, 0], sizes = [2, 32], strides = [1, 1]} : vector<2x96xf32> to vector<2x32xf32>
    %470 = vector.extract_strided_slice %467 {offsets = [0, 0], sizes = [2, 32], strides = [1, 1]} : vector<2x96xf32> to vector<2x32xf32>
    %471 = arith.addf %469, %470 : vector<2x32xf32>
    %472 = arith.negf %471 : vector<2x32xf32>
    %473 = math.exp %472 : vector<2x32xf32>
    %cst_124 = arith.constant 1.000000e+00 : f32
    %474 = vector.broadcast %cst_124 : f32 to vector<2x32xf32>
    %475 = arith.addf %474, %473 : vector<2x32xf32>
    %476 = arith.divf %474, %475 : vector<2x32xf32>
    %477 = vector.extract_strided_slice %468 {offsets = [0, 32], sizes = [2, 32], strides = [1, 1]} : vector<2x96xf32> to vector<2x32xf32>
    %478 = vector.extract_strided_slice %467 {offsets = [0, 32], sizes = [2, 32], strides = [1, 1]} : vector<2x96xf32> to vector<2x32xf32>
    %479 = arith.addf %477, %478 : vector<2x32xf32>
    %480 = arith.negf %479 : vector<2x32xf32>
    %481 = math.exp %480 : vector<2x32xf32>
    %cst_125 = arith.constant 1.000000e+00 : f32
    %482 = vector.broadcast %cst_125 : f32 to vector<2x32xf32>
    %483 = arith.addf %482, %481 : vector<2x32xf32>
    %484 = arith.divf %482, %483 : vector<2x32xf32>
    %485 = vector.extract_strided_slice %468 {offsets = [0, 64], sizes = [2, 32], strides = [1, 1]} : vector<2x96xf32> to vector<2x32xf32>
    %486 = vector.extract_strided_slice %467 {offsets = [0, 64], sizes = [2, 32], strides = [1, 1]} : vector<2x96xf32> to vector<2x32xf32>
    %487 = arith.addf %486, %288 : vector<2x32xf32>
    %488 = arith.mulf %476, %487 : vector<2x32xf32>
    %489 = arith.addf %485, %488 : vector<2x32xf32>
    %490 = math.tanh %489 : vector<2x32xf32>
    %cst_126 = arith.constant 1.000000e+00 : f32
    %491 = vector.broadcast %cst_126 : f32 to vector<2x32xf32>
    %492 = arith.subf %491, %484 : vector<2x32xf32>
    %493 = arith.mulf %492, %490 : vector<2x32xf32>
    %494 = arith.mulf %484, %461 : vector<2x32xf32>
    %495 = arith.addf %493, %494 : vector<2x32xf32>
    %496 = vector.extract_strided_slice %495 {offsets = [0, 0], sizes = [1, 32], strides = [1, 1]} : vector<2x32xf32> to vector<1x32xf32>
    %c5 = arith.constant 5 : index
    %c0_127 = arith.constant 0 : index
    %497 = vector.load %arg16[%c5, %c0_127] : memref<16x32xf32, #tpu.memory_space<vmem>>, vector<1x32xf32>
    tpu.vector_store %arg16[%c5, %c0_127], %496 {strides = array<i32>} : memref<16x32xf32, #tpu.memory_space<vmem>>, vector<1x32xf32>,
    %498 = vector.extract_strided_slice %495 {offsets = [1, 0], sizes = [1, 32], strides = [1, 1]} : vector<2x32xf32> to vector<1x32xf32>
    %c13 = arith.constant 13 : index
    %c0_128 = arith.constant 0 : index
    %499 = vector.load %arg16[%c13, %c0_128] : memref<16x32xf32, #tpu.memory_space<vmem>>, vector<1x32xf32>
    tpu.vector_store %arg16[%c13, %c0_128], %498 {strides = array<i32>} : memref<16x32xf32, #tpu.memory_space<vmem>>, vector<1x32xf32>,
    %500 = arith.truncf %495 : vector<2x32xf32> to vector<2x32xbf16>
    %cst_129 = arith.constant dense<0.000000e+00> : vector<2x96xf32>
    %501 = tpu.matmul %500, %282, %cst_129 {dimension_numbers = #tpu.dot_dimension_numbers<[1], [0], [0], [1], [0, 0, 1, 1], [], []>} : vector<2x32xbf16>, vector<32x96xbf16>, vector<2x96xf32> -> vector<2x96xf32>
    %502 = vector.extract_strided_slice %293 {offsets = [12, 0], sizes = [2, 96], strides = [1, 1]} : vector<16x96xf32> to vector<2x96xf32>
    %503 = vector.extract_strided_slice %502 {offsets = [0, 0], sizes = [2, 32], strides = [1, 1]} : vector<2x96xf32> to vector<2x32xf32>
    %504 = vector.extract_strided_slice %501 {offsets = [0, 0], sizes = [2, 32], strides = [1, 1]} : vector<2x96xf32> to vector<2x32xf32>
    %505 = arith.addf %503, %504 : vector<2x32xf32>
    %506 = arith.negf %505 : vector<2x32xf32>
    %507 = math.exp %506 : vector<2x32xf32>
    %cst_130 = arith.constant 1.000000e+00 : f32
    %508 = vector.broadcast %cst_130 : f32 to vector<2x32xf32>
    %509 = arith.addf %508, %507 : vector<2x32xf32>
    %510 = arith.divf %508, %509 : vector<2x32xf32>
    %511 = vector.extract_strided_slice %502 {offsets = [0, 32], sizes = [2, 32], strides = [1, 1]} : vector<2x96xf32> to vector<2x32xf32>
    %512 = vector.extract_strided_slice %501 {offsets = [0, 32], sizes = [2, 32], strides = [1, 1]} : vector<2x96xf32> to vector<2x32xf32>
    %513 = arith.addf %511, %512 : vector<2x32xf32>
    %514 = arith.negf %513 : vector<2x32xf32>
    %515 = math.exp %514 : vector<2x32xf32>
    %cst_131 = arith.constant 1.000000e+00 : f32
    %516 = vector.broadcast %cst_131 : f32 to vector<2x32xf32>
    %517 = arith.addf %516, %515 : vector<2x32xf32>
    %518 = arith.divf %516, %517 : vector<2x32xf32>
    %519 = vector.extract_strided_slice %502 {offsets = [0, 64], sizes = [2, 32], strides = [1, 1]} : vector<2x96xf32> to vector<2x32xf32>
    %520 = vector.extract_strided_slice %501 {offsets = [0, 64], sizes = [2, 32], strides = [1, 1]} : vector<2x96xf32> to vector<2x32xf32>
    %521 = arith.addf %520, %288 : vector<2x32xf32>
    %522 = arith.mulf %510, %521 : vector<2x32xf32>
    %523 = arith.addf %519, %522 : vector<2x32xf32>
    %524 = math.tanh %523 : vector<2x32xf32>
    %cst_132 = arith.constant 1.000000e+00 : f32
    %525 = vector.broadcast %cst_132 : f32 to vector<2x32xf32>
    %526 = arith.subf %525, %518 : vector<2x32xf32>
    %527 = arith.mulf %526, %524 : vector<2x32xf32>
    %528 = arith.mulf %518, %495 : vector<2x32xf32>
    %529 = arith.addf %527, %528 : vector<2x32xf32>
    %530 = vector.extract_strided_slice %529 {offsets = [0, 0], sizes = [1, 32], strides = [1, 1]} : vector<2x32xf32> to vector<1x32xf32>
    %c6_133 = arith.constant 6 : index
    %c0_134 = arith.constant 0 : index
    %531 = vector.load %arg16[%c6_133, %c0_134] : memref<16x32xf32, #tpu.memory_space<vmem>>, vector<1x32xf32>
    tpu.vector_store %arg16[%c6_133, %c0_134], %530 {strides = array<i32>} : memref<16x32xf32, #tpu.memory_space<vmem>>, vector<1x32xf32>,
    %532 = vector.extract_strided_slice %529 {offsets = [1, 0], sizes = [1, 32], strides = [1, 1]} : vector<2x32xf32> to vector<1x32xf32>
    %c14_135 = arith.constant 14 : index
    %c0_136 = arith.constant 0 : index
    %533 = vector.load %arg16[%c14_135, %c0_136] : memref<16x32xf32, #tpu.memory_space<vmem>>, vector<1x32xf32>
    tpu.vector_store %arg16[%c14_135, %c0_136], %532 {strides = array<i32>} : memref<16x32xf32, #tpu.memory_space<vmem>>, vector<1x32xf32>,
    %534 = arith.truncf %529 : vector<2x32xf32> to vector<2x32xbf16>
    %cst_137 = arith.constant dense<0.000000e+00> : vector<2x96xf32>
    %535 = tpu.matmul %534, %282, %cst_137 {dimension_numbers = #tpu.dot_dimension_numbers<[1], [0], [0], [1], [0, 0, 1, 1], [], []>} : vector<2x32xbf16>, vector<32x96xbf16>, vector<2x96xf32> -> vector<2x96xf32>
    %536 = vector.extract_strided_slice %293 {offsets = [14, 0], sizes = [2, 96], strides = [1, 1]} : vector<16x96xf32> to vector<2x96xf32>
    %537 = vector.extract_strided_slice %536 {offsets = [0, 0], sizes = [2, 32], strides = [1, 1]} : vector<2x96xf32> to vector<2x32xf32>
    %538 = vector.extract_strided_slice %535 {offsets = [0, 0], sizes = [2, 32], strides = [1, 1]} : vector<2x96xf32> to vector<2x32xf32>
    %539 = arith.addf %537, %538 : vector<2x32xf32>
    %540 = arith.negf %539 : vector<2x32xf32>
    %541 = math.exp %540 : vector<2x32xf32>
    %cst_138 = arith.constant 1.000000e+00 : f32
    %542 = vector.broadcast %cst_138 : f32 to vector<2x32xf32>
    %543 = arith.addf %542, %541 : vector<2x32xf32>
    %544 = arith.divf %542, %543 : vector<2x32xf32>
    %545 = vector.extract_strided_slice %536 {offsets = [0, 32], sizes = [2, 32], strides = [1, 1]} : vector<2x96xf32> to vector<2x32xf32>
    %546 = vector.extract_strided_slice %535 {offsets = [0, 32], sizes = [2, 32], strides = [1, 1]} : vector<2x96xf32> to vector<2x32xf32>
    %547 = arith.addf %545, %546 : vector<2x32xf32>
    %548 = arith.negf %547 : vector<2x32xf32>
    %549 = math.exp %548 : vector<2x32xf32>
    %cst_139 = arith.constant 1.000000e+00 : f32
    %550 = vector.broadcast %cst_139 : f32 to vector<2x32xf32>
    %551 = arith.addf %550, %549 : vector<2x32xf32>
    %552 = arith.divf %550, %551 : vector<2x32xf32>
    %553 = vector.extract_strided_slice %536 {offsets = [0, 64], sizes = [2, 32], strides = [1, 1]} : vector<2x96xf32> to vector<2x32xf32>
    %554 = vector.extract_strided_slice %535 {offsets = [0, 64], sizes = [2, 32], strides = [1, 1]} : vector<2x96xf32> to vector<2x32xf32>
    %555 = arith.addf %554, %288 : vector<2x32xf32>
    %556 = arith.mulf %544, %555 : vector<2x32xf32>
    %557 = arith.addf %553, %556 : vector<2x32xf32>
    %558 = math.tanh %557 : vector<2x32xf32>
    %cst_140 = arith.constant 1.000000e+00 : f32
    %559 = vector.broadcast %cst_140 : f32 to vector<2x32xf32>
    %560 = arith.subf %559, %552 : vector<2x32xf32>
    %561 = arith.mulf %560, %558 : vector<2x32xf32>
    %562 = arith.mulf %552, %529 : vector<2x32xf32>
    %563 = arith.addf %561, %562 : vector<2x32xf32>
    %564 = vector.extract_strided_slice %563 {offsets = [0, 0], sizes = [1, 32], strides = [1, 1]} : vector<2x32xf32> to vector<1x32xf32>
    %c7 = arith.constant 7 : index
    %c0_141 = arith.constant 0 : index
    %565 = vector.load %arg16[%c7, %c0_141] : memref<16x32xf32, #tpu.memory_space<vmem>>, vector<1x32xf32>
    tpu.vector_store %arg16[%c7, %c0_141], %564 {strides = array<i32>} : memref<16x32xf32, #tpu.memory_space<vmem>>, vector<1x32xf32>,
    %566 = vector.extract_strided_slice %563 {offsets = [1, 0], sizes = [1, 32], strides = [1, 1]} : vector<2x32xf32> to vector<1x32xf32>
    %c15 = arith.constant 15 : index
    %c0_142 = arith.constant 0 : index
    %567 = vector.load %arg16[%c15, %c0_142] : memref<16x32xf32, #tpu.memory_space<vmem>>, vector<1x32xf32>
    tpu.vector_store %arg16[%c15, %c0_142], %566 {strides = array<i32>} : memref<16x32xf32, #tpu.memory_space<vmem>>, vector<1x32xf32>,
    %c1_143 = arith.constant 1 : index
    %c0_144 = arith.constant 0 : index
    %c0_145 = arith.constant 0 : index
    %568 = vector.load %arg14[%c1_143, %c0_144, %c0_145] : memref<2x2x32xf32, #tpu.memory_space<vmem>>, vector<1x2x32xf32>
    %569 = vector.shape_cast %568 : vector<1x2x32xf32> to vector<2x32xf32>
    %570 = vector.shape_cast %563 : vector<2x32xf32> to vector<1x2x32xf32>
    tpu.vector_store %arg14[%c1_143, %c0_144, %c0_145], %570 {strides = array<i32>} : memref<2x2x32xf32, #tpu.memory_space<vmem>>, vector<1x2x32xf32>,
    %c0_146 = arith.constant 0 : index
    %c0_147 = arith.constant 0 : index
    %c0_148 = arith.constant 0 : index
    %571 = vector.load %arg7[%c0_146, %c0_147, %c0_148] : memref<2x8x32xf32, #tpu.memory_space<vmem>>, vector<2x8x32xf32>
    %c0_149 = arith.constant 0 : index
    %c0_150 = arith.constant 0 : index
    %572 = vector.load %arg8[%c0_149, %c0_150] : memref<32x32xbf16, #tpu.memory_space<vmem>>, vector<32x32xbf16>
    %c0_151 = arith.constant 0 : index
    %c0_152 = arith.constant 0 : index
    %573 = vector.load %arg9[%c0_151, %c0_152] : memref<32x32xbf16, #tpu.memory_space<vmem>>, vector<32x32xbf16>
    %c0_153 = arith.constant 0 : index
    %c0_154 = arith.constant 0 : index
    %574 = vector.load %arg10[%c0_153, %c0_154] : memref<1x32xf32, #tpu.memory_space<vmem>>, vector<1x32xf32>
    %c0_155 = arith.constant 0 : index
    %c0_156 = arith.constant 0 : index
    %575 = vector.load %arg11[%c0_155, %c0_156] : memref<32x128xbf16, #tpu.memory_space<vmem>>, vector<32x128xbf16>
    %c0_157 = arith.constant 0 : index
    %c0_158 = arith.constant 0 : index
    %576 = vector.load %arg12[%c0_157, %c0_158] : memref<1x128xf32, #tpu.memory_space<vmem>>, vector<1x128xf32>
    %c0_159 = arith.constant 0 : index
    %c0_160 = arith.constant 0 : index
    %577 = vector.load %arg16[%c0_159, %c0_160] : memref<16x32xf32, #tpu.memory_space<vmem>>, vector<8x32xf32>
    %578 = arith.truncf %577 : vector<8x32xf32> to vector<8x32xbf16>
    %579 = vector.extract_strided_slice %571 {offsets = [0, 0, 0], sizes = [1, 8, 32], strides = [1, 1, 1]} : vector<2x8x32xf32> to vector<1x8x32xf32>
    %580 = vector.shape_cast %579 : vector<1x8x32xf32> to vector<8x32xf32>
    %581 = arith.truncf %580 : vector<8x32xf32> to vector<8x32xbf16>
    %cst_161 = arith.constant dense<0.000000e+00> : vector<8x8xf32>
    %582 = tpu.matmul %578, %581, %cst_161 {dimension_numbers = #tpu.dot_dimension_numbers<[1], [1], [0], [0], [0, 0, 1, 0], [], []>} : vector<8x32xbf16>, vector<8x32xbf16>, vector<8x8xf32> -> vector<8x8xf32>
    %cst_162 = arith.constant dense<0xFF800000> : vector<8xf32>
    %583 = vector.multi_reduction <maximumf>, %582, %cst_162 [1] : vector<8x8xf32> to vector<8xf32>
    %584 = vector.shape_cast %583 : vector<8xf32> to vector<8x1xf32>
    %585 = vector.broadcast %584 : vector<8x1xf32> to vector<8x8xf32>
    %586 = arith.subf %582, %585 : vector<8x8xf32>
    %587 = math.exp %586 : vector<8x8xf32>
    %cst_163 = arith.constant dense<0.000000e+00> : vector<8xf32>
    %588 = vector.multi_reduction <add>, %587, %cst_163 [1] : vector<8x8xf32> to vector<8xf32>
    %589 = vector.shape_cast %588 : vector<8xf32> to vector<8x1xf32>
    %590 = tpu.reciprocal %589 {approx = true} : vector<8x1xf32> -> vector<8x1xf32>
    %591 = vector.broadcast %590 : vector<8x1xf32> to vector<8x8xf32>
    %592 = arith.mulf %587, %591 : vector<8x8xf32>
    %593 = arith.truncf %592 : vector<8x8xf32> to vector<8x8xbf16>
    %cst_164 = arith.constant dense<0.000000e+00> : vector<8x32xf32>
    %594 = tpu.matmul %593, %581, %cst_164 {dimension_numbers = #tpu.dot_dimension_numbers<[1], [0], [0], [1], [0, 0, 1, 1], [], []>} : vector<8x8xbf16>, vector<8x32xbf16>, vector<8x32xf32> -> vector<8x32xf32>
    %cst_165 = arith.constant dense<0.000000e+00> : vector<8x32xf32>
    %595 = tpu.matmul %578, %572, %cst_165 {dimension_numbers = #tpu.dot_dimension_numbers<[1], [0], [0], [1], [0, 0, 1, 1], [], []>} : vector<8x32xbf16>, vector<32x32xbf16>, vector<8x32xf32> -> vector<8x32xf32>
    %596 = arith.truncf %594 : vector<8x32xf32> to vector<8x32xbf16>
    %cst_166 = arith.constant dense<0.000000e+00> : vector<8x32xf32>
    %597 = tpu.matmul %596, %573, %cst_166 {dimension_numbers = #tpu.dot_dimension_numbers<[1], [0], [0], [1], [0, 0, 1, 1], [], []>} : vector<8x32xbf16>, vector<32x32xbf16>, vector<8x32xf32> -> vector<8x32xf32>
    %598 = arith.addf %595, %597 : vector<8x32xf32>
    %599 = vector.broadcast %574 : vector<1x32xf32> to vector<8x32xf32>
    %600 = arith.addf %598, %599 : vector<8x32xf32>
    %601 = math.tanh %600 : vector<8x32xf32>
    %602 = arith.truncf %601 : vector<8x32xf32> to vector<8x32xbf16>
    %cst_167 = arith.constant dense<0.000000e+00> : vector<8x128xf32>
    %603 = tpu.matmul %602, %575, %cst_167 {dimension_numbers = #tpu.dot_dimension_numbers<[1], [0], [0], [1], [0, 0, 1, 1], [], []>} : vector<8x32xbf16>, vector<32x128xbf16>, vector<8x128xf32> -> vector<8x128xf32>
    %604 = vector.broadcast %576 : vector<1x128xf32> to vector<8x128xf32>
    %605 = arith.addf %603, %604 : vector<8x128xf32>
    %c0_168 = arith.constant 0 : index
    %c0_169 = arith.constant 0 : index
    %c0_170 = arith.constant 0 : index
    %606 = vector.load %arg13[%c0_168, %c0_169, %c0_170] : memref<2x8x128xf32, #tpu.memory_space<vmem>>, vector<1x8x128xf32>
    %607 = vector.shape_cast %606 : vector<1x8x128xf32> to vector<8x128xf32>
    %608 = vector.shape_cast %605 : vector<8x128xf32> to vector<1x8x128xf32>
    tpu.vector_store %arg13[%c0_168, %c0_169, %c0_170], %608 {strides = array<i32>} : memref<2x8x128xf32, #tpu.memory_space<vmem>>, vector<1x8x128xf32>,
    %c8_171 = arith.constant 8 : index
    %c0_172 = arith.constant 0 : index
    %609 = vector.load %arg16[%c8_171, %c0_172] : memref<16x32xf32, #tpu.memory_space<vmem>>, vector<8x32xf32>
    %610 = arith.truncf %609 : vector<8x32xf32> to vector<8x32xbf16>
    %611 = vector.extract_strided_slice %571 {offsets = [1, 0, 0], sizes = [1, 8, 32], strides = [1, 1, 1]} : vector<2x8x32xf32> to vector<1x8x32xf32>
    %612 = vector.shape_cast %611 : vector<1x8x32xf32> to vector<8x32xf32>
    %613 = arith.truncf %612 : vector<8x32xf32> to vector<8x32xbf16>
    %cst_173 = arith.constant dense<0.000000e+00> : vector<8x8xf32>
    %614 = tpu.matmul %610, %613, %cst_173 {dimension_numbers = #tpu.dot_dimension_numbers<[1], [1], [0], [0], [0, 0, 1, 0], [], []>} : vector<8x32xbf16>, vector<8x32xbf16>, vector<8x8xf32> -> vector<8x8xf32>
    %cst_174 = arith.constant dense<0xFF800000> : vector<8xf32>
    %615 = vector.multi_reduction <maximumf>, %614, %cst_174 [1] : vector<8x8xf32> to vector<8xf32>
    %616 = vector.shape_cast %615 : vector<8xf32> to vector<8x1xf32>
    %617 = vector.broadcast %616 : vector<8x1xf32> to vector<8x8xf32>
    %618 = arith.subf %614, %617 : vector<8x8xf32>
    %619 = math.exp %618 : vector<8x8xf32>
    %cst_175 = arith.constant dense<0.000000e+00> : vector<8xf32>
    %620 = vector.multi_reduction <add>, %619, %cst_175 [1] : vector<8x8xf32> to vector<8xf32>
    %621 = vector.shape_cast %620 : vector<8xf32> to vector<8x1xf32>
    %622 = tpu.reciprocal %621 {approx = true} : vector<8x1xf32> -> vector<8x1xf32>
    %623 = vector.broadcast %622 : vector<8x1xf32> to vector<8x8xf32>
    %624 = arith.mulf %619, %623 : vector<8x8xf32>
    %625 = arith.truncf %624 : vector<8x8xf32> to vector<8x8xbf16>
    %cst_176 = arith.constant dense<0.000000e+00> : vector<8x32xf32>
    %626 = tpu.matmul %625, %613, %cst_176 {dimension_numbers = #tpu.dot_dimension_numbers<[1], [0], [0], [1], [0, 0, 1, 1], [], []>} : vector<8x8xbf16>, vector<8x32xbf16>, vector<8x32xf32> -> vector<8x32xf32>
    %cst_177 = arith.constant dense<0.000000e+00> : vector<8x32xf32>
    %627 = tpu.matmul %610, %572, %cst_177 {dimension_numbers = #tpu.dot_dimension_numbers<[1], [0], [0], [1], [0, 0, 1, 1], [], []>} : vector<8x32xbf16>, vector<32x32xbf16>, vector<8x32xf32> -> vector<8x32xf32>
    %628 = arith.truncf %626 : vector<8x32xf32> to vector<8x32xbf16>
    %cst_178 = arith.constant dense<0.000000e+00> : vector<8x32xf32>
    %629 = tpu.matmul %628, %573, %cst_178 {dimension_numbers = #tpu.dot_dimension_numbers<[1], [0], [0], [1], [0, 0, 1, 1], [], []>} : vector<8x32xbf16>, vector<32x32xbf16>, vector<8x32xf32> -> vector<8x32xf32>
    %630 = arith.addf %627, %629 : vector<8x32xf32>
    %631 = vector.broadcast %574 : vector<1x32xf32> to vector<8x32xf32>
    %632 = arith.addf %630, %631 : vector<8x32xf32>
    %633 = math.tanh %632 : vector<8x32xf32>
    %634 = arith.truncf %633 : vector<8x32xf32> to vector<8x32xbf16>
    %cst_179 = arith.constant dense<0.000000e+00> : vector<8x128xf32>
    %635 = tpu.matmul %634, %575, %cst_179 {dimension_numbers = #tpu.dot_dimension_numbers<[1], [0], [0], [1], [0, 0, 1, 1], [], []>} : vector<8x32xbf16>, vector<32x128xbf16>, vector<8x128xf32> -> vector<8x128xf32>
    %636 = vector.broadcast %576 : vector<1x128xf32> to vector<8x128xf32>
    %637 = arith.addf %635, %636 : vector<8x128xf32>
    %c1_180 = arith.constant 1 : index
    %c0_181 = arith.constant 0 : index
    %c0_182 = arith.constant 0 : index
    %638 = vector.load %arg13[%c1_180, %c0_181, %c0_182] : memref<2x8x128xf32, #tpu.memory_space<vmem>>, vector<1x8x128xf32>
    %639 = vector.shape_cast %638 : vector<1x8x128xf32> to vector<8x128xf32>
    %640 = vector.shape_cast %637 : vector<8x128xf32> to vector<1x8x128xf32>
    tpu.vector_store %arg13[%c1_180, %c0_181, %c0_182], %640 {strides = array<i32>} : memref<2x8x128xf32, #tpu.memory_space<vmem>>, vector<1x8x128xf32>,
    return
  }
}

</mosaic_0001>

<bundles_post_ra>
// kernel: tpu_custom_call.1
= control target key start
LH: loop header
LB: loop body
LE: loop exit
PB: predicated region body
PF: predicated region fallthrough
CT: control target
= control target key end

     0   :  { %20 = vsyncpa [#allocation5], 0  ;;  %s3736_s0 = inlined_call_operand.vmem [shape: s32[16,1], index: 0, kind: input, shape index: {}]   ;;  %s3737_s1 = inlined_call_operand.vmem [shape: bf16[32,32], index: 1, kind: input, shape index: {}]   ;;  %s3738_s2 = inlined_call_operand.hbm [shape: f32[2,2,32], index: 2, kind: input, shape index: {}]   ;;  %s3739_s3 = inlined_call_operand.hbm [shape: bf16[2,32,96], index: 3, kind: input, shape index: {}]   ;;  %s3740_s4 = inlined_call_operand.hbm [shape: bf16[2,32,96], index: 4, kind: input, shape index: {}]   ;;  %s3741_s5 = inlined_call_operand.hbm [shape: f32[2,1,96], index: 5, kind: input, shape index: {}]   ;;  %s3742_s6 = inlined_call_operand.hbm [shape: f32[2,1,32], index: 6, kind: input, shape index: {}]   ;;  %s3743_s7 = inlined_call_operand.hbm [shape: f32[2,8,32], index: 7, kind: input, shape index: {}]   ;;  %s3744_s8 = inlined_call_operand.hbm [shape: bf16[32,32], index: 8, kind: input, shape index: {}]   ;;  %s3745_s9 = inlined_call_operand.vmem [shape: bf16[32,32], index: 9, kind: input, shape index: {}]   ;;  %s3746_s10 = inlined_call_operand.vmem [shape: f32[1,32], index: 10, kind: input, shape index: {}]   ;;  %s3747_s11 = inlined_call_operand.hbm [shape: bf16[32,128], index: 11, kind: input, shape index: {}]   ;;  %s3748_s12 = inlined_call_operand.vmem [shape: f32[1,128], index: 12, kind: input, shape index: {}]   ;;  %s3749_s13 = inlined_call_operand.hbm [shape: f32[2,8,128], index: 13, kind: output, shape index: {0}]   ;;  %s3750_s14 = inlined_call_operand.hbm [shape: f32[2,2,32], index: 14, kind: output, shape index: {1}]  }
   0x1   :  { %21 = vsyncpa [#allocation8], 0 }
   0x2   :  { %22 = vsyncpa [#allocation11], 0 }
   0x3   :  { %23 = vsyncpa [#allocation14], 0 }
   0x4   :  { %24 = vsyncpa [#allocation17], 0 }
   0x5   :  { %25 = vsyncpa [#allocation6], 0 }
   0x6   :  { %26 = vsyncpa [#allocation20], 0  ;;  %s3121_s29 = smov [#allocation7]  }
   0x7   :  { %s48_s30 = sshll.u32 %s3121_s29, 4  ;;  %s49_s30 = int_to_ptr.vmem [resolvable:$true] %s48_s30 }
   0x8   :  { %s2915_s15 = scalar_lea.vmem %s49_s30, 512  ;;  %p2920_p1 = scmp.lt.s32.totalorder %s49_s30, %s49_s30 }
   0x9   :  { %p2916_p0 = scmp.ne.s32.totalorder %s49_s30, %s2915_s15  ;;  %p2921_p2 = scmp.lt.s32.totalorder %s2915_s15, %s2915_s15 }
   0xb   :  { %p2922_p3 = por %p2921_p2, %p2920_p1 }
   0xd   :  { %p2923_p4 = pnand %p2922_p3, %p2916_p0 }
   0xf   :  { %2926 = shalt.err (!%p2923_p4)
}
  0x10   :  { %s3122_s16 = smov 64   ;;  %s3123_s17 = smov 4  }
  0x11   :  { %54 = dma.hbm_to_vmem [thread:$0]  %s3739_s3, 512, %s49_s30, [#allocation8], %s3122_s16, %s3122_s16, %s3123_s17  }
  0x12   :  { %s3124_s20 = smov [#allocation10]  }
  0x13   :  { %s72_s21 = sshll.u32 %s3124_s20, 4  ;;  %s73_s21 = int_to_ptr.vmem [resolvable:$true] %s72_s21 }
  0x14   :  { %s2935_s22 = scalar_lea.vmem %s73_s21, 32  ;;  %p2940_p6 = scmp.lt.s32.totalorder %s73_s21, %s73_s21 }
  0x15   :  { %p2936_p5 = scmp.ne.s32.totalorder %s73_s21, %s2935_s22  ;;  %p2941_p7 = scmp.lt.s32.totalorder %s2935_s22, %s2935_s22 }
  0x17   :  { %p2942_p8 = por %p2941_p7, %p2940_p6 }
  0x19   :  { %p2943_p9 = pnand %p2942_p8, %p2936_p5 }
  0x1b   :  { %2946 = shalt.err (!%p2943_p9)
}
  0x1c   :  { %s3125_s23 = smov 16   ;;  %s3126_s24 = smov 1  }
  0x1d   :  { %78 = dma.hbm_to_vmem [thread:$0]  %s3741_s5, 32, %s73_s21, [#allocation11], %s3125_s23, %s3125_s23, %s3126_s24  }
  0x1e   :  { %s3127_s3 = smov [#allocation13]  }
  0x1f   :  { %s96_s27 = sshll.u32 %s3127_s3, 4  ;;  %s97_s27 = int_to_ptr.vmem [resolvable:$true] %s96_s27 }
  0x20   :  { %s2955_s28 = scalar_lea.vmem %s97_s27, 256  ;;  %p2960_p11 = scmp.lt.s32.totalorder %s97_s27, %s97_s27 }
  0x21   :  { %p2956_p10 = scmp.ne.s32.totalorder %s97_s27, %s2955_s28  ;;  %p2961_p12 = scmp.lt.s32.totalorder %s2955_s28, %s2955_s28 }
  0x23   :  { %p2962_p13 = por %p2961_p12, %p2960_p11 }
  0x25   :  { %p2963_p0 = pnand %p2962_p13, %p2956_p10 }
  0x27   :  { %2966 = shalt.err (!%p2963_p0)
}
  0x28   :  { %s3128_s29 = smov 128   ;;  %s3129_s30 = smov 8  }
  0x29   :  { %102 = dma.hbm_to_vmem [thread:$0]  %s3743_s7, 256, %s97_s27, [#allocation14], %s3128_s29, %s3128_s29, %s3129_s30  }
  0x2a   :  { %s3130_s5 = smov [#allocation4]  }
  0x2b   :  { %s36_s19 = sshll.u32 %s3130_s5, 4  ;;  %s37_s19 = int_to_ptr.vmem [resolvable:$true] %s36_s19 }
  0x2c   :  { %s2975_s20 = scalar_lea.vmem %s37_s19, 64  ;;  %p2980_p2 = scmp.lt.s32.totalorder %s37_s19, %s37_s19 }
  0x2d   :  { %p2976_p1 = scmp.ne.s32.totalorder %s37_s19, %s2975_s20  ;;  %p2981_p3 = scmp.lt.s32.totalorder %s2975_s20, %s2975_s20 }
  0x2f   :  { %p2982_p4 = por %p2981_p3, %p2980_p2 }
  0x31   :  { %p2983_p5 = pnand %p2982_p4, %p2976_p1 }
  0x33   :  { %2986 = shalt.err (!%p2983_p5)
}
  0x34   :  { %s3131_s21 = smov 32   ;;  %s3132_s22 = smov 2  }
  0x35   :  { %42 = dma.hbm_to_vmem [thread:$0]  %s3738_s2, 64, %s37_s19, [#allocation5], %s3131_s21, %s3131_s21, %s3132_s22  }
  0x36   :  { %s3133_s7 = smov [#allocation9]   ;;  %s3134_s27 = smov [#allocation12]  }
  0x37   :  { %s60_s3 = sshll.u32 %s3133_s7, 4  ;;  %s84_s28 = sshll.u32 %s3134_s27, 4  ;;  %s61_s3 = int_to_ptr.vmem [resolvable:$true] %s60_s3  ;;  %s85_s28 = int_to_ptr.vmem [resolvable:$true] %s84_s28 }
  0x38   :  { %s2995_s15 = scalar_lea.vmem %s61_s3, 512  ;;  %p3000_p7 = scmp.lt.s32.totalorder %s61_s3, %s61_s3 }
  0x39   :  { %p2996_p6 = scmp.ne.s32.totalorder %s61_s3, %s2995_s15  ;;  %p3001_p8 = scmp.lt.s32.totalorder %s2995_s15, %s2995_s15 }
  0x3b   :  { %p3002_p9 = por %p3001_p8, %p3000_p7 }
  0x3d   :  { %p3003_p10 = pnand %p3002_p9, %p2996_p6 }
  0x3f   :  { %3006 = shalt.err (!%p3003_p10)
}
  0x40   :  { %66 = dma.hbm_to_vmem [thread:$0]  %s3740_s4, 512, %s61_s3, [#allocation8], %s3122_s16, %s3122_s16, %s3123_s17  }
  0x41   :  { %s3015_s2 = scalar_lea.vmem %s85_s28, 32  ;;  %p3020_p12 = scmp.lt.s32.totalorder %s85_s28, %s85_s28 }
  0x42   :  { %p3016_p11 = scmp.ne.s32.totalorder %s85_s28, %s3015_s2  ;;  %p3021_p13 = scmp.lt.s32.totalorder %s3015_s2, %s3015_s2 }
  0x44   :  { %p3022_p0 = por %p3021_p13, %p3020_p12 }
  0x46   :  { %p3023_p1 = pnand %p3022_p0, %p3016_p11 }
  0x48   :  { %3026 = shalt.err (!%p3023_p1)
}
  0x49   :  { %90 = dma.hbm_to_vmem [thread:$0]  %s3742_s6, 32, %s85_s28, [#allocation11], %s3125_s23, %s3125_s23, %s3126_s24  }
  0x4a   :  { %s3135_s25 = smov [#allocation15]   ;;  %s3136_s7 = smov [#allocation16]  }
  0x4b   :  { %s108_s26 = sshll.u32 %s3135_s25, 4  ;;  %s124_s27 = sshll.u32 %s3136_s7, 4  ;;  %s109_s26 = int_to_ptr.vmem [resolvable:$true] %s108_s26  ;;  %s125_s27 = int_to_ptr.vmem [resolvable:$true] %s124_s27 }
  0x4c   :  { %s3035_s4 = scalar_lea.vmem %s109_s26, 256  ;;  %p3040_p3 = scmp.lt.s32.totalorder %s109_s26, %s109_s26 }
  0x4d   :  { %p3036_p2 = scmp.ne.s32.totalorder %s109_s26, %s3035_s4  ;;  %p3041_p4 = scmp.lt.s32.totalorder %s3035_s4, %s3035_s4 }
  0x4f   :  { %p3042_p5 = por %p3041_p4, %p3040_p3 }
  0x51   :  { %p3043_p6 = pnand %p3042_p5, %p3036_p2 }
  0x53   :  { %3046 = shalt.err (!%p3043_p6)
}
  0x54   :  { %114 = dma.hbm_to_vmem [thread:$0]  %s3744_s8, 256, %s109_s26, [#allocation14], %s3122_s16, %s3122_s16, %s3123_s17  }
  0x55   :  { %s3055_s6 = scalar_lea.vmem %s125_s27, 256  ;;  %p3060_p8 = scmp.lt.s32.totalorder %s125_s27, %s125_s27 }
  0x56   :  { %p3056_p7 = scmp.ne.s32.totalorder %s125_s27, %s3055_s6  ;;  %p3061_p9 = scmp.lt.s32.totalorder %s3055_s6, %s3055_s6 }
  0x58   :  { %p3062_p10 = por %p3061_p9, %p3060_p8 }
  0x5a   :  { %p3063_p11 = pnand %p3062_p10, %p3056_p7 }
  0x5c   :  { %3066 = shalt.err (!%p3063_p11)
}
  0x5d   :  { %130 = dma.hbm_to_vmem [thread:$0]  %s3747_s11, 256, %s125_s27, [#allocation17], %s3122_s16, %s3122_s16, %s3123_s17  }
  0x5e   :  { %3107 = dma.done.wait [#allocation5], 64  }
  0x5f   :  { %3108 = vsyncadd [#allocation5], 4294967232 }
  0x60   :  { %3109 = dma.done.wait [#allocation8], 1024  }
  0x61   :  { %3110 = vsyncadd [#allocation8], 4294966272 }
  0x62   :  { %3111 = dma.done.wait [#allocation11], 64  }
  0x63   :  { %3112 = vsyncadd [#allocation11], 4294967232 }
  0x64   :  { %3113 = dma.done.wait [#allocation14], 512  }
  0x65   :  { %3114 = vsyncadd [#allocation14], 4294966784 }
  0x66   :  { %3115 = dma.done.wait [#allocation17], 256  }
  0x67   :  { %3116 = vsyncadd [#allocation17], 4294967040  ;;  %v3137_v0 = vmov 0   ;;  %v3138_v1 = vmov 0.0   ;;  %v158_v2 = vld [vmem:[%s3736_s0] sm:$0xff]  ;;  %v2783_v3 = vld [vmem:[%s3737_s1 + $0x8] sm:$0xff]   ;;  %v160_v6 = vlaneseq }
  0x68   :  { %2782 = vset.pattern.permute.xlu0 %v3137_v0  ;;  %2536 = vmatprep.subr.bf16.mxu0 %v3138_v1  ;;  %v159_v4 = vld [vmem:[%s3736_s0 + $0x8] sm:$0xff]  ;;  %v2784_v5 = vld [vmem:[%s3737_s1] sm:$0xff]   ;;  %vm3139_vm0 = vmmov 0   ;;  %vm189_vm3 = vcmask 261120   ;;  %s3140_s0 = smov 96   ;;  %vm411_vm4 = vcmask 254976  }
  0x69   :  { %2544 = vmatprep.subr.bf16.mxu1 %v3138_v1  ;;  %163 = vperm.xlu0 %2782, %v158_v2   ;;  %v161_v7 = vand.u32 127, %v160_v6  ;;  %v3288_v12 = vld [vmem:[#allocation9 + $0x8] sm:$0xff]   ;;  %v3292_v14 = vld [vmem:[#allocation9] sm:$0xff]   ;;  %v316_v15 = vld [vmem:[#allocation4] sm:$0x3]  ;;  %vm584_vm5 = vcmask 259076  }
  0x6a   :  { %2537 = vmatpush3.bf16.msra.mxu0 %v2783_v3  ;;  %2540 = vmatprep.mubr.msk.bf16.mxu0 %vm3139_vm0, %v3138_v1  ;;  %v317_v16 = vpack.c.bf16 %v316_v15, %v316_v15  ;;  %v2787_v17 = vld [vmem:[#allocation7 + $0x8] sm:$0xff]   ;;  %v2389_v18 = vld [vmem:[#allocation12] ss:$0 sm:$0xff]  ;;  %v2390_v33 = vld [vmem:[#allocation10] ss:$0 sm:$0xff]  ;;  %vm497_vm6 = vcmask 257026  }
  0x6b   :  { %2538 = vmatprep.subr.bf16.mxu0 %v3138_v1  ;;  %2548 = vmatprep.mubr.msk.bf16.mxu1 %vm3139_vm0, %v3138_v1  ;;  %v2788_v19 = vld [vmem:[#allocation7] sm:$0xff]   ;;  %vm671_vm7 = vcmask 261126   ;;  %vm1193_vm8 = vcmask 253952   ;;  %vm1195_vm9 = vcmask 254977   ;;  %vm1370_vm10 = vcmask 258052  }
  0x6c   :  { %380 = vrot.lane.b32.xlu1 %v2389_v18, %s3122_s16  ;;  %2545 = vmatpush3.bf16.msra.mxu1 %v2787_v17  ;;  %vm1372_vm11 = vcmask 259077   ;;  %vm1281_vm12 = vcmask 256002   ;;  %vm1283_vm13 = vcmask 257027   ;;  %vm1459_vm14 = vcmask 260102  }
  0x6d   :  { %166 = vperm.xlu0 %2782, %v159_v4   ;;  %2546 = vmatprep.subr.bf16.mxu1 %v3138_v1  ;;  %vm1461_vm15 = vcmask 261127  }
  0x6e   :  { %2539 = vmatpush3.bf16.msra.mxu0 %v2784_v5 }
  0x6f   :  { %2552 = vmatprep.subr.bf16.mxu0 %v3138_v1 }
  0x70   :  { %2547 = vmatpush3.bf16.msra.mxu1 %v2788_v19 }
  0x71   :  { %2560 = vmatprep.subr.bf16.mxu1 %v3138_v1 }
  0xde   :  { %v3311_v24 = vpop.permute.xlu1 %380 }
  0xe4   :  { %v164_v8 = vpop.permute.xlu0 %163 }
  0xe5   :  { %vm168_vm1 = vcmp.eq.s32.totalorder %v164_v8, %v161_v7 }
  0xe6   :  { %v170_v10 = vsel %vm168_vm1, 1.0, %v3138_v1  ;;  %vm1873_vm1 = vcmask 64512  }
  0xe8   :  { %v167_v9 = vpop.permute.xlu0 %166 }
  0xe9   :  { %vm169_vm2 = vcmp.eq.s32.totalorder %v167_v9, %v161_v7 }
  0xea   :  { %v171_v11 = vsel %vm169_vm2, 1.0, %v3138_v1  ;;  %vm1889_vm2 = vcmask 1043456  }
  0xeb   :  { %v172_v13 = vpack.c.bf16 %v171_v11, %v170_v10 }
  0xed   :  { %2541 = vmatmul.mubr.msk.bf16.vlgmr.msra.gmra.mxu0 %vm189_vm3, %v172_v13 }
  0xee   :  { %2553 = vmatpush3.bf16.msra.mxu0 %v3288_v12  ;;  %2556 = vmatprep.mubr.msk.bf16.mxu0 %vm3139_vm0, %v3138_v1 }
  0xef   :  { %2554 = vmatprep.subr.bf16.mxu0 %v3138_v1 }
  0xf2   :  { %2555 = vmatpush3.bf16.msra.mxu0 %v3292_v14 }
  0xf3   :  { %2568 = vmatprep.subr.bf16.mxu0 %v3138_v1 }
  0xf5   :  { %2557 = vmatmul.mubr.msk.bf16.vlgmr.msra.gmra.mxu0 %vm189_vm3, %v317_v16 }
  0xf6   :  { %2569 = vmatpush3.bf16.msra.mxu0 %v3288_v12  ;;  %2572 = vmatprep.mubr.msk.bf16.mxu0 %vm3139_vm0, %v3138_v1 }
  0xf7   :  { %2570 = vmatprep.subr.bf16.mxu0 %v3138_v1 }
  0xfa   :  { %2571 = vmatpush3.bf16.msra.mxu0 %v3292_v14 }
  0xfb   :  { %2584 = vmatprep.subr.bf16.mxu0 %v3138_v1 }
 0x1ad   :  { %v227_v20 = vpop.f32.mrf.mxu0 }
 0x1ae   :  { %234 = vst.msk [vmem:[#allocation2] sm:$0xff] %vm189_vm3, %v227_v20 }
 0x1af   :  { %v2542_v21 = vpop.f32.mrf.mxu0 }
 0x1b1   :  { %v230_v22 = vpop.f32.mrf.mxu0 }
 0x1b2   :  { %235 = vst.msk [vmem:[#allocation2 + $0x8] sm:$0xff] %vm189_vm3, %v230_v22 }
 0x1b3   :  { %v2543_v23 = vpop.f32.mrf.mxu0 }
 0x1b5   :  { %v367_v25 = vpop.f32.mrf.mxu0  ;;  %v251_v28 = vld [vmem:[#allocation2] sm:$0xff] }
 0x1b6   :  { %v383_v26 = vadd.f32 %v3311_v24, %v367_v25 }
 0x1b7   :  { %v2558_v27 = vpop.f32.mrf.mxu0 }
 0x1b8   :  { %385 = vrot.lane.b32.xlu1 %v383_v26, %s3122_s16 }
 0x1b9   :  { %v252_v29 = vld [vmem:[#allocation2 + $0x8] sm:$0xff]  ;;  %v370_v30 = vpop.f32.mrf.mxu0 }
 0x1ba   :  { %v253_v31 = vpack.c.bf16 %v252_v29, %v251_v28 }
 0x1bb   :  { %v2559_v32 = vpop.f32.mrf.mxu0 }
 0x1bc   :  { %2549 = vmatmul.mubr.msk.bf16.vlgmr.msra.gmra.mxu1 %vm189_vm3, %v253_v31 }
 0x1bd   :  { %2561 = vmatpush3.bf16.msra.mxu1 %v3288_v12  ;;  %2564 = vmatprep.mubr.msk.bf16.mxu1 %vm3139_vm0, %v3138_v1 }
 0x1be   :  { %2562 = vmatprep.subr.bf16.mxu1 %v3138_v1 }
 0x1c1   :  { %2563 = vmatpush3.bf16.msra.mxu1 %v3292_v14 }
 0x1c2   :  { %2576 = vmatprep.subr.bf16.mxu1 %v3138_v1 }
 0x22a   :  { %v386_v44 = vpop.permute.xlu1 %385 }
 0x27c   :  { %v309_v34 = vpop.f32.mrf.mxu1 }
 0x27d   :  { %v3322_v35 = vadd.f32 %v2390_v33, %v309_v34 }
 0x27e   :  { %v2550_v36 = vpop.f32.mrf.mxu1 }
 0x27f   :  { %v373_v37 = vadd.f32 %v367_v25, %v3322_v35 }
 0x280   :  { %v312_v38 = vpop.f32.mrf.mxu1 }
 0x281   :  { %v2397_v39 = vmul.f32 -1.442695, %v373_v37  ;;  %v3325_v40 = vadd.f32 %v2390_v33, %v312_v38 }
 0x282   :  { %v2551_v41 = vpop.f32.mrf.mxu1 }
 0x283   :  { %2799 = vpow2.f32 %v2397_v39 }
 0x290   :  { %v2800_v42 = vpop.eup %2799 }
 0x291   :  { %v377_v43 = vadd.f32 1.0, %v2800_v42 }
 0x293   :  { %2801 = vrcp.f32 %v377_v43 }
 0x2a0   :  { %v2802_v45 = vpop.eup %2801 }
 0x2a1   :  { %v388_v46 = vmul.f32 %v2802_v45, %v386_v44  ;;  %v395_v51 = vsub.f32 1.0, %v2802_v45 }
 0x2a3   :  { %390 = vrot.lane.b32.xlu0 %v388_v46, %s3122_s16 }
 0x2a7   :  { %402 = vrot.lane.b32.xlu0 %v316_v15, %s3131_s21 }
 0x315   :  { %v391_v47 = vpop.permute.xlu0 %390 }
 0x316   :  { %v393_v48 = vadd.f32 %v391_v47, %v3322_v35 }
 0x318   :  { %2803 = vtanh.f32 %v393_v48 }
 0x319   :  { %v403_v50 = vpop.permute.xlu0 %402 }
 0x31a   :  { %v405_v53 = vmul.f32 %v2802_v45, %v403_v50 }
 0x325   :  { %v2804_v49 = vpop.eup %2803 }
 0x326   :  { %397 = vrot.lane.b32.xlu1 %v2804_v49, %s3140_s0 }
 0x398   :  { %v398_v52 = vpop.permute.xlu1 %397 }
 0x399   :  { %v400_v54 = vmul.f32 %v398_v52, %v395_v51 }
 0x39b   :  { %v3331_v55 = vadd.f32 %v405_v53, %v400_v54 }
 0x39d   :  { %v413_v56 = vpack.c.bf16 %v3331_v55, %v3331_v55  ;;  %v489_v15 = vrot.slane %v3331_v55, 6 }
 0x39f   :  { %415 = vrot.lane.b32.xlu1 %v413_v56, %s3140_s0 }
 0x411   :  { %v416_v57 = vpop.permute.xlu1 %415 }
 0x412   :  { %2565 = vmatmul.mubr.msk.bf16.vlgmr.msra.gmra.mxu1 %vm189_vm3, %v416_v57 }
 0x413   :  { %2577 = vmatpush3.bf16.msra.mxu1 %v3288_v12  ;;  %2580 = vmatprep.mubr.msk.bf16.mxu1 %vm3139_vm0, %v3138_v1 }
 0x414   :  { %2578 = vmatprep.subr.bf16.mxu1 %v3138_v1 }
 0x417   :  { %2579 = vmatpush3.bf16.msra.mxu1 %v3292_v14 }
 0x418   :  { %2592 = vmatprep.subr.bf16.mxu1 %v3138_v1 }
 0x4d2   :  { %v454_v58 = vpop.f32.mrf.mxu1 }
 0x4d3   :  { %v470_v59 = vadd.f32 %v454_v58, %v3311_v24  ;;  %v461_v0 = vrot.slane %v454_v58, 6 }
 0x4d4   :  { %v2566_v60 = vpop.f32.mrf.mxu1 }
 0x4d5   :  { %v472_v61 = vrot.slane %v470_v59, 6  ;;  %v463_v2 = vadd.f32 %v461_v0, %v3322_v35 }
 0x4d6   :  { %v457_v62 = vpop.f32.mrf.mxu1 }
 0x4d7   :  { %473 = vrot.lane.b32.xlu0 %v472_v61, %s3122_s16  ;;  %v2399_v3 = vmul.f32 -1.442695, %v463_v2 }
 0x4d8   :  { %v2567_v63 = vpop.f32.mrf.mxu1 }
 0x4d9   :  { %2805 = vpow2.f32 %v2399_v3 }
 0x4e6   :  { %v2806_v4 = vpop.eup %2805 }
 0x4e7   :  { %v467_v5 = vadd.f32 1.0, %v2806_v4 }
 0x4e9   :  { %2807 = vrcp.f32 %v467_v5 }
 0x4f6   :  { %v2808_v6 = vpop.eup %2807 }
 0x4f7   :  { %v483_v13 = vsub.f32 1.0, %v2808_v6  ;;  %v491_v17 = vmul.f32 %v2808_v6, %v489_v15 }
 0x549   :  { %v474_v7 = vpop.permute.xlu0 %473 }
 0x54a   :  { %v476_v8 = vmul.f32 %v2808_v6, %v474_v7 }
 0x54c   :  { %478 = vrot.lane.b32.xlu1 %v476_v8, %s3122_s16 }
 0x5be   :  { %v479_v9 = vpop.permute.xlu1 %478 }
 0x5bf   :  { %v481_v10 = vadd.f32 %v479_v9, %v3322_v35 }
 0x5c1   :  { %2809 = vtanh.f32 %v481_v10 }
 0x5ce   :  { %v2810_v11 = vpop.eup %2809 }
 0x5cf   :  { %485 = vrot.lane.b32.xlu0 %v2810_v11, %s3140_s0 }
 0x641   :  { %v486_v16 = vpop.permute.xlu0 %485 }
 0x642   :  { %v488_v18 = vmul.f32 %v486_v16, %v483_v13 }
 0x644   :  { %v3350_v19 = vadd.f32 %v491_v17, %v488_v18 }
 0x646   :  { %v499_v20 = vpack.c.bf16 %v3350_v19, %v3350_v19  ;;  %v576_v44 = vrot.slane %v3350_v19, 6 }
 0x648   :  { %v501_v21 = vrot.slane %v499_v20, 1 }
 0x64a   :  { %502 = vrot.lane.b32.xlu1 %v501_v21, %s3140_s0 }
 0x6bc   :  { %v503_v22 = vpop.permute.xlu1 %502 }
 0x6bd   :  { %2573 = vmatmul.mubr.msk.bf16.vlgmr.msra.gmra.mxu0 %vm189_vm3, %v503_v22 }
 0x6be   :  { %2585 = vmatpush3.bf16.msra.mxu0 %v3288_v12  ;;  %2588 = vmatprep.mubr.msk.bf16.mxu0 %vm3139_vm0, %v3138_v1 }
 0x6bf   :  { %2586 = vmatprep.subr.bf16.mxu0 %v3138_v1 }
 0x6c2   :  { %2587 = vmatpush3.bf16.msra.mxu0 %v3292_v14 }
 0x6c3   :  { %2600 = vmatprep.subr.bf16.mxu0 %v3138_v1 }
 0x77d   :  { %v541_v23 = vpop.f32.mrf.mxu0 }
 0x77e   :  { %v557_v25 = vadd.f32 %v541_v23, %v3311_v24  ;;  %v548_v30 = vrot.slane %v541_v23, 4 }
 0x77f   :  { %v2574_v26 = vpop.f32.mrf.mxu0 }
 0x780   :  { %v559_v27 = vrot.slane %v557_v25, 4  ;;  %v550_v31 = vadd.f32 %v548_v30, %v3322_v35 }
 0x781   :  { %v544_v28 = vpop.f32.mrf.mxu0 }
 0x782   :  { %560 = vrot.lane.b32.xlu0 %v559_v27, %s3122_s16  ;;  %v2401_v32 = vmul.f32 -1.442695, %v550_v31 }
 0x783   :  { %v2575_v29 = vpop.f32.mrf.mxu0 }
 0x784   :  { %2811 = vpow2.f32 %v2401_v32 }
 0x791   :  { %v2812_v33 = vpop.eup %2811 }
 0x792   :  { %v554_v34 = vadd.f32 1.0, %v2812_v33 }
 0x794   :  { %2813 = vrcp.f32 %v554_v34 }
 0x7a1   :  { %v2814_v36 = vpop.eup %2813 }
 0x7a2   :  { %v570_v43 = vsub.f32 1.0, %v2814_v36  ;;  %v578_v46 = vmul.f32 %v2814_v36, %v576_v44 }
 0x7f4   :  { %v561_v37 = vpop.permute.xlu0 %560 }
 0x7f5   :  { %v563_v38 = vmul.f32 %v2814_v36, %v561_v37 }
 0x7f7   :  { %565 = vrot.lane.b32.xlu1 %v563_v38, %s3122_s16 }
 0x869   :  { %v566_v39 = vpop.permute.xlu1 %565 }
 0x86a   :  { %v568_v41 = vadd.f32 %v566_v39, %v3322_v35 }
 0x86c   :  { %2815 = vtanh.f32 %v568_v41 }
 0x879   :  { %v2816_v42 = vpop.eup %2815 }
 0x87a   :  { %572 = vrot.lane.b32.xlu0 %v2816_v42, %s3140_s0 }
 0x8ec   :  { %v573_v45 = vpop.permute.xlu0 %572 }
 0x8ed   :  { %v575_v47 = vmul.f32 %v573_v45, %v570_v43 }
 0x8ef   :  { %v3369_v48 = vadd.f32 %v578_v46, %v575_v47 }
 0x8f1   :  { %v586_v49 = vpack.c.bf16 %v3369_v48, %v3369_v48  ;;  %v663_v8 = vrot.slane %v3369_v48, 6 }
 0x8f3   :  { %v588_v50 = vrot.slane %v586_v49, 2 }
 0x8f5   :  { %589 = vrot.lane.b32.xlu1 %v588_v50, %s3140_s0 }
 0x967   :  { %v590_v51 = vpop.permute.xlu1 %589 }
 0x968   :  { %2581 = vmatmul.mubr.msk.bf16.vlgmr.msra.gmra.mxu1 %vm189_vm3, %v590_v51 }
 0x969   :  { %2593 = vmatpush3.bf16.msra.mxu1 %v3288_v12  ;;  %2596 = vmatprep.mubr.msk.bf16.mxu1 %vm3139_vm0, %v3138_v1 }
 0x96a   :  { %2594 = vmatprep.subr.bf16.mxu1 %v3138_v1 }
 0x96d   :  { %2595 = vmatpush3.bf16.msra.mxu1 %v3292_v14 }
 0x96e   :  { %2608 = vmatprep.subr.bf16.mxu1 %v3138_v1 }
 0xa28   :  { %v628_v52 = vpop.f32.mrf.mxu1 }
 0xa29   :  { %v644_v53 = vadd.f32 %v628_v52, %v3311_v24  ;;  %v635_v59 = vrot.slane %v628_v52, 2 }
 0xa2a   :  { %v2582_v54 = vpop.f32.mrf.mxu1 }
 0xa2b   :  { %v646_v56 = vrot.slane %v644_v53, 2  ;;  %v637_v60 = vadd.f32 %v635_v59, %v3322_v35 }
 0xa2c   :  { %v631_v57 = vpop.f32.mrf.mxu1 }
 0xa2d   :  { %647 = vrot.lane.b32.xlu0 %v646_v56, %s3122_s16  ;;  %v2403_v61 = vmul.f32 -1.442695, %v637_v60 }
 0xa2e   :  { %v2583_v58 = vpop.f32.mrf.mxu1 }
 0xa2f   :  { %2817 = vpow2.f32 %v2403_v61 }
 0xa3c   :  { %v2818_v62 = vpop.eup %2817 }
 0xa3d   :  { %v641_v63 = vadd.f32 1.0, %v2818_v62 }
 0xa3f   :  { %2819 = vrcp.f32 %v641_v63 }
 0xa4c   :  { %v2820_v0 = vpop.eup %2819 }
 0xa4d   :  { %v657_v7 = vsub.f32 1.0, %v2820_v0  ;;  %v665_v10 = vmul.f32 %v2820_v0, %v663_v8 }
 0xa9f   :  { %v648_v2 = vpop.permute.xlu0 %647 }
 0xaa0   :  { %v650_v3 = vmul.f32 %v2820_v0, %v648_v2 }
 0xaa2   :  { %652 = vrot.lane.b32.xlu1 %v650_v3, %s3122_s16 }
 0xb14   :  { %v653_v4 = vpop.permute.xlu1 %652 }
 0xb15   :  { %v655_v5 = vadd.f32 %v653_v4, %v3322_v35 }
 0xb17   :  { %2821 = vtanh.f32 %v655_v5 }
 0xb24   :  { %v2822_v6 = vpop.eup %2821 }
 0xb25   :  { %659 = vrot.lane.b32.xlu0 %v2822_v6, %s3140_s0 }
 0xb97   :  { %v660_v9 = vpop.permute.xlu0 %659 }
 0xb98   :  { %v662_v11 = vmul.f32 %v660_v9, %v657_v7 }
 0xb9a   :  { %v3388_v13 = vadd.f32 %v665_v10, %v662_v11 }
 0xb9c   :  { %v673_v15 = vpack.c.bf16 %v3388_v13, %v3388_v13  ;;  %v746_v36 = vrot.slane %v3388_v13, 6 }
 0xb9e   :  { %v675_v16 = vrot.slane %v673_v15, 3 }
 0xba0   :  { %676 = vrot.lane.b32.xlu1 %v675_v16, %s3140_s0 }
 0xc12   :  { %v677_v17 = vpop.permute.xlu1 %676 }
 0xc13   :  { %2589 = vmatmul.mubr.msk.bf16.vlgmr.msra.gmra.mxu0 %vm189_vm3, %v677_v17 }
 0xc14   :  { %2601 = vmatpush3.bf16.msra.mxu0 %v3288_v12  ;;  %2604 = vmatprep.mubr.msk.bf16.mxu0 %vm3139_vm0, %v3138_v1 }
 0xc15   :  { %2602 = vmatprep.subr.bf16.mxu0 %v3138_v1 }
 0xc18   :  { %2603 = vmatpush3.bf16.msra.mxu0 %v3292_v14 }
 0xc19   :  { %2616 = vmatprep.subr.bf16.mxu0 %v3138_v1 }
 0xcd3   :  { %v715_v35 = vpop.f32.mrf.mxu0 }
 0xcd4   :  { %v728_v18 = vadd.f32 %v715_v35, %v3311_v24  ;;  %v721_v23 = vadd.f32 %v715_v35, %v3325_v40 }
 0xcd5   :  { %v2590_v20 = vpop.f32.mrf.mxu0 }
 0xcd6   :  { %730 = vrot.lane.b32.xlu0 %v728_v18, %s3122_s16  ;;  %v2405_v25 = vmul.f32 -1.442695, %v721_v23 }
 0xcd7   :  { %v718_v21 = vpop.f32.mrf.mxu0 }
 0xcd8   :  { %2823 = vpow2.f32 %v2405_v25 }
 0xcd9   :  { %v2591_v22 = vpop.f32.mrf.mxu0 }
 0xce5   :  { %v2824_v26 = vpop.eup %2823 }
 0xce6   :  { %v725_v27 = vadd.f32 1.0, %v2824_v26 }
 0xce8   :  { %2825 = vrcp.f32 %v725_v27 }
 0xcf5   :  { %v2826_v28 = vpop.eup %2825 }
 0xcf6   :  { %v740_v34 = vsub.f32 1.0, %v2826_v28  ;;  %v748_v38 = vmul.f32 %v2826_v28, %v746_v36 }
 0xd48   :  { %v731_v29 = vpop.permute.xlu0 %730 }
 0xd49   :  { %v733_v30 = vmul.f32 %v2826_v28, %v731_v29 }
 0xd4b   :  { %735 = vrot.lane.b32.xlu1 %v733_v30, %s3122_s16 }
 0xdbd   :  { %v736_v31 = vpop.permute.xlu1 %735 }
 0xdbe   :  { %v738_v32 = vadd.f32 %v736_v31, %v3325_v40 }
 0xdc0   :  { %2827 = vtanh.f32 %v738_v32 }
 0xdcd   :  { %v2828_v33 = vpop.eup %2827 }
 0xdce   :  { %742 = vrot.lane.b32.xlu0 %v2828_v33, %s3140_s0 }
 0xe40   :  { %v743_v37 = vpop.permute.xlu0 %742 }
 0xe41   :  { %v745_v39 = vmul.f32 %v743_v37, %v740_v34 }
 0xe43   :  { %v3407_v41 = vadd.f32 %v748_v38, %v745_v39 }
 0xe45   :  { %v755_v42 = vpack.c.bf16 %v3407_v41, %v3407_v41  ;;  %v831_v62 = vrot.slane %v3407_v41, 6 }
 0xe47   :  { %757 = vrot.lane.b32.xlu1 %v755_v42, %s3140_s0 }
 0xeb9   :  { %v758_v43 = vpop.permute.xlu1 %757 }
 0xeba   :  { %2597 = vmatmul.mubr.msk.bf16.vlgmr.msra.gmra.mxu1 %vm189_vm3, %v758_v43 }
 0xebb   :  { %2609 = vmatpush3.bf16.msra.mxu1 %v3288_v12  ;;  %2612 = vmatprep.mubr.msk.bf16.mxu1 %vm3139_vm0, %v3138_v1 }
 0xebc   :  { %2610 = vmatprep.subr.bf16.mxu1 %v3138_v1 }
 0xebf   :  { %2611 = vmatpush3.bf16.msra.mxu1 %v3292_v14 }
 0xec0   :  { %2624 = vmatprep.subr.bf16.mxu1 %v3138_v1 }
 0xf7a   :  { %v796_v44 = vpop.f32.mrf.mxu1 }
 0xf7b   :  { %v812_v45 = vadd.f32 %v796_v44, %v3311_v24  ;;  %v803_v51 = vrot.slane %v796_v44, 6 }
 0xf7c   :  { %v2598_v46 = vpop.f32.mrf.mxu1 }
 0xf7d   :  { %v814_v47 = vrot.slane %v812_v45, 6  ;;  %v805_v12 = vadd.f32 %v803_v51, %v3325_v40 }
 0xf7e   :  { %v799_v49 = vpop.f32.mrf.mxu1 }
 0xf7f   :  { %815 = vrot.lane.b32.xlu0 %v814_v47, %s3122_s16  ;;  %v2407_v52 = vmul.f32 -1.442695, %v805_v12 }
 0xf80   :  { %v2599_v50 = vpop.f32.mrf.mxu1 }
 0xf81   :  { %2829 = vpow2.f32 %v2407_v52 }
 0xf8e   :  { %v2830_v53 = vpop.eup %2829 }
 0xf8f   :  { %v809_v54 = vadd.f32 1.0, %v2830_v53 }
 0xf91   :  { %2831 = vrcp.f32 %v809_v54 }
 0xf9e   :  { %v2832_v14 = vpop.eup %2831 }
 0xf9f   :  { %v825_v61 = vsub.f32 1.0, %v2832_v14  ;;  %v833_v0 = vmul.f32 %v2832_v14, %v831_v62 }
 0xff1   :  { %v816_v56 = vpop.permute.xlu0 %815 }
 0xff2   :  { %v818_v57 = vmul.f32 %v2832_v14, %v816_v56 }
 0xff4   :  { %820 = vrot.lane.b32.xlu1 %v818_v57, %s3122_s16 }
0x1066   :  { %v821_v58 = vpop.permute.xlu1 %820 }
0x1067   :  { %v823_v59 = vadd.f32 %v821_v58, %v3325_v40  ;;  %v3462_v58 = vld [vmem:[#allocation9 + $0x18] sm:$0xff]  }
0x1069   :  { %2833 = vtanh.f32 %v823_v59 }
0x1076   :  { %v2834_v60 = vpop.eup %2833 }
0x1077   :  { %827 = vrot.lane.b32.xlu0 %v2834_v60, %s3140_s0  ;;  %v2412_v60 = vld [vmem:[#allocation12 + $0x1] ss:$0 sm:$0xff] }
0x10e9   :  { %v828_v63 = vpop.permute.xlu0 %827 }
0x10ea   :  { %v830_v2 = vmul.f32 %v828_v63, %v825_v61 }
0x10ec   :  { %v3426_v3 = vadd.f32 %v833_v0, %v830_v2 }
0x10ee   :  { %v840_v4 = vpack.c.bf16 %v3426_v3, %v3426_v3  ;;  %v917_v29 = vrot.slane %v3426_v3, 6 }
0x10f0   :  { %v842_v5 = vrot.slane %v840_v4, 1 }
0x10f2   :  { %843 = vrot.lane.b32.xlu1 %v842_v5, %s3140_s0 }
0x1164   :  { %v844_v6 = vpop.permute.xlu1 %843 }
0x1165   :  { %2605 = vmatmul.mubr.msk.bf16.vlgmr.msra.gmra.mxu0 %vm189_vm3, %v844_v6 }
0x1166   :  { %2620 = vmatprep.mubr.msk.bf16.mxu0 %vm3139_vm0, %v3138_v1 }
0x1225   :  { %v882_v7 = vpop.f32.mrf.mxu0 }
0x1226   :  { %v898_v8 = vadd.f32 %v882_v7, %v3311_v24  ;;  %v889_v16 = vrot.slane %v882_v7, 4 }
0x1227   :  { %v2606_v9 = vpop.f32.mrf.mxu0 }
0x1228   :  { %v900_v10 = vrot.slane %v898_v8, 4  ;;  %v891_v17 = vadd.f32 %v889_v16, %v3325_v40 }
0x1229   :  { %v885_v11 = vpop.f32.mrf.mxu0 }
0x122a   :  { %901 = vrot.lane.b32.xlu0 %v900_v10, %s3122_s16  ;;  %v2409_v35 = vmul.f32 -1.442695, %v891_v17 }
0x122b   :  { %v2607_v15 = vpop.f32.mrf.mxu0 }
0x122c   :  { %2835 = vpow2.f32 %v2409_v35 }
0x1239   :  { %v2836_v18 = vpop.eup %2835 }
0x123a   :  { %v895_v20 = vadd.f32 1.0, %v2836_v18 }
0x123c   :  { %2837 = vrcp.f32 %v895_v20  ;;  %v2413_v20 = vld [vmem:[#allocation10 + $0x1] ss:$0 sm:$0xff] }
0x1249   :  { %v2838_v21 = vpop.eup %2837 }
0x124a   :  { %v911_v28 = vsub.f32 1.0, %v2838_v21  ;;  %v919_v31 = vmul.f32 %v2838_v21, %v917_v29 }
0x129c   :  { %v902_v22 = vpop.permute.xlu0 %901 }
0x129d   :  { %v904_v23 = vmul.f32 %v2838_v21, %v902_v22 }
0x129f   :  { %906 = vrot.lane.b32.xlu1 %v904_v23, %s3122_s16 }
0x1311   :  { %v907_v25 = vpop.permute.xlu1 %906 }
0x1312   :  { %v909_v26 = vadd.f32 %v907_v25, %v3325_v40 }
0x1314   :  { %2839 = vtanh.f32 %v909_v26 }
0x1321   :  { %v2840_v27 = vpop.eup %2839 }
0x1322   :  { %913 = vrot.lane.b32.xlu0 %v2840_v27, %s3140_s0 }
0x1394   :  { %v914_v30 = vpop.permute.xlu0 %913 }
0x1395   :  { %v916_v32 = vmul.f32 %v914_v30, %v911_v28 }
0x1397   :  { %v3441_v33 = vadd.f32 %v919_v31, %v916_v32 }
0x1399   :  { %v926_v34 = vpack.c.bf16 %v3441_v33, %v3441_v33  ;;  %v1003_v62 = vrot.slane %v3441_v33, 6 }
0x139b   :  { %v928_v36 = vrot.slane %v926_v34, 2 }
0x139d   :  { %929 = vrot.lane.b32.xlu1 %v928_v36, %s3140_s0 }
0x140f   :  { %v930_v37 = vpop.permute.xlu1 %929 }
0x1410   :  { %2613 = vmatmul.mubr.msk.bf16.vlgmr.msra.gmra.mxu1 %vm189_vm3, %v930_v37 }
0x1411   :  { %2628 = vmatprep.mubr.msk.bf16.mxu1 %vm3139_vm0, %v3138_v1  ;;  %2625 = vmatpush3.bf16.msra.mxu1 %v3462_v58 }
0x1412   :  { %2626 = vmatprep.subr.bf16.mxu1 %v3138_v1 }
0x14d0   :  { %v968_v38 = vpop.f32.mrf.mxu1 }
0x14d1   :  { %v984_v39 = vadd.f32 %v968_v38, %v3311_v24  ;;  %v975_v46 = vrot.slane %v968_v38, 2 }
0x14d2   :  { %v2614_v42 = vpop.f32.mrf.mxu1 }
0x14d3   :  { %v986_v43 = vrot.slane %v984_v39, 2  ;;  %v977_v47 = vadd.f32 %v975_v46, %v3325_v40 }
0x14d4   :  { %v971_v44 = vpop.f32.mrf.mxu1 }
0x14d5   :  { %987 = vrot.lane.b32.xlu0 %v986_v43, %s3122_s16  ;;  %v2411_v49 = vmul.f32 -1.442695, %v977_v47 }
0x14d6   :  { %v2615_v45 = vpop.f32.mrf.mxu1 }
0x14d7   :  { %2841 = vpow2.f32 %v2411_v49 }
0x14e4   :  { %v2842_v50 = vpop.eup %2841 }
0x14e5   :  { %v981_v51 = vadd.f32 1.0, %v2842_v50 }
0x14e7   :  { %2843 = vrcp.f32 %v981_v51 }
0x14f4   :  { %v2844_v12 = vpop.eup %2843 }
0x14f5   :  { %v997_v61 = vsub.f32 1.0, %v2844_v12  ;;  %v1005_v0 = vmul.f32 %v2844_v12, %v1003_v62 }
0x1547   :  { %v988_v52 = vpop.permute.xlu0 %987 }
0x1548   :  { %v990_v53 = vmul.f32 %v2844_v12, %v988_v52 }
0x154a   :  { %992 = vrot.lane.b32.xlu1 %v990_v53, %s3122_s16 }
0x154e   :  { %408 = vrot.lane.b32.xlu1 %v3331_v55, %s3140_s0 }
0x1552   :  { %581 = vrot.lane.b32.xlu1 %v3369_v48, %s3140_s0 }
0x1556   :  { %751 = vrot.lane.b32.xlu1 %v3407_v41, %s3140_s0  ;;  %v3466_v41 = vld [vmem:[#allocation9 + $0x10] sm:$0xff]  }
0x1557   :  { %2627 = vmatpush3.bf16.msra.mxu1 %v3466_v41 }
0x1558   :  { %2640 = vmatprep.subr.bf16.mxu1 %v3138_v1 }
0x155a   :  { %922 = vrot.lane.b32.xlu1 %v3441_v33, %s3140_s0 }
0x155e   :  { %1162 = vrot.lane.b32.xlu1 %v2412_v60, %s3122_s16 }
0x15bc   :  { %v993_v24 = vpop.permute.xlu1 %992 }
0x15bd   :  { %v995_v54 = vadd.f32 %v993_v24, %v3325_v40  ;;  %v3468_v40 = vld [vmem:[#allocation4 + $0x2] sm:$0x3] }
0x15be   :  { %v1099_v59 = vpack.c.bf16 %v3468_v40, %v3468_v40 }
0x15bf   :  { %2845 = vtanh.f32 %v995_v54 }
0x15c0   :  { %v409_v14 = vpop.permute.xlu1 %408  ;;  %2629 = vmatmul.mubr.msk.bf16.vlgmr.msra.gmra.mxu1 %vm189_vm3, %v1099_v59 }
0x15c1   :  { %412 = vst.msk [vmem:[#allocation2] sm:$0x3] %vm411_vm4, %v409_v14  ;;  %2641 = vmatpush3.bf16.msra.mxu1 %v3462_v58  ;;  %2644 = vmatprep.mubr.msk.bf16.mxu1 %vm3139_vm0, %v3138_v1 }
0x15c2   :  { %2642 = vmatprep.subr.bf16.mxu1 %v3138_v1 }
0x15c4   :  { %v582_v56 = vpop.permute.xlu1 %581 }
0x15c5   :  { %585 = vst.msk [vmem:[#allocation2] sm:$0x30] %vm584_vm5, %v582_v56  ;;  %2643 = vmatpush3.bf16.msra.mxu1 %v3466_v41 }
0x15c6   :  { %2656 = vmatprep.subr.bf16.mxu1 %v3138_v1 }
0x15c8   :  { %v752_v55 = vpop.permute.xlu1 %751 }
0x15c9   :  { %754 = vst.msk [vmem:[#allocation2 + $0x8] sm:$0x3] %vm411_vm4, %v752_v55 }
0x15cc   :  { %v2846_v57 = vpop.eup %2845  ;;  %v923_v48 = vpop.permute.xlu1 %922 }
0x15cd   :  { %925 = vst.msk [vmem:[#allocation2 + $0x8] sm:$0x30] %vm584_vm5, %v923_v48  ;;  %999 = vrot.lane.b32.xlu0 %v2846_v57, %s3140_s0 }
0x15d0   :  { %v3494_v11 = vpop.permute.xlu1 %1162 }
0x15d1   :  { %494 = vrot.lane.b32.xlu0 %v3350_v19, %s3140_s0  ;;  %v2791_v19 = vld [vmem:[#allocation7 + $0x18] sm:$0xff]  }
0x15d2   :  { %2617 = vmatpush3.bf16.msra.mxu0 %v2791_v19 }
0x15d3   :  { %2618 = vmatprep.subr.bf16.mxu0 %v3138_v1 }
0x15d5   :  { %668 = vrot.lane.b32.xlu0 %v3388_v13, %s3140_s0  ;;  %v2792_v13 = vld [vmem:[#allocation7 + $0x10] sm:$0xff]  }
0x15d6   :  { %2619 = vmatpush3.bf16.msra.mxu0 %v2792_v13 }
0x15d7   :  { %2632 = vmatprep.subr.bf16.mxu0 %v3138_v1 }
0x15d9   :  { %836 = vrot.lane.b32.xlu0 %v3426_v3, %s3140_s0 }
0x163f   :  { %v1000_v63 = vpop.permute.xlu0 %999 }
0x1640   :  { %v1002_v2 = vmul.f32 %v1000_v63, %v997_v61 }
0x1642   :  { %v1006_v3 = vadd.f32 %v1005_v0, %v1002_v2 }
0x1643   :  { %v495_v4 = vpop.permute.xlu0 %494 }
0x1644   :  { %498 = vst.msk [vmem:[#allocation2] sm:$0xc] %vm497_vm6, %v495_v4  ;;  %1008 = vrot.lane.b32.xlu0 %v1006_v3, %s3140_s0 }
0x1647   :  { %v669_v5 = vpop.permute.xlu0 %668 }
0x1648   :  { %672 = vst.msk [vmem:[#allocation2] sm:$0xc0] %vm671_vm7, %v669_v5 }
0x164b   :  { %v837_v6 = vpop.permute.xlu0 %836 }
0x164c   :  { %839 = vst.msk [vmem:[#allocation2 + $0x8] sm:$0xc] %vm497_vm6, %v837_v6 }
0x164f   :  { %v1032_v17 = vld [vmem:[#allocation2] sm:$0xff] }
0x1680   :  { %v1149_v7 = vpop.f32.mrf.mxu1 }
0x1681   :  { %v1165_v15 = vadd.f32 %v3494_v11, %v1149_v7 }
0x1682   :  { %v2630_v8 = vpop.f32.mrf.mxu1 }
0x1683   :  { %1167 = vrot.lane.b32.xlu0 %v1165_v15, %s3122_s16 }
0x1684   :  { %v1152_v9 = vpop.f32.mrf.mxu1 }
0x1686   :  { %v2631_v10 = vpop.f32.mrf.mxu1 }
0x16b6   :  { %v1009_v16 = vpop.permute.xlu0 %1008 }
0x16b7   :  { %1011 = vst.msk [vmem:[#allocation2 + $0x8] sm:$0xc0] %vm671_vm7, %v1009_v16  ;;  %1012 = vst.msk [vmem:[#allocation19 - $0x6] sm:$0xc0] %vm671_vm7, %v1009_v16 }
0x16be   :  { %v1033_v35 = vld [vmem:[#allocation2 + $0x8] sm:$0xff] }
0x16bf   :  { %v1034_v18 = vpack.c.bf16 %v1033_v35, %v1032_v17 }
0x16c1   :  { %2621 = vmatmul.mubr.msk.bf16.vlgmr.msra.gmra.mxu0 %vm189_vm3, %v1034_v18 }
0x16c2   :  { %2633 = vmatpush3.bf16.msra.mxu0 %v3462_v58  ;;  %2636 = vmatprep.mubr.msk.bf16.mxu0 %vm3139_vm0, %v3138_v1 }
0x16c3   :  { %2634 = vmatprep.subr.bf16.mxu0 %v3138_v1 }
0x16c6   :  { %2635 = vmatpush3.bf16.msra.mxu0 %v3466_v41 }
0x16c7   :  { %2648 = vmatprep.subr.bf16.mxu0 %v3138_v1 }
0x16f5   :  { %v1168_v32 = vpop.permute.xlu0 %1167 }
0x1781   :  { %v1090_v21 = vpop.f32.mrf.mxu0 }
0x1782   :  { %v3507_v22 = vadd.f32 %v2413_v20, %v1090_v21 }
0x1783   :  { %v2622_v23 = vpop.f32.mrf.mxu0 }
0x1784   :  { %v1155_v25 = vadd.f32 %v1149_v7, %v3507_v22 }
0x1785   :  { %v1093_v26 = vpop.f32.mrf.mxu0 }
0x1786   :  { %v2420_v27 = vmul.f32 -1.442695, %v1155_v25  ;;  %v3510_v28 = vadd.f32 %v2413_v20, %v1093_v26 }
0x1787   :  { %v2623_v29 = vpop.f32.mrf.mxu0 }
0x1788   :  { %2847 = vpow2.f32 %v2420_v27 }
0x1795   :  { %v2848_v30 = vpop.eup %2847 }
0x1796   :  { %v1159_v31 = vadd.f32 1.0, %v2848_v30 }
0x1798   :  { %2849 = vrcp.f32 %v1159_v31 }
0x17a5   :  { %v2850_v33 = vpop.eup %2849 }
0x17a6   :  { %v1170_v34 = vmul.f32 %v2850_v33, %v1168_v32  ;;  %v1177_v42 = vsub.f32 1.0, %v2850_v33 }
0x17a8   :  { %1172 = vrot.lane.b32.xlu1 %v1170_v34, %s3122_s16 }
0x17ac   :  { %1184 = vrot.lane.b32.xlu1 %v3468_v40, %s3131_s21 }
0x181a   :  { %v1173_v36 = vpop.permute.xlu1 %1172 }
0x181b   :  { %v1175_v37 = vadd.f32 %v1173_v36, %v3507_v22 }
0x181d   :  { %2851 = vtanh.f32 %v1175_v37 }
0x181e   :  { %v1185_v39 = vpop.permute.xlu1 %1184 }
0x181f   :  { %v1187_v44 = vmul.f32 %v2850_v33, %v1185_v39 }
0x182a   :  { %v2852_v38 = vpop.eup %2851 }
0x182b   :  { %1179 = vrot.lane.b32.xlu0 %v2852_v38, %s3140_s0 }
0x189d   :  { %v1180_v43 = vpop.permute.xlu0 %1179 }
0x189e   :  { %v1182_v45 = vmul.f32 %v1180_v43, %v1177_v42 }
0x18a0   :  { %v3517_v46 = vadd.f32 %v1187_v44, %v1182_v45 }
0x18a2   :  { %v1197_v47 = vpack.c.bf16 %v3517_v46, %v3517_v46  ;;  %v1273_v62 = vrot.slane %v3517_v46, 6 }
0x18a4   :  { %1199 = vrot.lane.b32.xlu0 %v1197_v47, %s3140_s0 }
0x1916   :  { %v1200_v49 = vpop.permute.xlu0 %1199 }
0x1917   :  { %2637 = vmatmul.mubr.msk.bf16.vlgmr.msra.gmra.mxu0 %vm189_vm3, %v1200_v49 }
0x1918   :  { %2649 = vmatpush3.bf16.msra.mxu0 %v3462_v58  ;;  %2652 = vmatprep.mubr.msk.bf16.mxu0 %vm3139_vm0, %v3138_v1 }
0x1919   :  { %2650 = vmatprep.subr.bf16.mxu0 %v3138_v1 }
0x191c   :  { %2651 = vmatpush3.bf16.msra.mxu0 %v3466_v41 }
0x191d   :  { %2664 = vmatprep.subr.bf16.mxu0 %v3138_v1 }
0x19d7   :  { %v1238_v50 = vpop.f32.mrf.mxu0 }
0x19d8   :  { %v1254_v51 = vadd.f32 %v1238_v50, %v3494_v11  ;;  %v1245_v54 = vrot.slane %v1238_v50, 6 }
0x19d9   :  { %v2638_v12 = vpop.f32.mrf.mxu0 }
0x19da   :  { %v1256_v52 = vrot.slane %v1254_v51, 6  ;;  %v1247_v14 = vadd.f32 %v1245_v54, %v3507_v22 }
0x19db   :  { %v1241_v53 = vpop.f32.mrf.mxu0 }
0x19dc   :  { %1257 = vrot.lane.b32.xlu1 %v1256_v52, %s3122_s16  ;;  %v2422_v56 = vmul.f32 -1.442695, %v1247_v14 }
0x19dd   :  { %v2639_v24 = vpop.f32.mrf.mxu0 }
0x19de   :  { %2853 = vpow2.f32 %v2422_v56 }
0x19eb   :  { %v2854_v55 = vpop.eup %2853 }
0x19ec   :  { %v1251_v57 = vadd.f32 1.0, %v2854_v55 }
0x19ee   :  { %2855 = vrcp.f32 %v1251_v57 }
0x19fb   :  { %v2856_v48 = vpop.eup %2855 }
0x19fc   :  { %v1267_v61 = vsub.f32 1.0, %v2856_v48  ;;  %v1275_v0 = vmul.f32 %v2856_v48, %v1273_v62 }
0x1a4e   :  { %v1258_v40 = vpop.permute.xlu1 %1257 }
0x1a4f   :  { %v1260_v59 = vmul.f32 %v2856_v48, %v1258_v40 }
0x1a51   :  { %1262 = vrot.lane.b32.xlu0 %v1260_v59, %s3122_s16 }
0x1ac3   :  { %v1263_v19 = vpop.permute.xlu0 %1262 }
0x1ac4   :  { %v1265_v60 = vadd.f32 %v1263_v19, %v3507_v22 }
0x1ac6   :  { %2857 = vtanh.f32 %v1265_v60 }
0x1ad3   :  { %v2858_v13 = vpop.eup %2857 }
0x1ad4   :  { %1269 = vrot.lane.b32.xlu1 %v2858_v13, %s3140_s0 }
0x1b46   :  { %v1270_v63 = vpop.permute.xlu1 %1269 }
0x1b47   :  { %v1272_v2 = vmul.f32 %v1270_v63, %v1267_v61 }
0x1b49   :  { %v3536_v3 = vadd.f32 %v1275_v0, %v1272_v2 }
0x1b4b   :  { %v1285_v4 = vpack.c.bf16 %v3536_v3, %v3536_v3  ;;  %v1362_v32 = vrot.slane %v3536_v3, 6 }
0x1b4d   :  { %v1287_v5 = vrot.slane %v1285_v4, 1 }
0x1b4f   :  { %1288 = vrot.lane.b32.xlu0 %v1287_v5, %s3140_s0 }
0x1bc1   :  { %v1289_v6 = vpop.permute.xlu0 %1288 }
0x1bc2   :  { %2645 = vmatmul.mubr.msk.bf16.vlgmr.msra.gmra.mxu1 %vm189_vm3, %v1289_v6 }
0x1bc3   :  { %2657 = vmatpush3.bf16.msra.mxu1 %v3462_v58  ;;  %2660 = vmatprep.mubr.msk.bf16.mxu1 %vm3139_vm0, %v3138_v1 }
0x1bc4   :  { %2658 = vmatprep.subr.bf16.mxu1 %v3138_v1 }
0x1bc7   :  { %2659 = vmatpush3.bf16.msra.mxu1 %v3466_v41 }
0x1bc8   :  { %2672 = vmatprep.subr.bf16.mxu1 %v3138_v1 }
0x1c82   :  { %v1327_v7 = vpop.f32.mrf.mxu1 }
0x1c83   :  { %v1343_v8 = vadd.f32 %v1327_v7, %v3494_v11  ;;  %v1334_v17 = vrot.slane %v1327_v7, 4 }
0x1c84   :  { %v2646_v9 = vpop.f32.mrf.mxu1 }
0x1c85   :  { %v1345_v10 = vrot.slane %v1343_v8, 4  ;;  %v1336_v35 = vadd.f32 %v1334_v17, %v3507_v22 }
0x1c86   :  { %v1330_v15 = vpop.f32.mrf.mxu1 }
0x1c87   :  { %1346 = vrot.lane.b32.xlu1 %v1345_v10, %s3122_s16  ;;  %v2424_v18 = vmul.f32 -1.442695, %v1336_v35 }
0x1c88   :  { %v2647_v16 = vpop.f32.mrf.mxu1 }
0x1c89   :  { %2859 = vpow2.f32 %v2424_v18 }
0x1c96   :  { %v2860_v20 = vpop.eup %2859 }
0x1c97   :  { %v1340_v21 = vadd.f32 1.0, %v2860_v20 }
0x1c99   :  { %2861 = vrcp.f32 %v1340_v21 }
0x1ca6   :  { %v2862_v23 = vpop.eup %2861 }
0x1ca7   :  { %v1356_v31 = vsub.f32 1.0, %v2862_v23  ;;  %v1364_v34 = vmul.f32 %v2862_v23, %v1362_v32 }
0x1cf9   :  { %v1347_v25 = vpop.permute.xlu1 %1346 }
0x1cfa   :  { %v1349_v26 = vmul.f32 %v2862_v23, %v1347_v25 }
0x1cfc   :  { %1351 = vrot.lane.b32.xlu0 %v1349_v26, %s3122_s16 }
0x1d6e   :  { %v1352_v27 = vpop.permute.xlu0 %1351 }
0x1d6f   :  { %v1354_v29 = vadd.f32 %v1352_v27, %v3507_v22 }
0x1d71   :  { %2863 = vtanh.f32 %v1354_v29 }
0x1d7e   :  { %v2864_v30 = vpop.eup %2863 }
0x1d7f   :  { %1358 = vrot.lane.b32.xlu1 %v2864_v30, %s3140_s0 }
0x1df1   :  { %v1359_v33 = vpop.permute.xlu1 %1358 }
0x1df2   :  { %v1361_v36 = vmul.f32 %v1359_v33, %v1356_v31 }
0x1df4   :  { %v3555_v37 = vadd.f32 %v1364_v34, %v1361_v36 }
0x1df6   :  { %v1374_v38 = vpack.c.bf16 %v3555_v37, %v3555_v37  ;;  %v1451_v59 = vrot.slane %v3555_v37, 6 }
0x1df8   :  { %v1376_v39 = vrot.slane %v1374_v38, 2 }
0x1dfa   :  { %1377 = vrot.lane.b32.xlu0 %v1376_v39, %s3140_s0 }
0x1e6c   :  { %v1378_v42 = vpop.permute.xlu0 %1377 }
0x1e6d   :  { %2653 = vmatmul.mubr.msk.bf16.vlgmr.msra.gmra.mxu0 %vm189_vm3, %v1378_v42 }
0x1e6e   :  { %2665 = vmatpush3.bf16.msra.mxu0 %v3462_v58  ;;  %2668 = vmatprep.mubr.msk.bf16.mxu0 %vm3139_vm0, %v3138_v1 }
0x1e6f   :  { %2666 = vmatprep.subr.bf16.mxu0 %v3138_v1 }
0x1e72   :  { %2667 = vmatpush3.bf16.msra.mxu0 %v3466_v41 }
0x1e73   :  { %2680 = vmatprep.subr.bf16.mxu0 %v3138_v1 }
0x1f2d   :  { %v1416_v43 = vpop.f32.mrf.mxu0 }
0x1f2e   :  { %v1432_v44 = vadd.f32 %v1416_v43, %v3494_v11  ;;  %v1423_v51 = vrot.slane %v1416_v43, 2 }
0x1f2f   :  { %v2654_v45 = vpop.f32.mrf.mxu0 }
0x1f30   :  { %v1434_v47 = vrot.slane %v1432_v44, 2  ;;  %v1425_v12 = vadd.f32 %v1423_v51, %v3507_v22 }
0x1f31   :  { %v1419_v49 = vpop.f32.mrf.mxu0 }
0x1f32   :  { %1435 = vrot.lane.b32.xlu1 %v1434_v47, %s3122_s16  ;;  %v2426_v52 = vmul.f32 -1.442695, %v1425_v12 }
0x1f33   :  { %v2655_v50 = vpop.f32.mrf.mxu0 }
0x1f34   :  { %2865 = vpow2.f32 %v2426_v52 }
0x1f41   :  { %v2866_v53 = vpop.eup %2865 }
0x1f42   :  { %v1429_v24 = vadd.f32 1.0, %v2866_v53 }
0x1f44   :  { %2867 = vrcp.f32 %v1429_v24 }
0x1f51   :  { %v2868_v54 = vpop.eup %2867 }
0x1f52   :  { %v1445_v40 = vsub.f32 1.0, %v2868_v54  ;;  %v1453_v60 = vmul.f32 %v2868_v54, %v1451_v59 }
0x1fa4   :  { %v1436_v14 = vpop.permute.xlu1 %1435 }
0x1fa5   :  { %v1438_v56 = vmul.f32 %v2868_v54, %v1436_v14 }
0x1fa7   :  { %1440 = vrot.lane.b32.xlu0 %v1438_v56, %s3122_s16 }
0x2019   :  { %v1441_v55 = vpop.permute.xlu0 %1440 }
0x201a   :  { %v1443_v57 = vadd.f32 %v1441_v55, %v3507_v22 }
0x201c   :  { %2869 = vtanh.f32 %v1443_v57 }
0x2029   :  { %v2870_v48 = vpop.eup %2869 }
0x202a   :  { %1447 = vrot.lane.b32.xlu1 %v2870_v48, %s3140_s0 }
0x209c   :  { %v1448_v19 = vpop.permute.xlu1 %1447 }
0x209d   :  { %v1450_v13 = vmul.f32 %v1448_v19, %v1445_v40 }
0x209f   :  { %v3574_v61 = vadd.f32 %v1453_v60, %v1450_v13 }
0x20a1   :  { %v1463_v62 = vpack.c.bf16 %v3574_v61, %v3574_v61  ;;  %v1536_v23 = vrot.slane %v3574_v61, 6 }
0x20a3   :  { %v1465_v63 = vrot.slane %v1463_v62, 3 }
0x20a5   :  { %1466 = vrot.lane.b32.xlu0 %v1465_v63, %s3140_s0 }
0x2117   :  { %v1467_v0 = vpop.permute.xlu0 %1466 }
0x2118   :  { %2661 = vmatmul.mubr.msk.bf16.vlgmr.msra.gmra.mxu1 %vm189_vm3, %v1467_v0 }
0x2119   :  { %2673 = vmatpush3.bf16.msra.mxu1 %v3462_v58  ;;  %2676 = vmatprep.mubr.msk.bf16.mxu1 %vm3139_vm0, %v3138_v1 }
0x211a   :  { %2674 = vmatprep.subr.bf16.mxu1 %v3138_v1 }
0x211d   :  { %2675 = vmatpush3.bf16.msra.mxu1 %v3466_v41 }
0x211e   :  { %2688 = vmatprep.subr.bf16.mxu1 %v3138_v1 }
0x21d8   :  { %v1505_v22 = vpop.f32.mrf.mxu1 }
0x21d9   :  { %v1518_v2 = vadd.f32 %v1505_v22, %v3494_v11  ;;  %v1511_v7 = vadd.f32 %v1505_v22, %v3510_v28 }
0x21da   :  { %v2662_v4 = vpop.f32.mrf.mxu1 }
0x21db   :  { %1520 = vrot.lane.b32.xlu1 %v1518_v2, %s3122_s16  ;;  %v2428_v8 = vmul.f32 -1.442695, %v1511_v7 }
0x21dc   :  { %v1508_v5 = vpop.f32.mrf.mxu1 }
0x21dd   :  { %2871 = vpow2.f32 %v2428_v8 }
0x21de   :  { %v2663_v6 = vpop.f32.mrf.mxu1 }
0x21ea   :  { %v2872_v9 = vpop.eup %2871 }
0x21eb   :  { %v1515_v10 = vadd.f32 1.0, %v2872_v9 }
0x21ed   :  { %2873 = vrcp.f32 %v1515_v10 }
0x21fa   :  { %v2874_v15 = vpop.eup %2873 }
0x21fb   :  { %v1530_v21 = vsub.f32 1.0, %v2874_v15  ;;  %v1538_v26 = vmul.f32 %v2874_v15, %v1536_v23 }
0x224d   :  { %v1521_v16 = vpop.permute.xlu1 %1520 }
0x224e   :  { %v1523_v17 = vmul.f32 %v2874_v15, %v1521_v16 }
0x2250   :  { %1525 = vrot.lane.b32.xlu0 %v1523_v17, %s3122_s16 }
0x22c2   :  { %v1526_v35 = vpop.permute.xlu0 %1525 }
0x22c3   :  { %v1528_v18 = vadd.f32 %v1526_v35, %v3510_v28 }
0x22c5   :  { %2875 = vtanh.f32 %v1528_v18 }
0x22d2   :  { %v2876_v20 = vpop.eup %2875 }
0x22d3   :  { %1532 = vrot.lane.b32.xlu1 %v2876_v20, %s3140_s0 }
0x2345   :  { %v1533_v25 = vpop.permute.xlu1 %1532 }
0x2346   :  { %v1535_v27 = vmul.f32 %v1533_v25, %v1530_v21 }
0x2348   :  { %v3593_v29 = vadd.f32 %v1538_v26, %v1535_v27 }
0x234a   :  { %v1546_v30 = vpack.c.bf16 %v3593_v29, %v3593_v29  ;;  %v1622_v53 = vrot.slane %v3593_v29, 6 }
0x234c   :  { %1548 = vrot.lane.b32.xlu0 %v1546_v30, %s3140_s0 }
0x23be   :  { %v1549_v31 = vpop.permute.xlu0 %1548 }
0x23bf   :  { %2669 = vmatmul.mubr.msk.bf16.vlgmr.msra.gmra.mxu0 %vm189_vm3, %v1549_v31 }
0x23c0   :  { %2681 = vmatpush3.bf16.msra.mxu0 %v3462_v58  ;;  %2684 = vmatprep.mubr.msk.bf16.mxu0 %vm3139_vm0, %v3138_v1 }
0x23c1   :  { %2682 = vmatprep.subr.bf16.mxu0 %v3138_v1 }
0x23c4   :  { %2683 = vmatpush3.bf16.msra.mxu0 %v3466_v41 }
0x23c5   :  { %2694 = vmatprep.subr.bf16.mxu0 %v3138_v1 }
0x247f   :  { %v1587_v32 = vpop.f32.mrf.mxu0 }
0x2480   :  { %v1603_v33 = vadd.f32 %v1587_v32, %v3494_v11  ;;  %v1594_v42 = vrot.slane %v1587_v32, 6 }
0x2481   :  { %v2670_v34 = vpop.f32.mrf.mxu0 }
0x2482   :  { %v1605_v36 = vrot.slane %v1603_v33, 6  ;;  %v1596_v58 = vadd.f32 %v1594_v42, %v3510_v28 }
0x2483   :  { %v1590_v38 = vpop.f32.mrf.mxu0 }
0x2484   :  { %1606 = vrot.lane.b32.xlu1 %v1605_v36, %s3122_s16  ;;  %v2430_v43 = vmul.f32 -1.442695, %v1596_v58 }
0x2485   :  { %v2671_v39 = vpop.f32.mrf.mxu0 }
0x2486   :  { %2877 = vpow2.f32 %v2430_v43 }
0x2493   :  { %v2878_v44 = vpop.eup %2877 }
0x2494   :  { %v1600_v45 = vadd.f32 1.0, %v2878_v44 }
0x2496   :  { %2879 = vrcp.f32 %v1600_v45 }
0x24a3   :  { %v2880_v41 = vpop.eup %2879 }
0x24a4   :  { %v1616_v52 = vsub.f32 1.0, %v2880_v41  ;;  %v1624_v54 = vmul.f32 %v2880_v41, %v1622_v53 }
0x24f6   :  { %v1607_v47 = vpop.permute.xlu1 %1606 }
0x24f7   :  { %v1609_v49 = vmul.f32 %v2880_v41, %v1607_v47 }
0x24f9   :  { %1611 = vrot.lane.b32.xlu0 %v1609_v49, %s3122_s16 }
0x256b   :  { %v1612_v50 = vpop.permute.xlu0 %1611 }
0x256c   :  { %v1614_v51 = vadd.f32 %v1612_v50, %v3510_v28 }
0x256e   :  { %2881 = vtanh.f32 %v1614_v51 }
0x257b   :  { %v2882_v12 = vpop.eup %2881 }
0x257c   :  { %1618 = vrot.lane.b32.xlu1 %v2882_v12, %s3140_s0 }
0x25ee   :  { %v1619_v24 = vpop.permute.xlu1 %1618 }
0x25ef   :  { %v1621_v14 = vmul.f32 %v1619_v24, %v1616_v52 }
0x25f1   :  { %v3612_v56 = vadd.f32 %v1624_v54, %v1621_v14 }
0x25f3   :  { %v1632_v55 = vpack.c.bf16 %v3612_v56, %v3612_v56  ;;  %v1709_v16 = vrot.slane %v3612_v56, 6 }
0x25f5   :  { %v1634_v57 = vrot.slane %v1632_v55, 1 }
0x25f7   :  { %1635 = vrot.lane.b32.xlu0 %v1634_v57, %s3140_s0 }
0x2669   :  { %v1636_v48 = vpop.permute.xlu0 %1635 }
0x266a   :  { %2677 = vmatmul.mubr.msk.bf16.vlgmr.msra.gmra.mxu1 %vm189_vm3, %v1636_v48 }
0x266b   :  { %2690 = vmatprep.mubr.msk.bf16.mxu1 %vm3139_vm0, %v3138_v1 }
0x272a   :  { %v1674_v40 = vpop.f32.mrf.mxu1 }
0x272b   :  { %v1690_v59 = vadd.f32 %v1674_v40, %v3494_v11  ;;  %v1681_v63 = vrot.slane %v1674_v40, 4 }
0x272c   :  { %v2678_v19 = vpop.f32.mrf.mxu1 }
0x272d   :  { %v1692_v60 = vrot.slane %v1690_v59, 4  ;;  %v1683_v0 = vadd.f32 %v1681_v63, %v3510_v28 }
0x272e   :  { %v1677_v13 = vpop.f32.mrf.mxu1 }
0x272f   :  { %1693 = vrot.lane.b32.xlu1 %v1692_v60, %s3122_s16  ;;  %v2432_v22 = vmul.f32 -1.442695, %v1683_v0 }
0x2730   :  { %v2679_v62 = vpop.f32.mrf.mxu1 }
0x2731   :  { %2883 = vpow2.f32 %v2432_v22 }
0x273e   :  { %v2884_v2 = vpop.eup %2883 }
0x273f   :  { %v1687_v4 = vadd.f32 1.0, %v2884_v2 }
0x2741   :  { %2885 = vrcp.f32 %v1687_v4  ;;  %v2795_v4 = vld [vmem:[%s3745_s9 + $0x8] sm:$0xff]  }
0x274e   :  { %v2886_v5 = vpop.eup %2885 }
0x274f   :  { %v1703_v15 = vsub.f32 1.0, %v2886_v5  ;;  %v1711_v35 = vmul.f32 %v2886_v5, %v1709_v16 }
0x27a1   :  { %v1694_v6 = vpop.permute.xlu1 %1693 }
0x27a2   :  { %v1696_v7 = vmul.f32 %v2886_v5, %v1694_v6 }
0x27a4   :  { %1698 = vrot.lane.b32.xlu0 %v1696_v7, %s3122_s16 }
0x2816   :  { %v1699_v8 = vpop.permute.xlu0 %1698 }
0x2817   :  { %v1701_v9 = vadd.f32 %v1699_v8, %v3510_v28  ;;  %v3665_v8 = vld [vmem:[#allocation15 + $0x8] sm:$0xff]  }
0x2819   :  { %2887 = vtanh.f32 %v1701_v9 }
0x2826   :  { %v2888_v10 = vpop.eup %2887 }
0x2827   :  { %1705 = vrot.lane.b32.xlu1 %v2888_v10, %s3140_s0  ;;  %v1809_v10 = vld [vmem:[#allocation13 + $0x8] sm:$0xff] }
0x2828   :  { %v2113_v16 = vpack.c.bf16 %v1809_v10, %v1809_v10 }
0x2899   :  { %v1706_v17 = vpop.permute.xlu1 %1705 }
0x289a   :  { %v1708_v18 = vmul.f32 %v1706_v17, %v1703_v15  ;;  %v3669_v15 = vld [vmem:[#allocation15] sm:$0xff]   ;;  %v2118_v17 = vsel %vm189_vm3, %v2113_v16, 0 }
0x289c   :  { %v1712_v20 = vadd.f32 %v1711_v35, %v1708_v18 }
0x289e   :  { %v1719_v21 = vpack.c.bf16 %v1712_v20, %v1712_v20  ;;  %v1796_v12 = vrot.slane %v1712_v20, 6 }
0x28a0   :  { %v1721_v23 = vrot.slane %v1719_v21, 2 }
0x28a2   :  { %1722 = vrot.lane.b32.xlu0 %v1721_v23, %s3140_s0 }
0x2914   :  { %v1723_v25 = vpop.permute.xlu0 %1722 }
0x2915   :  { %2685 = vmatmul.mubr.msk.bf16.vlgmr.msra.gmra.mxu0 %vm189_vm3, %v1723_v25 }
0x2916   :  { %2696 = vmatprep.mubr.msk.bf16.mxu0 %vm3139_vm0, %v3138_v1 }
0x29d5   :  { %v1761_v26 = vpop.f32.mrf.mxu0 }
0x29d6   :  { %v1777_v27 = vadd.f32 %v1761_v26, %v3494_v11  ;;  %v1768_v34 = vrot.slane %v1761_v26, 2 }
0x29d7   :  { %v2686_v30 = vpop.f32.mrf.mxu0 }
0x29d8   :  { %v1779_v31 = vrot.slane %v1777_v27, 2  ;;  %v1770_v36 = vadd.f32 %v1768_v34, %v3510_v28 }
0x29d9   :  { %v1764_v32 = vpop.f32.mrf.mxu0 }
0x29da   :  { %1780 = vrot.lane.b32.xlu1 %v1779_v31, %s3122_s16  ;;  %v2434_v38 = vmul.f32 -1.442695, %v1770_v36 }
0x29db   :  { %v2687_v33 = vpop.f32.mrf.mxu0 }
0x29dc   :  { %2889 = vpow2.f32 %v2434_v38 }
0x29e9   :  { %v2890_v39 = vpop.eup %2889 }
0x29ea   :  { %v1774_v42 = vadd.f32 1.0, %v2890_v39 }
0x29ec   :  { %2891 = vrcp.f32 %v1774_v42 }
0x29f9   :  { %v2892_v58 = vpop.eup %2891 }
0x29fa   :  { %v1790_v51 = vsub.f32 1.0, %v2892_v58  ;;  %v1798_v53 = vmul.f32 %v2892_v58, %v1796_v12 }
0x2a4c   :  { %v1781_v43 = vpop.permute.xlu1 %1780 }
0x2a4d   :  { %v1783_v44 = vmul.f32 %v2892_v58, %v1781_v43  ;;  %v2797_v58 = vld [vmem:[#allocation16 + $0x8] sm:$0xff]   ;;  %v2798_v43 = vld [vmem:[#allocation16] sm:$0xff]  }
0x2a4f   :  { %1785 = vrot.lane.b32.xlu0 %v1783_v44, %s3122_s16 }
0x2a53   :  { %1190 = vrot.lane.b32.xlu0 %v3517_v46, %s3140_s0 }
0x2a57   :  { %1367 = vrot.lane.b32.xlu0 %v3555_v37, %s3140_s0 }
0x2a5b   :  { %1541 = vrot.lane.b32.xlu0 %v3593_v29, %s3140_s0 }
0x2a5f   :  { %1714 = vrot.lane.b32.xlu0 %v1712_v20, %s3140_s0  ;;  %v2796_v20 = vld [vmem:[%s3745_s9] sm:$0xff]  }
0x2ac1   :  { %v1786_v11 = vpop.permute.xlu0 %1785 }
0x2ac2   :  { %v1788_v45 = vadd.f32 %v1786_v11, %v3510_v28  ;;  %v1808_v28 = vld [vmem:[#allocation13] sm:$0xff] }
0x2ac3   :  { %v1826_v49 = vpack.c.bf16 %v1808_v28, %v1808_v28 }
0x2ac4   :  { %2893 = vtanh.f32 %v1788_v45 }
0x2ac5   :  { %v1191_v41 = vpop.permute.xlu0 %1190  ;;  %v1831_v50 = vsel %vm189_vm3, %v1826_v49, 0  ;;  %v1890_v2 = vsel %vm1889_vm2, %v1826_v49, 0 }
0x2ac6   :  { %1194 = vst.msk [vmem:[#allocation3] sm:$0x1] %vm1193_vm8, %v1191_v41  ;;  %2689 = vmatpush3.bf16.xpose.msra.mxu1 %v1831_v50  ;;  %2695 = vmatpush3.bf16.msra.mxu0 %v1890_v2 }
0x2ac7   :  { %1196 = vst.msk [vmem:[#allocation3 + $0x7] sm:$0x2] %vm1195_vm9, %v1191_v41  ;;  %2700 = vmatprep.subr.bf16.mxu1 %v3138_v1  ;;  %2708 = vmatprep.subr.bf16.mxu0 %v3138_v1 }
0x2ac9   :  { %v1368_v46 = vpop.permute.xlu0 %1367 }
0x2aca   :  { %1371 = vst.msk [vmem:[#allocation3 - $0x2] sm:$0x10] %vm1370_vm10, %v1368_v46 }
0x2acb   :  { %1373 = vst.msk [vmem:[#allocation3 + $0x5] sm:$0x20] %vm1372_vm11, %v1368_v46 }
0x2acd   :  { %v1542_v37 = vpop.permute.xlu0 %1541 }
0x2ace   :  { %1544 = vst.msk [vmem:[#allocation3 + $0x4] sm:$0x1] %vm1193_vm8, %v1542_v37 }
0x2acf   :  { %1545 = vst.msk [vmem:[#allocation3 + $0xb] sm:$0x2] %vm1195_vm9, %v1542_v37  ;;  %v2443_v37 = vld [vmem:[%s3746_s10] ss:$0 sm:$0xff] }
0x2ad1   :  { %v2894_v29 = vpop.eup %2893  ;;  %v1715_v47 = vpop.permute.xlu0 %1714 }
0x2ad2   :  { %1717 = vst.msk [vmem:[#allocation3 + $0x2] sm:$0x10] %vm1370_vm10, %v1715_v47  ;;  %1792 = vrot.lane.b32.xlu1 %v2894_v29, %s3140_s0 }
0x2ad3   :  { %1718 = vst.msk [vmem:[#allocation3 + $0x9] sm:$0x20] %vm1372_vm11, %v1715_v47 }
0x2ad6   :  { %1278 = vrot.lane.b32.xlu1 %v3536_v3, %s3140_s0 }
0x2ada   :  { %1456 = vrot.lane.b32.xlu1 %v3574_v61, %s3140_s0 }
0x2ade   :  { %1627 = vrot.lane.b32.xlu1 %v3612_v56, %s3140_s0 }
0x2b44   :  { %v1793_v52 = vpop.permute.xlu1 %1792 }
0x2b45   :  { %v1795_v24 = vmul.f32 %v1793_v52, %v1790_v51 }
0x2b47   :  { %v1799_v3 = vadd.f32 %v1798_v53, %v1795_v24  ;;  %v2175_v53 = vsel %vm1889_vm2, %v2113_v16, 0 }
0x2b48   :  { %v1279_v54 = vpop.permute.xlu1 %1278 }
0x2b49   :  { %1282 = vst.msk [vmem:[#allocation3 - $0x1] sm:$0x4] %vm1281_vm12, %v1279_v54  ;;  %1801 = vrot.lane.b32.xlu1 %v1799_v3, %s3140_s0 }
0x2b4a   :  { %1284 = vst.msk [vmem:[#allocation3 + $0x6] sm:$0x8] %vm1283_vm13, %v1279_v54 }
0x2b4c   :  { %v1457_v61 = vpop.permute.xlu1 %1456 }
0x2b4d   :  { %1460 = vst.msk [vmem:[#allocation3 - $0x3] sm:$0x40] %vm1459_vm14, %v1457_v61 }
0x2b4e   :  { %1462 = vst.msk [vmem:[#allocation3 + $0x4] sm:$0x80] %vm1461_vm15, %v1457_v61 }
0x2b50   :  { %v1628_v14 = vpop.permute.xlu1 %1627 }
0x2b51   :  { %1630 = vst.msk [vmem:[#allocation3 + $0x3] sm:$0x4] %vm1281_vm12, %v1628_v14 }
0x2b52   :  { %1631 = vst.msk [vmem:[#allocation3 + $0xa] sm:$0x8] %vm1283_vm13, %v1628_v14  ;;  %v2444_v14 = vld [vmem:[%s3748_s12] ss:$0 sm:$0xff]  ;;  %s3141_s12 = smov [#allocation19]  }
0x2b53   :  { %s2366_s27 = sshll.u32 %s3141_s12, 4  ;;  %s2367_s27 = int_to_ptr.vmem [resolvable:$true] %s2366_s27 }
0x2b54   :  { %s3067_s4 = scalar_lea.vmem %s2367_s27, 64  ;;  %p3072_p13 = scmp.lt.s32.totalorder %s2367_s27, %s2367_s27 }
0x2b55   :  { %p3068_p12 = scmp.ne.s32.totalorder %s2367_s27, %s3067_s4  ;;  %p3073_p0 = scmp.lt.s32.totalorder %s3067_s4, %s3067_s4 }
0x2b57   :  { %p3074_p1 = por %p3073_p0, %p3072_p13 }
0x2b59   :  { %p3075_p2 = pnand %p3074_p1, %p3068_p12 }
0x2bbb   :  { %v1802_v56 = vpop.permute.xlu1 %1801 }
0x2bbc   :  { %1804 = vst.msk [vmem:[#allocation3 + $0x1] sm:$0x40] %vm1459_vm14, %v1802_v56 }
0x2bbd   :  { %1805 = vst.msk [vmem:[#allocation3 + $0x8] sm:$0x80] %vm1461_vm15, %v1802_v56 }
0x2bbe   :  { %1807 = vst.msk [vmem:[#allocation19 - $0x4] sm:$0xc0] %vm671_vm7, %v1802_v56 }
0x2bc3   :  { %v1824_v55 = vld [vmem:[#allocation3] sm:$0xff] }
0x2bc4   :  { %v1825_v57 = vpack.c.bf16 %v1824_v55, %v1824_v55  ;;  %v2111_v35 = vld [vmem:[#allocation3 + $0x8] sm:$0xff] }
0x2bc5   :  { %v3681_v18 = vpack.c.bf16 %v2111_v35, %v2111_v35 }
0x2bc6   :  { %2691 = vmatmul.mubr.msk.bf16.vlgmr.msra.gmra.mxu1 %vm189_vm3, %v1825_v57 }
0x2bc7   :  { %2704 = vmatprep.mubr.msk.bf16.mxu1 %vm3139_vm0, %v3138_v1  ;;  %2701 = vmatpush3.bf16.msra.mxu1 %v2795_v4 }
0x2bc8   :  { %2702 = vmatprep.subr.bf16.mxu1 %v3138_v1 }
0x2bcb   :  { %2703 = vmatpush3.bf16.msra.mxu1 %v2796_v20 }
0x2bcc   :  { %2716 = vmatprep.subr.bf16.mxu1 %v3138_v1 }
0x2c86   :  { %v1867_v48 = vpop.f32.mrf.mxu1 }
0x2c87   :  { %v1874_v40 = vsel %vm1873_vm1, %v1867_v48, -inf }
0x2c88   :  { %1875 = vmax.xlane.f32.xlu0 %v1874_v40  ;;  %v2692_v59 = vpop.f32.mrf.mxu1 }
0x2c8a   :  { %v1870_v19 = vpop.f32.mrf.mxu1 }
0x2c8c   :  { %v2693_v60 = vpop.f32.mrf.mxu1 }
0x2d11   :  { %v1876_v13 = vpop.xlane.xlu0 %1875 }
0x2d12   :  { %v1877_v62 = vsub.f32 %v1867_v48, %v1876_v13 }
0x2d14   :  { %v1878_v63 = vmul.f32 1.442695, %v1877_v62 }
0x2d16   :  { %2895 = vpow2.f32 %v1878_v63 }
0x2d23   :  { %v2896_v0 = vpop.eup %2895 }
0x2d24   :  { %v1880_v22 = vsel %vm1873_vm1, %v2896_v0, 0.0 }
0x2d25   :  { %1881 = vadd.xlane.f32.xlu1 %v1880_v22 }
0x2dae   :  { %v1882_v5 = vpop.xlane.xlu1 %1881 }
0x2daf   :  { %2897 = vrcp.f32 %v1882_v5 }
0x2dbc   :  { %v2898_v6 = vpop.eup %2897 }
0x2dbd   :  { %v1884_v7 = vmul.f32 %v2898_v6, %v2896_v0 }
0x2dbf   :  { %v1885_v9 = vpack.c.bf16 %v1884_v7, %v1884_v7 }
0x2dc1   :  { %2697 = vmatmul.mubr.msk.bf16.vlgmr.msra.gmra.mxu0 %vm1873_vm1, %v1885_v9 }
0x2dc2   :  { %2709 = vmatpush3.bf16.msra.mxu0 %v3665_v8  ;;  %2712 = vmatprep.mubr.msk.bf16.mxu0 %vm3139_vm0, %v3138_v1 }
0x2dc3   :  { %2710 = vmatprep.subr.bf16.mxu0 %v3138_v1 }
0x2dc6   :  { %2711 = vmatpush3.bf16.msra.mxu0 %v3669_v15 }
0x2dc7   :  { %2724 = vmatprep.subr.bf16.mxu0 %v3138_v1 }
0x2dc9   :  { %2713 = vmatmul.mubr.msk.bf16.vlgmr.msra.gmra.mxu0 %vm189_vm3, %v1825_v57 }
0x2dca   :  { %2725 = vmatpush3.bf16.xpose.msra.mxu0 %v2118_v17  ;;  %2726 = vmatprep.mubr.msk.bf16.mxu0 %vm3139_vm0, %v3138_v1 }
0x2dcb   :  { %2736 = vmatprep.subr.bf16.mxu0 %v3138_v1 }
0x2dd1   :  { %2727 = vmatmul.mubr.msk.bf16.vlgmr.msra.gmra.mxu0 %vm189_vm3, %v3681_v18 }
0x2dd2   :  { %2737 = vmatpush3.bf16.msra.mxu0 %v2795_v4  ;;  %2740 = vmatprep.mubr.msk.bf16.mxu0 %vm3139_vm0, %v3138_v1 }
0x2dd3   :  { %2738 = vmatprep.subr.bf16.mxu0 %v3138_v1 }
0x2dd6   :  { %2739 = vmatpush3.bf16.msra.mxu0 %v2796_v20 }
0x2dd7   :  { %2752 = vmatprep.subr.bf16.mxu0 %v3138_v1 }
0x2e81   :  { %v1926_v21 = vpop.f32.mrf.mxu0 }
0x2e82   :  { %v1932_v23 = vpack.c.bf16 %v1926_v21, %v1926_v21 }
0x2e83   :  { %v2698_v25 = vpop.f32.mrf.mxu0 }
0x2e84   :  { %2705 = vmatmul.mubr.msk.bf16.vlgmr.msra.gmra.mxu1 %vm189_vm3, %v1932_v23 }
0x2e85   :  { %v1929_v26 = vpop.f32.mrf.mxu0  ;;  %2720 = vmatprep.mubr.msk.bf16.mxu1 %vm3139_vm0, %v3138_v1  ;;  %2717 = vmatpush3.bf16.msra.mxu1 %v2797_v58 }
0x2e86   :  { %2718 = vmatprep.subr.bf16.mxu1 %v3138_v1 }
0x2e87   :  { %v2699_v27 = vpop.f32.mrf.mxu0 }
0x2e89   :  { %v2034_v30 = vpop.f32.mrf.mxu0  ;;  %2719 = vmatpush3.bf16.msra.mxu1 %v2798_v43 }
0x2e8a   :  { %2730 = vmatprep.subr.bf16.mxu1 %v3138_v1 }
0x2e8b   :  { %v2714_v31 = vpop.f32.mrf.mxu0 }
0x2e8d   :  { %v2037_v32 = vpop.f32.mrf.mxu0 }
0x2e8f   :  { %v2715_v33 = vpop.f32.mrf.mxu0 }
0x2e91   :  { %v2154_v34 = vpop.f32.mrf.mxu0 }
0x2e92   :  { %v2160_v36 = vsel %vm1873_vm1, %v2154_v34, -inf }
0x2e93   :  { %2161 = vmax.xlane.f32.xlu0 %v2160_v36  ;;  %v2728_v38 = vpop.f32.mrf.mxu0 }
0x2e95   :  { %v2157_v39 = vpop.f32.mrf.mxu0 }
0x2e97   :  { %v2729_v42 = vpop.f32.mrf.mxu0 }
0x2f1c   :  { %v2162_v44 = vpop.xlane.xlu0 %2161 }
0x2f1d   :  { %v2163_v11 = vsub.f32 %v2154_v34, %v2162_v44 }
0x2f1f   :  { %v2164_v45 = vmul.f32 1.442695, %v2163_v11 }
0x2f21   :  { %2899 = vpow2.f32 %v2164_v45 }
0x2f2e   :  { %v2900_v41 = vpop.eup %2899 }
0x2f2f   :  { %v2166_v46 = vsel %vm1873_vm1, %v2900_v41, 0.0 }
0x2f30   :  { %2167 = vadd.xlane.f32.xlu0 %v2166_v46 }
0x2f44   :  { %v1982_v29 = vpop.f32.mrf.mxu1 }
0x2f45   :  { %v2035_v47 = vadd.f32 %v2034_v30, %v1982_v29 }
0x2f46   :  { %v2706_v28 = vpop.f32.mrf.mxu1 }
0x2f47   :  { %v2046_v49 = vadd.f32 %v2443_v37, %v2035_v47 }
0x2f48   :  { %v1985_v50 = vpop.f32.mrf.mxu1 }
0x2f49   :  { %2901 = vtanh.f32 %v2046_v49 }
0x2f4a   :  { %v2707_v51 = vpop.f32.mrf.mxu1 }
0x2f56   :  { %v2902_v12 = vpop.eup %2901 }
0x2f57   :  { %v2048_v52 = vpack.c.bf16 %v2902_v12, %v2902_v12 }
0x2f59   :  { %2721 = vmatmul.mubr.msk.bf16.vlgmr.msra.gmra.mxu1 %vm189_vm3, %v2048_v52 }
0x2f5a   :  { %2731 = vmatpush3.bf16.msra.mxu1 %v2175_v53  ;;  %2732 = vmatprep.mubr.msk.bf16.mxu1 %vm3139_vm0, %v3138_v1 }
0x2f5b   :  { %2744 = vmatprep.subr.bf16.mxu1 %v3138_v1 }
0x2fb9   :  { %v2168_v24 = vpop.xlane.xlu0 %2167 }
0x2fba   :  { %2903 = vrcp.f32 %v2168_v24 }
0x2fc7   :  { %v2904_v3 = vpop.eup %2903 }
0x2fc8   :  { %v2170_v54 = vmul.f32 %v2904_v3, %v2900_v41 }
0x2fca   :  { %v2171_v61 = vpack.c.bf16 %v2170_v54, %v2170_v54 }
0x2fcc   :  { %2733 = vmatmul.mubr.msk.bf16.vlgmr.msra.gmra.mxu1 %vm1873_vm1, %v2171_v61 }
0x2fcd   :  { %2745 = vmatpush3.bf16.msra.mxu1 %v3665_v8  ;;  %2748 = vmatprep.mubr.msk.bf16.mxu1 %vm3139_vm0, %v3138_v1 }
0x2fce   :  { %2746 = vmatprep.subr.bf16.mxu1 %v3138_v1 }
0x2fd1   :  { %2747 = vmatpush3.bf16.msra.mxu1 %v3669_v15 }
0x2fd4   :  { %2749 = vmatmul.mubr.msk.bf16.vlgmr.msra.gmra.mxu1 %vm189_vm3, %v3681_v18 }
0x3019   :  { %v2104_v56 = vpop.f32.mrf.mxu1 }
0x301a   :  { %v2105_v55 = vadd.f32 %v2444_v14, %v2104_v56 }
0x301b   :  { %v2722_v57 = vpop.f32.mrf.mxu1 }
0x301c   :  { %2110 = vst [vmem:[#allocation18] sm:$0xff] %v2105_v55 }
0x301d   :  { %v2107_v48 = vpop.f32.mrf.mxu1 }
0x301f   :  { %v2723_v40 = vpop.f32.mrf.mxu1 }
0x308c   :  { %v2211_v59 = vpop.f32.mrf.mxu1 }
0x308d   :  { %v2217_v19 = vpack.c.bf16 %v2211_v59, %v2211_v59 }
0x308e   :  { %v2734_v60 = vpop.f32.mrf.mxu1 }
0x308f   :  { %2741 = vmatmul.mubr.msk.bf16.vlgmr.msra.gmra.mxu0 %vm189_vm3, %v2217_v19 }
0x3090   :  { %v2214_v13 = vpop.f32.mrf.mxu1  ;;  %2753 = vmatpush3.bf16.msra.mxu0 %v2797_v58  ;;  %2756 = vmatprep.mubr.msk.bf16.mxu0 %vm3139_vm0, %v3138_v1 }
0x3091   :  { %2754 = vmatprep.subr.bf16.mxu0 %v3138_v1 }
0x3092   :  { %v2735_v62 = vpop.f32.mrf.mxu1 }
0x3094   :  { %v2295_v63 = vpop.f32.mrf.mxu1  ;;  %2755 = vmatpush3.bf16.msra.mxu0 %v2798_v43 }
0x3096   :  { %v2750_v0 = vpop.f32.mrf.mxu1 }
0x3098   :  { %v2298_v22 = vpop.f32.mrf.mxu1 }
0x309a   :  { %v2751_v2 = vpop.f32.mrf.mxu1 }
0x314f   :  { %v2255_v4 = vpop.f32.mrf.mxu0 }
0x3150   :  { %v2296_v5 = vadd.f32 %v2295_v63, %v2255_v4 }
0x3151   :  { %v2742_v6 = vpop.f32.mrf.mxu0 }
0x3152   :  { %v2301_v7 = vadd.f32 %v2443_v37, %v2296_v5 }
0x3153   :  { %v2258_v8 = vpop.f32.mrf.mxu0 }
0x3154   :  { %2905 = vtanh.f32 %v2301_v7 }
0x3155   :  { %v2743_v9 = vpop.f32.mrf.mxu0 }
0x3161   :  { %v2906_v10 = vpop.eup %2905 }
0x3162   :  { %v2303_v15 = vpack.c.bf16 %v2906_v10, %v2906_v10 }
0x3164   :  { %2757 = vmatmul.mubr.msk.bf16.vlgmr.msra.gmra.mxu0 %vm189_vm3, %v2303_v15 }
0x3165   :  { %3078 = shalt.err (!%p3075_p2)
}
0x3166   :  { %2372 = dma.vmem_to_hbm [thread:$0]  %s2367_s27, 64, %s3750_s14, [#allocation20], %s3131_s21, %s3131_s21, %s3132_s22  }
0x3167   :  { %s3142_s6 = smov [#allocation18]  }
0x3168   :  { %s2354_s23 = sshll.u32 %s3142_s6, 4  ;;  %s2355_s23 = int_to_ptr.vmem [resolvable:$true] %s2354_s23 }
0x3169   :  { %s3087_s24 = scalar_lea.vmem %s2355_s23, 256  ;;  %p3092_p4 = scmp.lt.s32.totalorder %s2355_s23, %s2355_s23 }
0x316a   :  { %p3088_p3 = scmp.ne.s32.totalorder %s2355_s23, %s3087_s24  ;;  %p3093_p5 = scmp.lt.s32.totalorder %s3087_s24, %s3087_s24 }
0x316c   :  { %p3094_p6 = por %p3093_p5, %p3092_p4 }
0x316e   :  { %p3095_p7 = pnand %p3094_p6, %p3088_p3 }
0x3224   :  { %v2341_v1 = vpop.f32.mrf.mxu0 }
0x3225   :  { %v2342_v16 = vadd.f32 %v2444_v14, %v2341_v1 }
0x3226   :  { %v2758_v17 = vpop.f32.mrf.mxu0 }
0x3227   :  { %2348 = vst [vmem:[#allocation18 + $0x8] sm:$0xff] %v2342_v16 }
0x3228   :  { %v2344_v35 = vpop.f32.mrf.mxu0 }
0x3229   :  { %3098 = shalt.err (!%p3095_p7)
}
0x322a   :  { %2360 = dma.vmem_to_hbm [thread:$0]  %s2355_s23, 256, %s3749_s13, [#allocation6], %s3128_s29, %s3128_s29, %s3129_s30   ;;  %v2759_v18 = vpop.f32.mrf.mxu0 }
0x322b   :  { %3117 = dma.done.wait [#allocation6], 256  }
0x322c   :  { %3118 = vsyncadd [#allocation6], 4294967040 }
0x322d   :  { %3119 = dma.done.wait [#allocation20], 64  }
0x322e   :  { %3120 = vsyncadd [#allocation20], 4294967232 }
0x322f   :  { %2379 = vsyncpa [#allocation5], 1 }
0x3230   :  { %2380 = vsyncpa [#allocation8], 1 }
0x3231   :  { %2381 = vsyncpa [#allocation11], 1 }
0x3232   :  { %2382 = vsyncpa [#allocation14], 1 }
0x3233   :  { %2383 = vsyncpa [#allocation17], 1 }
0x3234   :  { %2384 = vsyncpa [#allocation6], 1 }
0x3235   :  { %2385 = vsyncpa [#allocation20], 1 }

</bundles_post_ra>
